<compile_context>
chip_gen: v7x
topology: tpu7x:2x2x1
jax: 0.10.0
libtpu: 0.0.40
codegen_flags: <defaults>
</compile_context>

<pallas_src>
import functools

import jax
import jax.numpy as jnp
from jax import lax
from jax.experimental import pallas as pl
from jax.experimental.pallas import tpu as pltpu


def _round_up(n, m):
    return ((n + m - 1) // m) * m


# ----------------------------------------------------------------------------
# Fused Pallas kernel: encoder LSTM -> bridge -> decoder LSTM
# ----------------------------------------------------------------------------
def _fused_ae_kernel(x_ref, ewih_ref, ewhh_ref, eb_ref,
                     bw_ref, bb_ref,
                     dwih_ref, dwhh_ref, db_ref,
                     y_ref,
                     x_tm, xw_enc, ency, xw_dec, dec_y,
                     he, ce, hd, cd,
                     *, seq_len, batch, in_size, hid_pad, out_pad):
    T, B, I = seq_len, batch, in_size
    Hp, Ip = hid_pad, out_pad
    unroll = min(T, 8)          # bounded unroll: full for small T, 8 otherwise

    # --- 0. batch-first (B, T*I) -> time-major (T*B, I) entirely in VMEM
    #        (static lane-slab copies; replaces the XLA transpose / HBM trip).
    for t in range(T):
        x_tm[t * B:(t + 1) * B, :] = x_ref[:, t * I:(t + 1) * I].astype(jnp.float32)

    # --- 1. encoder input projection for ALL timesteps: one big MXU matmul
    xw_enc[...] = (jnp.dot(x_tm[...], ewih_ref[...],
                           preferred_element_type=jnp.float32) + eb_ref[...])

    he[...] = jnp.zeros_like(he)
    ce[...] = jnp.zeros_like(ce)

    def enc_step(t, carry):
        row = pl.multiple_of(t * B, B)
        h = he[...]
        c = ce[...]
        g = xw_enc[pl.ds(row, B), :] + jnp.dot(
            h, ewhh_ref[...], preferred_element_type=jnp.float32)
        # PyTorch gate order: i, f, g, o — slices are lane-aligned (Hp % 128 == 0)
        i_g = jax.nn.sigmoid(g[:, 0 * Hp:1 * Hp])
        f_g = jax.nn.sigmoid(g[:, 1 * Hp:2 * Hp])
        g_g = jnp.tanh(g[:, 2 * Hp:3 * Hp])
        o_g = jax.nn.sigmoid(g[:, 3 * Hp:4 * Hp])
        c_new = f_g * c + i_g * g_g
        h_new = o_g * jnp.tanh(c_new)
        he[...] = h_new
        ce[...] = c_new
        ency[pl.ds(row, B), :] = h_new          # encoder outputs stay in VMEM
        return carry

    lax.fori_loop(0, T, enc_step, 0, unroll=unroll)

    # --- 2. bridge Linear applied to final (h, c) — inlined, no extra launch
    hd[...] = (jnp.dot(he[...], bw_ref[...],
                       preferred_element_type=jnp.float32) + bb_ref[...])
    cd[...] = (jnp.dot(ce[...], bw_ref[...],
                       preferred_element_type=jnp.float32) + bb_ref[...])

    # --- 3. decoder input projection for ALL timesteps (enc_y never hits HBM)
    xw_dec[...] = (jnp.dot(ency[...], dwih_ref[...],
                           preferred_element_type=jnp.float32) + db_ref[...])

    def dec_step(t, carry):
        row = pl.multiple_of(t * B, B)
        h = hd[...]
        c = cd[...]
        g = xw_dec[pl.ds(row, B), :] + jnp.dot(
            h, dwhh_ref[...], preferred_element_type=jnp.float32)
        i_g = jax.nn.sigmoid(g[:, 0 * Ip:1 * Ip])
        f_g = jax.nn.sigmoid(g[:, 1 * Ip:2 * Ip])
        g_g = jnp.tanh(g[:, 2 * Ip:3 * Ip])
        o_g = jax.nn.sigmoid(g[:, 3 * Ip:4 * Ip])
        c_new = f_g * c + i_g * g_g
        h_new = o_g * jnp.tanh(c_new)
        hd[...] = h_new
        cd[...] = c_new
        dec_y[pl.ds(row, B), :] = h_new
        return carry

    lax.fori_loop(0, T, dec_step, 0, unroll=unroll)

    # --- 4. time-major (T*B, Ip) -> batch-first (B, T*I) output, in VMEM
    #        (static slab copies; wrapper reshape to (B, T, I) is free).
    for t in range(T):
        y_ref[:, t * I:(t + 1) * I] = dec_y[t * B:(t + 1) * B, :I].astype(y_ref.dtype)


# ----------------------------------------------------------------------------
# Wrapper: weight padding / layout + single pallas_call
# ----------------------------------------------------------------------------
def _prep_lstm(w_ih, w_hh, b_ih, b_hh, x_dim, x_pad, h_dim, h_pad):
    """Per-gate zero-pad LSTM weights to lane-aligned sizes and transpose.

    Returns wih_t: (x_pad, 4*h_pad), whh_t: (h_pad, 4*h_pad), b: (1, 4*h_pad).
    Zero padding keeps the recurrence exact (padded state stays 0).
    """
    wih = w_ih.reshape(4, h_dim, x_dim)
    wih = jnp.pad(wih, ((0, 0), (0, h_pad - h_dim), (0, x_pad - x_dim)))
    wih_t = jnp.transpose(wih.reshape(4 * h_pad, x_pad))

    whh = w_hh.reshape(4, h_dim, h_dim)
    whh = jnp.pad(whh, ((0, 0), (0, h_pad - h_dim), (0, h_pad - h_dim)))
    whh_t = jnp.transpose(whh.reshape(4 * h_pad, h_pad))

    b = jnp.pad((b_ih + b_hh).reshape(4, h_dim), ((0, 0), (0, h_pad - h_dim)))
    return wih_t, whh_t, b.reshape(1, 4 * h_pad)


def lstm_autoencoder_forward(params, x):
    """x: (B, T, input_size) batch_first, like the PyTorch module."""
    B, T, I = x.shape
    H = params["enc_w_hh"].shape[1]
    Hp = _round_up(H, 128)          # encoder hidden, lane-padded
    Ip = _round_up(I, 128)          # decoder hidden (= input_size), lane-padded

    # Encoder: input width I (unpadded x), hidden H -> Hp.
    ewih_t, ewhh_t, eb = _prep_lstm(params["enc_w_ih"], params["enc_w_hh"],
                                    params["enc_b_ih"], params["enc_b_hh"],
                                    x_dim=I, x_pad=I, h_dim=H, h_pad=Hp)
    # Decoder: input width H -> Hp (enc_y is padded), hidden I -> Ip.
    dwih_t, dwhh_t, db = _prep_lstm(params["dec_w_ih"], params["dec_w_hh"],
                                    params["dec_b_ih"], params["dec_b_hh"],
                                    x_dim=H, x_pad=Hp, h_dim=I, h_pad=Ip)
    # Bridge Linear(H -> I), padded to (Hp, Ip).
    bw_t = jnp.transpose(jnp.pad(params["bridge_w"],
                                 ((0, Ip - I), (0, Hp - H))))   # (Hp, Ip)
    bb = jnp.pad(params["bridge_b"], (0, Ip - I)).reshape(1, Ip)

    x2 = x.reshape(B, T * I)        # free reshape — no XLA transpose

    kernel = functools.partial(_fused_ae_kernel, seq_len=T, batch=B,
                               in_size=I, hid_pad=Hp, out_pad=Ip)

    # Explicit VMEM budget (v5e default scoped limit is only 16 MiB); give
    # ~2x headroom over what this kernel actually touches, capped below v7x's
    # 64 MiB physical VMEM.
    f32 = 4
    scratch_bytes = f32 * (T * B * (I + 4 * Hp + Hp + 4 * Ip + Ip)
                           + 2 * B * Hp + 2 * B * Ip)
    io_bytes = f32 * (2 * B * T * I + I * 4 * Hp + Hp * 4 * Hp + 4 * Hp
                      + Hp * Ip + Ip + Hp * 4 * Ip + Ip * 4 * Ip + 4 * Ip)
    vmem_limit = int(min(max(2 * (scratch_bytes + io_bytes), 32 * 1024 * 1024),
                         56 * 1024 * 1024))

    y2 = pl.pallas_call(
        kernel,
        out_shape=jax.ShapeDtypeStruct((B, T * I), x.dtype),
        scratch_shapes=[
            pltpu.VMEM((T * B, I), jnp.float32),        # x, time-major
            pltpu.VMEM((T * B, 4 * Hp), jnp.float32),   # encoder x @ W_ih + b
            pltpu.VMEM((T * B, Hp), jnp.float32),       # encoder outputs
            pltpu.VMEM((T * B, 4 * Ip), jnp.float32),   # decoder enc_y @ W_ih + b
            pltpu.VMEM((T * B, Ip), jnp.float32),       # decoder outputs
            pltpu.VMEM((B, Hp), jnp.float32),           # encoder h
            pltpu.VMEM((B, Hp), jnp.float32),           # encoder c
            pltpu.VMEM((B, Ip), jnp.float32),           # decoder h
            pltpu.VMEM((B, Ip), jnp.float32),           # decoder c
        ],
        compiler_params=pltpu.CompilerParams(vmem_limit_bytes=vmem_limit),
    )(x2, ewih_t, ewhh_t, eb, bw_t, bb, dwih_t, dwhh_t, db)

    return y2.reshape(B, T, I)


# ----------------------------------------------------------------------------
# Parameter init (matches nn.LSTM / nn.Linear shapes)
# ----------------------------------------------------------------------------
def init_params(key, input_size, hidden_size):
    def u(k, shape, bound):
        return jax.random.uniform(k, shape, jnp.float32, -bound, bound)

    ks = jax.random.split(key, 10)
    be = 1.0 / jnp.sqrt(hidden_size)   # encoder bound (hidden = hidden_size)
    bd = 1.0 / jnp.sqrt(input_size)    # decoder bound (hidden = input_size)
    return dict(
        # encoder: LSTM(input_size -> hidden_size)
        enc_w_ih=u(ks[0], (4 * hidden_size, input_size), be),
        enc_w_hh=u(ks[1], (4 * hidden_size, hidden_size), be),
        enc_b_ih=u(ks[2], (4 * hidden_size,), be),
        enc_b_hh=u(ks[3], (4 * hidden_size,), be),
        # bridge: Linear(hidden_size -> input_size)
        bridge_w=u(ks[4], (input_size, hidden_size), be),
        bridge_b=u(ks[5], (input_size,), be),
        # decoder: LSTM(hidden_size -> input_size)
        dec_w_ih=u(ks[6], (4 * input_size, hidden_size), bd),
        dec_w_hh=u(ks[7], (4 * input_size, input_size), bd),
        dec_b_ih=u(ks[8], (4 * input_size,), bd),
        dec_b_hh=u(ks[9], (4 * input_size,), bd),
    )


# ----------------------------------------------------------------------------
# Pure-JAX reference (for correctness check)
# ----------------------------------------------------------------------------
def _ref_lstm(x_btf, w_ih, w_hh, b_ih, b_hh, h0, c0):
    def step(carry, xt):
        h, c = carry
        gates = xt @ w_ih.T + h @ w_hh.T + b_ih + b_hh
        i, f, g, o = jnp.split(gates, 4, axis=-1)
        i = jax.nn.sigmoid(i); f = jax.nn.sigmoid(f)
        g = jnp.tanh(g); o = jax.nn.sigmoid(o)
        c = f * c + i * g
        h = o * jnp.tanh(c)
        return (h, c), h

    (h, c), ys = lax.scan(step, (h0, c0), jnp.transpose(x_btf, (1, 0, 2)))
    return jnp.transpose(ys, (1, 0, 2)), h, c


def _ref_forward(params, x):
    B, T, I = x.shape
    H = params["enc_w_hh"].shape[1]
    h0 = jnp.zeros((B, H), x.dtype)
    c0 = jnp.zeros((B, H), x.dtype)
    enc_y, h, c = _ref_lstm(x, params["enc_w_ih"], params["enc_w_hh"],
                            params["enc_b_ih"], params["enc_b_hh"], h0, c0)
    h_b = h @ params["bridge_w"].T + params["bridge_b"]
    c_b = c @ params["bridge_w"].T + params["bridge_b"]
    dec_y, _, _ = _ref_lstm(enc_y, params["dec_w_ih"], params["dec_w_hh"],
                            params["dec_b_ih"], params["dec_b_hh"], h_b, c_b)
    return dec_y


# ----------------------------------------------------------------------------
if __name__ == "__main__":
    B, T, INPUT, HIDDEN = 8, 8, 32, 32

    key = jax.random.PRNGKey(0)
    k_param, k_x = jax.random.split(key)
    params = init_params(k_param, INPUT, HIDDEN)
    x = jax.random.normal(k_x, (B, T, INPUT), jnp.float32)

    out = jax.jit(lstm_autoencoder_forward)(params, x)
    out = jax.block_until_ready(out)

    ref = _ref_forward(params, x)
    assert out.shape == (B, T, INPUT), out.shape
    assert jnp.allclose(out, ref, atol=1e-5, rtol=1e-5), (
        float(jnp.max(jnp.abs(out - ref))))

    print("KERNEL_OK")
</pallas_src>

<mosaic_0001>
module attributes {stable_mosaic.version = 11 : i64} {
  func.func @_fused_ae_kernel(%arg0: memref<8x256xf32, #tpu.memory_space<vmem>>, %arg1: memref<32x512xf32, #tpu.memory_space<vmem>>, %arg2: memref<128x512xf32, #tpu.memory_space<vmem>>, %arg3: memref<1x512xf32, #tpu.memory_space<vmem>>, %arg4: memref<128x128xf32, #tpu.memory_space<vmem>>, %arg5: memref<1x128xf32, #tpu.memory_space<vmem>>, %arg6: memref<128x512xf32, #tpu.memory_space<vmem>>, %arg7: memref<128x512xf32, #tpu.memory_space<vmem>>, %arg8: memref<1x512xf32, #tpu.memory_space<vmem>>, %arg9: memref<8x256xf32, #tpu.memory_space<vmem>>, %arg10: memref<64x32xf32, #tpu.memory_space<vmem>>, %arg11: memref<64x512xf32, #tpu.memory_space<vmem>>, %arg12: memref<64x128xf32, #tpu.memory_space<vmem>>, %arg13: memref<64x512xf32, #tpu.memory_space<vmem>>, %arg14: memref<64x128xf32, #tpu.memory_space<vmem>>, %arg15: memref<8x128xf32, #tpu.memory_space<vmem>>, %arg16: memref<8x128xf32, #tpu.memory_space<vmem>>, %arg17: memref<8x128xf32, #tpu.memory_space<vmem>>, %arg18: memref<8x128xf32, #tpu.memory_space<vmem>>) attributes {dimension_semantics = [], scalar_prefetch = 0 : i64, scratch_operands = 9 : i64, tpu.core_type = #tpu.core_type<tc>} {
    %c0 = arith.constant 0 : index
    %c0_0 = arith.constant 0 : index
    %0 = vector.load %arg0[%c0, %c0_0] : memref<8x256xf32, #tpu.memory_space<vmem>>, vector<8x32xf32>
    %c0_1 = arith.constant 0 : index
    %c0_2 = arith.constant 0 : index
    %1 = vector.load %arg10[%c0_1, %c0_2] : memref<64x32xf32, #tpu.memory_space<vmem>>, vector<8x32xf32>
    tpu.vector_store %arg10[%c0_1, %c0_2], %0 {strides = array<i32>} : memref<64x32xf32, #tpu.memory_space<vmem>>, vector<8x32xf32>,
    %c0_3 = arith.constant 0 : index
    %c32 = arith.constant 32 : index
    %2 = vector.load %arg0[%c0_3, %c32] : memref<8x256xf32, #tpu.memory_space<vmem>>, vector<8x32xf32>
    %c8 = arith.constant 8 : index
    %c0_4 = arith.constant 0 : index
    %3 = vector.load %arg10[%c8, %c0_4] : memref<64x32xf32, #tpu.memory_space<vmem>>, vector<8x32xf32>
    tpu.vector_store %arg10[%c8, %c0_4], %2 {strides = array<i32>} : memref<64x32xf32, #tpu.memory_space<vmem>>, vector<8x32xf32>,
    %c0_5 = arith.constant 0 : index
    %c64 = arith.constant 64 : index
    %4 = vector.load %arg0[%c0_5, %c64] : memref<8x256xf32, #tpu.memory_space<vmem>>, vector<8x32xf32>
    %c16 = arith.constant 16 : index
    %c0_6 = arith.constant 0 : index
    %5 = vector.load %arg10[%c16, %c0_6] : memref<64x32xf32, #tpu.memory_space<vmem>>, vector<8x32xf32>
    tpu.vector_store %arg10[%c16, %c0_6], %4 {strides = array<i32>} : memref<64x32xf32, #tpu.memory_space<vmem>>, vector<8x32xf32>,
    %c0_7 = arith.constant 0 : index
    %c96 = arith.constant 96 : index
    %6 = vector.load %arg0[%c0_7, %c96] : memref<8x256xf32, #tpu.memory_space<vmem>>, vector<8x32xf32>
    %c24 = arith.constant 24 : index
    %c0_8 = arith.constant 0 : index
    %7 = vector.load %arg10[%c24, %c0_8] : memref<64x32xf32, #tpu.memory_space<vmem>>, vector<8x32xf32>
    tpu.vector_store %arg10[%c24, %c0_8], %6 {strides = array<i32>} : memref<64x32xf32, #tpu.memory_space<vmem>>, vector<8x32xf32>,
    %c0_9 = arith.constant 0 : index
    %c128 = arith.constant 128 : index
    %8 = vector.load %arg0[%c0_9, %c128] : memref<8x256xf32, #tpu.memory_space<vmem>>, vector<8x32xf32>
    %c32_10 = arith.constant 32 : index
    %c0_11 = arith.constant 0 : index
    %9 = vector.load %arg10[%c32_10, %c0_11] : memref<64x32xf32, #tpu.memory_space<vmem>>, vector<8x32xf32>
    tpu.vector_store %arg10[%c32_10, %c0_11], %8 {strides = array<i32>} : memref<64x32xf32, #tpu.memory_space<vmem>>, vector<8x32xf32>,
    %c0_12 = arith.constant 0 : index
    %c160 = arith.constant 160 : index
    %10 = vector.load %arg0[%c0_12, %c160] : memref<8x256xf32, #tpu.memory_space<vmem>>, vector<8x32xf32>
    %c40 = arith.constant 40 : index
    %c0_13 = arith.constant 0 : index
    %11 = vector.load %arg10[%c40, %c0_13] : memref<64x32xf32, #tpu.memory_space<vmem>>, vector<8x32xf32>
    tpu.vector_store %arg10[%c40, %c0_13], %10 {strides = array<i32>} : memref<64x32xf32, #tpu.memory_space<vmem>>, vector<8x32xf32>,
    %c0_14 = arith.constant 0 : index
    %c192 = arith.constant 192 : index
    %12 = vector.load %arg0[%c0_14, %c192] : memref<8x256xf32, #tpu.memory_space<vmem>>, vector<8x32xf32>
    %c48 = arith.constant 48 : index
    %c0_15 = arith.constant 0 : index
    %13 = vector.load %arg10[%c48, %c0_15] : memref<64x32xf32, #tpu.memory_space<vmem>>, vector<8x32xf32>
    tpu.vector_store %arg10[%c48, %c0_15], %12 {strides = array<i32>} : memref<64x32xf32, #tpu.memory_space<vmem>>, vector<8x32xf32>,
    %c0_16 = arith.constant 0 : index
    %c224 = arith.constant 224 : index
    %14 = vector.load %arg0[%c0_16, %c224] : memref<8x256xf32, #tpu.memory_space<vmem>>, vector<8x32xf32>
    %c56 = arith.constant 56 : index
    %c0_17 = arith.constant 0 : index
    %15 = vector.load %arg10[%c56, %c0_17] : memref<64x32xf32, #tpu.memory_space<vmem>>, vector<8x32xf32>
    tpu.vector_store %arg10[%c56, %c0_17], %14 {strides = array<i32>} : memref<64x32xf32, #tpu.memory_space<vmem>>, vector<8x32xf32>,
    %c0_18 = arith.constant 0 : index
    %c0_19 = arith.constant 0 : index
    %16 = vector.load %arg10[%c0_18, %c0_19] : memref<64x32xf32, #tpu.memory_space<vmem>>, vector<64x32xf32>
    %c0_20 = arith.constant 0 : index
    %c0_21 = arith.constant 0 : index
    %17 = vector.load %arg1[%c0_20, %c0_21] : memref<32x512xf32, #tpu.memory_space<vmem>>, vector<32x512xf32>
    %cst = arith.constant dense<0.000000e+00> : vector<64x512xf32>
    %18 = tpu.matmul %16, %17, %cst {dimension_numbers = #tpu.dot_dimension_numbers<[1], [0], [0], [1], [0, 0, 1, 1], [], []>} : vector<64x32xf32>, vector<32x512xf32>, vector<64x512xf32> -> vector<64x512xf32>
    %c0_22 = arith.constant 0 : index
    %c0_23 = arith.constant 0 : index
    %19 = vector.load %arg3[%c0_22, %c0_23] : memref<1x512xf32, #tpu.memory_space<vmem>>, vector<1x512xf32>
    %20 = vector.broadcast %19 : vector<1x512xf32> to vector<64x512xf32>
    %21 = arith.addf %18, %20 : vector<64x512xf32>
    %c0_24 = arith.constant 0 : index
    %c0_25 = arith.constant 0 : index
    %22 = vector.load %arg11[%c0_24, %c0_25] : memref<64x512xf32, #tpu.memory_space<vmem>>, vector<64x512xf32>
    tpu.vector_store %arg11[%c0_24, %c0_25], %21 {strides = array<i32>} : memref<64x512xf32, #tpu.memory_space<vmem>>, vector<64x512xf32>,
    %cst_26 = arith.constant 0.000000e+00 : f32
    %23 = vector.broadcast %cst_26 : f32 to vector<8x128xf32>
    %c0_27 = arith.constant 0 : index
    %c0_28 = arith.constant 0 : index
    %24 = vector.load %arg15[%c0_27, %c0_28] : memref<8x128xf32, #tpu.memory_space<vmem>>, vector<8x128xf32>
    tpu.vector_store %arg15[%c0_27, %c0_28], %23 {strides = array<i32>} : memref<8x128xf32, #tpu.memory_space<vmem>>, vector<8x128xf32>,
    %cst_29 = arith.constant 0.000000e+00 : f32
    %25 = vector.broadcast %cst_29 : f32 to vector<8x128xf32>
    %c0_30 = arith.constant 0 : index
    %c0_31 = arith.constant 0 : index
    %26 = vector.load %arg16[%c0_30, %c0_31] : memref<8x128xf32, #tpu.memory_space<vmem>>, vector<8x128xf32>
    tpu.vector_store %arg16[%c0_30, %c0_31], %25 {strides = array<i32>} : memref<8x128xf32, #tpu.memory_space<vmem>>, vector<8x128xf32>,
    %c0_i32 = arith.constant 0 : i32
    %c8_i32 = arith.constant 8 : i32
    %27 = arith.muli %c0_i32, %c8_i32 : i32
    %28 = tpu.assume_multiple %27, 8 : i32
    %c0_32 = arith.constant 0 : index
    %c0_33 = arith.constant 0 : index
    %29 = vector.load %arg15[%c0_32, %c0_33] : memref<8x128xf32, #tpu.memory_space<vmem>>, vector<8x128xf32>
    %c0_34 = arith.constant 0 : index
    %c0_35 = arith.constant 0 : index
    %30 = vector.load %arg16[%c0_34, %c0_35] : memref<8x128xf32, #tpu.memory_space<vmem>>, vector<8x128xf32>
    %31 = arith.index_cast %28 : i32 to index
    %c0_36 = arith.constant 0 : index
    %32 = vector.load %arg11[%31, %c0_36] : memref<64x512xf32, #tpu.memory_space<vmem>>, vector<8x512xf32>
    %c0_37 = arith.constant 0 : index
    %c0_38 = arith.constant 0 : index
    %33 = vector.load %arg2[%c0_37, %c0_38] : memref<128x512xf32, #tpu.memory_space<vmem>>, vector<128x512xf32>
    %cst_39 = arith.constant dense<0.000000e+00> : vector<8x512xf32>
    %34 = tpu.matmul %29, %33, %cst_39 {dimension_numbers = #tpu.dot_dimension_numbers<[1], [0], [0], [1], [0, 0, 1, 1], [], []>} : vector<8x128xf32>, vector<128x512xf32>, vector<8x512xf32> -> vector<8x512xf32>
    %35 = arith.addf %32, %34 : vector<8x512xf32>
    %36 = vector.extract_strided_slice %35 {offsets = [0, 0], sizes = [8, 128], strides = [1, 1]} : vector<8x512xf32> to vector<8x128xf32>
    %37 = arith.negf %36 : vector<8x128xf32>
    %38 = math.exp %37 : vector<8x128xf32>
    %cst_40 = arith.constant 1.000000e+00 : f32
    %39 = vector.broadcast %cst_40 : f32 to vector<8x128xf32>
    %40 = arith.addf %39, %38 : vector<8x128xf32>
    %41 = arith.divf %39, %40 : vector<8x128xf32>
    %42 = vector.extract_strided_slice %35 {offsets = [0, 128], sizes = [8, 128], strides = [1, 1]} : vector<8x512xf32> to vector<8x128xf32>
    %43 = arith.negf %42 : vector<8x128xf32>
    %44 = math.exp %43 : vector<8x128xf32>
    %cst_41 = arith.constant 1.000000e+00 : f32
    %45 = vector.broadcast %cst_41 : f32 to vector<8x128xf32>
    %46 = arith.addf %45, %44 : vector<8x128xf32>
    %47 = arith.divf %45, %46 : vector<8x128xf32>
    %48 = vector.extract_strided_slice %35 {offsets = [0, 256], sizes = [8, 128], strides = [1, 1]} : vector<8x512xf32> to vector<8x128xf32>
    %49 = math.tanh %48 : vector<8x128xf32>
    %50 = vector.extract_strided_slice %35 {offsets = [0, 384], sizes = [8, 128], strides = [1, 1]} : vector<8x512xf32> to vector<8x128xf32>
    %51 = arith.negf %50 : vector<8x128xf32>
    %52 = math.exp %51 : vector<8x128xf32>
    %cst_42 = arith.constant 1.000000e+00 : f32
    %53 = vector.broadcast %cst_42 : f32 to vector<8x128xf32>
    %54 = arith.addf %53, %52 : vector<8x128xf32>
    %55 = arith.divf %53, %54 : vector<8x128xf32>
    %56 = arith.mulf %47, %30 : vector<8x128xf32>
    %57 = arith.mulf %41, %49 : vector<8x128xf32>
    %58 = arith.addf %56, %57 : vector<8x128xf32>
    %59 = math.tanh %58 : vector<8x128xf32>
    %60 = arith.mulf %55, %59 : vector<8x128xf32>
    %c0_43 = arith.constant 0 : index
    %c0_44 = arith.constant 0 : index
    %61 = vector.load %arg15[%c0_43, %c0_44] : memref<8x128xf32, #tpu.memory_space<vmem>>, vector<8x128xf32>
    tpu.vector_store %arg15[%c0_43, %c0_44], %60 {strides = array<i32>} : memref<8x128xf32, #tpu.memory_space<vmem>>, vector<8x128xf32>,
    %c0_45 = arith.constant 0 : index
    %c0_46 = arith.constant 0 : index
    %62 = vector.load %arg16[%c0_45, %c0_46] : memref<8x128xf32, #tpu.memory_space<vmem>>, vector<8x128xf32>
    tpu.vector_store %arg16[%c0_45, %c0_46], %58 {strides = array<i32>} : memref<8x128xf32, #tpu.memory_space<vmem>>, vector<8x128xf32>,
    %63 = arith.index_cast %28 : i32 to index
    %c0_47 = arith.constant 0 : index
    %64 = vector.load %arg12[%63, %c0_47] : memref<64x128xf32, #tpu.memory_space<vmem>>, vector<8x128xf32>
    tpu.vector_store %arg12[%63, %c0_47], %60 {strides = array<i32>} : memref<64x128xf32, #tpu.memory_space<vmem>>, vector<8x128xf32>,
    %c1_i32 = arith.constant 1 : i32
    %c8_i32_48 = arith.constant 8 : i32
    %65 = arith.muli %c1_i32, %c8_i32_48 : i32
    %66 = tpu.assume_multiple %65, 8 : i32
    %c0_49 = arith.constant 0 : index
    %c0_50 = arith.constant 0 : index
    %67 = vector.load %arg15[%c0_49, %c0_50] : memref<8x128xf32, #tpu.memory_space<vmem>>, vector<8x128xf32>
    %c0_51 = arith.constant 0 : index
    %c0_52 = arith.constant 0 : index
    %68 = vector.load %arg16[%c0_51, %c0_52] : memref<8x128xf32, #tpu.memory_space<vmem>>, vector<8x128xf32>
    %69 = arith.index_cast %66 : i32 to index
    %c0_53 = arith.constant 0 : index
    %70 = vector.load %arg11[%69, %c0_53] : memref<64x512xf32, #tpu.memory_space<vmem>>, vector<8x512xf32>
    %c0_54 = arith.constant 0 : index
    %c0_55 = arith.constant 0 : index
    %71 = vector.load %arg2[%c0_54, %c0_55] : memref<128x512xf32, #tpu.memory_space<vmem>>, vector<128x512xf32>
    %cst_56 = arith.constant dense<0.000000e+00> : vector<8x512xf32>
    %72 = tpu.matmul %67, %71, %cst_56 {dimension_numbers = #tpu.dot_dimension_numbers<[1], [0], [0], [1], [0, 0, 1, 1], [], []>} : vector<8x128xf32>, vector<128x512xf32>, vector<8x512xf32> -> vector<8x512xf32>
    %73 = arith.addf %70, %72 : vector<8x512xf32>
    %74 = vector.extract_strided_slice %73 {offsets = [0, 0], sizes = [8, 128], strides = [1, 1]} : vector<8x512xf32> to vector<8x128xf32>
    %75 = arith.negf %74 : vector<8x128xf32>
    %76 = math.exp %75 : vector<8x128xf32>
    %cst_57 = arith.constant 1.000000e+00 : f32
    %77 = vector.broadcast %cst_57 : f32 to vector<8x128xf32>
    %78 = arith.addf %77, %76 : vector<8x128xf32>
    %79 = arith.divf %77, %78 : vector<8x128xf32>
    %80 = vector.extract_strided_slice %73 {offsets = [0, 128], sizes = [8, 128], strides = [1, 1]} : vector<8x512xf32> to vector<8x128xf32>
    %81 = arith.negf %80 : vector<8x128xf32>
    %82 = math.exp %81 : vector<8x128xf32>
    %cst_58 = arith.constant 1.000000e+00 : f32
    %83 = vector.broadcast %cst_58 : f32 to vector<8x128xf32>
    %84 = arith.addf %83, %82 : vector<8x128xf32>
    %85 = arith.divf %83, %84 : vector<8x128xf32>
    %86 = vector.extract_strided_slice %73 {offsets = [0, 256], sizes = [8, 128], strides = [1, 1]} : vector<8x512xf32> to vector<8x128xf32>
    %87 = math.tanh %86 : vector<8x128xf32>
    %88 = vector.extract_strided_slice %73 {offsets = [0, 384], sizes = [8, 128], strides = [1, 1]} : vector<8x512xf32> to vector<8x128xf32>
    %89 = arith.negf %88 : vector<8x128xf32>
    %90 = math.exp %89 : vector<8x128xf32>
    %cst_59 = arith.constant 1.000000e+00 : f32
    %91 = vector.broadcast %cst_59 : f32 to vector<8x128xf32>
    %92 = arith.addf %91, %90 : vector<8x128xf32>
    %93 = arith.divf %91, %92 : vector<8x128xf32>
    %94 = arith.mulf %85, %68 : vector<8x128xf32>
    %95 = arith.mulf %79, %87 : vector<8x128xf32>
    %96 = arith.addf %94, %95 : vector<8x128xf32>
    %97 = math.tanh %96 : vector<8x128xf32>
    %98 = arith.mulf %93, %97 : vector<8x128xf32>
    %c0_60 = arith.constant 0 : index
    %c0_61 = arith.constant 0 : index
    %99 = vector.load %arg15[%c0_60, %c0_61] : memref<8x128xf32, #tpu.memory_space<vmem>>, vector<8x128xf32>
    tpu.vector_store %arg15[%c0_60, %c0_61], %98 {strides = array<i32>} : memref<8x128xf32, #tpu.memory_space<vmem>>, vector<8x128xf32>,
    %c0_62 = arith.constant 0 : index
    %c0_63 = arith.constant 0 : index
    %100 = vector.load %arg16[%c0_62, %c0_63] : memref<8x128xf32, #tpu.memory_space<vmem>>, vector<8x128xf32>
    tpu.vector_store %arg16[%c0_62, %c0_63], %96 {strides = array<i32>} : memref<8x128xf32, #tpu.memory_space<vmem>>, vector<8x128xf32>,
    %101 = arith.index_cast %66 : i32 to index
    %c0_64 = arith.constant 0 : index
    %102 = vector.load %arg12[%101, %c0_64] : memref<64x128xf32, #tpu.memory_space<vmem>>, vector<8x128xf32>
    tpu.vector_store %arg12[%101, %c0_64], %98 {strides = array<i32>} : memref<64x128xf32, #tpu.memory_space<vmem>>, vector<8x128xf32>,
    %c2_i32 = arith.constant 2 : i32
    %c8_i32_65 = arith.constant 8 : i32
    %103 = arith.muli %c2_i32, %c8_i32_65 : i32
    %104 = tpu.assume_multiple %103, 8 : i32
    %c0_66 = arith.constant 0 : index
    %c0_67 = arith.constant 0 : index
    %105 = vector.load %arg15[%c0_66, %c0_67] : memref<8x128xf32, #tpu.memory_space<vmem>>, vector<8x128xf32>
    %c0_68 = arith.constant 0 : index
    %c0_69 = arith.constant 0 : index
    %106 = vector.load %arg16[%c0_68, %c0_69] : memref<8x128xf32, #tpu.memory_space<vmem>>, vector<8x128xf32>
    %107 = arith.index_cast %104 : i32 to index
    %c0_70 = arith.constant 0 : index
    %108 = vector.load %arg11[%107, %c0_70] : memref<64x512xf32, #tpu.memory_space<vmem>>, vector<8x512xf32>
    %c0_71 = arith.constant 0 : index
    %c0_72 = arith.constant 0 : index
    %109 = vector.load %arg2[%c0_71, %c0_72] : memref<128x512xf32, #tpu.memory_space<vmem>>, vector<128x512xf32>
    %cst_73 = arith.constant dense<0.000000e+00> : vector<8x512xf32>
    %110 = tpu.matmul %105, %109, %cst_73 {dimension_numbers = #tpu.dot_dimension_numbers<[1], [0], [0], [1], [0, 0, 1, 1], [], []>} : vector<8x128xf32>, vector<128x512xf32>, vector<8x512xf32> -> vector<8x512xf32>
    %111 = arith.addf %108, %110 : vector<8x512xf32>
    %112 = vector.extract_strided_slice %111 {offsets = [0, 0], sizes = [8, 128], strides = [1, 1]} : vector<8x512xf32> to vector<8x128xf32>
    %113 = arith.negf %112 : vector<8x128xf32>
    %114 = math.exp %113 : vector<8x128xf32>
    %cst_74 = arith.constant 1.000000e+00 : f32
    %115 = vector.broadcast %cst_74 : f32 to vector<8x128xf32>
    %116 = arith.addf %115, %114 : vector<8x128xf32>
    %117 = arith.divf %115, %116 : vector<8x128xf32>
    %118 = vector.extract_strided_slice %111 {offsets = [0, 128], sizes = [8, 128], strides = [1, 1]} : vector<8x512xf32> to vector<8x128xf32>
    %119 = arith.negf %118 : vector<8x128xf32>
    %120 = math.exp %119 : vector<8x128xf32>
    %cst_75 = arith.constant 1.000000e+00 : f32
    %121 = vector.broadcast %cst_75 : f32 to vector<8x128xf32>
    %122 = arith.addf %121, %120 : vector<8x128xf32>
    %123 = arith.divf %121, %122 : vector<8x128xf32>
    %124 = vector.extract_strided_slice %111 {offsets = [0, 256], sizes = [8, 128], strides = [1, 1]} : vector<8x512xf32> to vector<8x128xf32>
    %125 = math.tanh %124 : vector<8x128xf32>
    %126 = vector.extract_strided_slice %111 {offsets = [0, 384], sizes = [8, 128], strides = [1, 1]} : vector<8x512xf32> to vector<8x128xf32>
    %127 = arith.negf %126 : vector<8x128xf32>
    %128 = math.exp %127 : vector<8x128xf32>
    %cst_76 = arith.constant 1.000000e+00 : f32
    %129 = vector.broadcast %cst_76 : f32 to vector<8x128xf32>
    %130 = arith.addf %129, %128 : vector<8x128xf32>
    %131 = arith.divf %129, %130 : vector<8x128xf32>
    %132 = arith.mulf %123, %106 : vector<8x128xf32>
    %133 = arith.mulf %117, %125 : vector<8x128xf32>
    %134 = arith.addf %132, %133 : vector<8x128xf32>
    %135 = math.tanh %134 : vector<8x128xf32>
    %136 = arith.mulf %131, %135 : vector<8x128xf32>
    %c0_77 = arith.constant 0 : index
    %c0_78 = arith.constant 0 : index
    %137 = vector.load %arg15[%c0_77, %c0_78] : memref<8x128xf32, #tpu.memory_space<vmem>>, vector<8x128xf32>
    tpu.vector_store %arg15[%c0_77, %c0_78], %136 {strides = array<i32>} : memref<8x128xf32, #tpu.memory_space<vmem>>, vector<8x128xf32>,
    %c0_79 = arith.constant 0 : index
    %c0_80 = arith.constant 0 : index
    %138 = vector.load %arg16[%c0_79, %c0_80] : memref<8x128xf32, #tpu.memory_space<vmem>>, vector<8x128xf32>
    tpu.vector_store %arg16[%c0_79, %c0_80], %134 {strides = array<i32>} : memref<8x128xf32, #tpu.memory_space<vmem>>, vector<8x128xf32>,
    %139 = arith.index_cast %104 : i32 to index
    %c0_81 = arith.constant 0 : index
    %140 = vector.load %arg12[%139, %c0_81] : memref<64x128xf32, #tpu.memory_space<vmem>>, vector<8x128xf32>
    tpu.vector_store %arg12[%139, %c0_81], %136 {strides = array<i32>} : memref<64x128xf32, #tpu.memory_space<vmem>>, vector<8x128xf32>,
    %c3_i32 = arith.constant 3 : i32
    %c8_i32_82 = arith.constant 8 : i32
    %141 = arith.muli %c3_i32, %c8_i32_82 : i32
    %142 = tpu.assume_multiple %141, 8 : i32
    %c0_83 = arith.constant 0 : index
    %c0_84 = arith.constant 0 : index
    %143 = vector.load %arg15[%c0_83, %c0_84] : memref<8x128xf32, #tpu.memory_space<vmem>>, vector<8x128xf32>
    %c0_85 = arith.constant 0 : index
    %c0_86 = arith.constant 0 : index
    %144 = vector.load %arg16[%c0_85, %c0_86] : memref<8x128xf32, #tpu.memory_space<vmem>>, vector<8x128xf32>
    %145 = arith.index_cast %142 : i32 to index
    %c0_87 = arith.constant 0 : index
    %146 = vector.load %arg11[%145, %c0_87] : memref<64x512xf32, #tpu.memory_space<vmem>>, vector<8x512xf32>
    %c0_88 = arith.constant 0 : index
    %c0_89 = arith.constant 0 : index
    %147 = vector.load %arg2[%c0_88, %c0_89] : memref<128x512xf32, #tpu.memory_space<vmem>>, vector<128x512xf32>
    %cst_90 = arith.constant dense<0.000000e+00> : vector<8x512xf32>
    %148 = tpu.matmul %143, %147, %cst_90 {dimension_numbers = #tpu.dot_dimension_numbers<[1], [0], [0], [1], [0, 0, 1, 1], [], []>} : vector<8x128xf32>, vector<128x512xf32>, vector<8x512xf32> -> vector<8x512xf32>
    %149 = arith.addf %146, %148 : vector<8x512xf32>
    %150 = vector.extract_strided_slice %149 {offsets = [0, 0], sizes = [8, 128], strides = [1, 1]} : vector<8x512xf32> to vector<8x128xf32>
    %151 = arith.negf %150 : vector<8x128xf32>
    %152 = math.exp %151 : vector<8x128xf32>
    %cst_91 = arith.constant 1.000000e+00 : f32
    %153 = vector.broadcast %cst_91 : f32 to vector<8x128xf32>
    %154 = arith.addf %153, %152 : vector<8x128xf32>
    %155 = arith.divf %153, %154 : vector<8x128xf32>
    %156 = vector.extract_strided_slice %149 {offsets = [0, 128], sizes = [8, 128], strides = [1, 1]} : vector<8x512xf32> to vector<8x128xf32>
    %157 = arith.negf %156 : vector<8x128xf32>
    %158 = math.exp %157 : vector<8x128xf32>
    %cst_92 = arith.constant 1.000000e+00 : f32
    %159 = vector.broadcast %cst_92 : f32 to vector<8x128xf32>
    %160 = arith.addf %159, %158 : vector<8x128xf32>
    %161 = arith.divf %159, %160 : vector<8x128xf32>
    %162 = vector.extract_strided_slice %149 {offsets = [0, 256], sizes = [8, 128], strides = [1, 1]} : vector<8x512xf32> to vector<8x128xf32>
    %163 = math.tanh %162 : vector<8x128xf32>
    %164 = vector.extract_strided_slice %149 {offsets = [0, 384], sizes = [8, 128], strides = [1, 1]} : vector<8x512xf32> to vector<8x128xf32>
    %165 = arith.negf %164 : vector<8x128xf32>
    %166 = math.exp %165 : vector<8x128xf32>
    %cst_93 = arith.constant 1.000000e+00 : f32
    %167 = vector.broadcast %cst_93 : f32 to vector<8x128xf32>
    %168 = arith.addf %167, %166 : vector<8x128xf32>
    %169 = arith.divf %167, %168 : vector<8x128xf32>
    %170 = arith.mulf %161, %144 : vector<8x128xf32>
    %171 = arith.mulf %155, %163 : vector<8x128xf32>
    %172 = arith.addf %170, %171 : vector<8x128xf32>
    %173 = math.tanh %172 : vector<8x128xf32>
    %174 = arith.mulf %169, %173 : vector<8x128xf32>
    %c0_94 = arith.constant 0 : index
    %c0_95 = arith.constant 0 : index
    %175 = vector.load %arg15[%c0_94, %c0_95] : memref<8x128xf32, #tpu.memory_space<vmem>>, vector<8x128xf32>
    tpu.vector_store %arg15[%c0_94, %c0_95], %174 {strides = array<i32>} : memref<8x128xf32, #tpu.memory_space<vmem>>, vector<8x128xf32>,
    %c0_96 = arith.constant 0 : index
    %c0_97 = arith.constant 0 : index
    %176 = vector.load %arg16[%c0_96, %c0_97] : memref<8x128xf32, #tpu.memory_space<vmem>>, vector<8x128xf32>
    tpu.vector_store %arg16[%c0_96, %c0_97], %172 {strides = array<i32>} : memref<8x128xf32, #tpu.memory_space<vmem>>, vector<8x128xf32>,
    %177 = arith.index_cast %142 : i32 to index
    %c0_98 = arith.constant 0 : index
    %178 = vector.load %arg12[%177, %c0_98] : memref<64x128xf32, #tpu.memory_space<vmem>>, vector<8x128xf32>
    tpu.vector_store %arg12[%177, %c0_98], %174 {strides = array<i32>} : memref<64x128xf32, #tpu.memory_space<vmem>>, vector<8x128xf32>,
    %c4_i32 = arith.constant 4 : i32
    %c8_i32_99 = arith.constant 8 : i32
    %179 = arith.muli %c4_i32, %c8_i32_99 : i32
    %180 = tpu.assume_multiple %179, 8 : i32
    %c0_100 = arith.constant 0 : index
    %c0_101 = arith.constant 0 : index
    %181 = vector.load %arg15[%c0_100, %c0_101] : memref<8x128xf32, #tpu.memory_space<vmem>>, vector<8x128xf32>
    %c0_102 = arith.constant 0 : index
    %c0_103 = arith.constant 0 : index
    %182 = vector.load %arg16[%c0_102, %c0_103] : memref<8x128xf32, #tpu.memory_space<vmem>>, vector<8x128xf32>
    %183 = arith.index_cast %180 : i32 to index
    %c0_104 = arith.constant 0 : index
    %184 = vector.load %arg11[%183, %c0_104] : memref<64x512xf32, #tpu.memory_space<vmem>>, vector<8x512xf32>
    %c0_105 = arith.constant 0 : index
    %c0_106 = arith.constant 0 : index
    %185 = vector.load %arg2[%c0_105, %c0_106] : memref<128x512xf32, #tpu.memory_space<vmem>>, vector<128x512xf32>
    %cst_107 = arith.constant dense<0.000000e+00> : vector<8x512xf32>
    %186 = tpu.matmul %181, %185, %cst_107 {dimension_numbers = #tpu.dot_dimension_numbers<[1], [0], [0], [1], [0, 0, 1, 1], [], []>} : vector<8x128xf32>, vector<128x512xf32>, vector<8x512xf32> -> vector<8x512xf32>
    %187 = arith.addf %184, %186 : vector<8x512xf32>
    %188 = vector.extract_strided_slice %187 {offsets = [0, 0], sizes = [8, 128], strides = [1, 1]} : vector<8x512xf32> to vector<8x128xf32>
    %189 = arith.negf %188 : vector<8x128xf32>
    %190 = math.exp %189 : vector<8x128xf32>
    %cst_108 = arith.constant 1.000000e+00 : f32
    %191 = vector.broadcast %cst_108 : f32 to vector<8x128xf32>
    %192 = arith.addf %191, %190 : vector<8x128xf32>
    %193 = arith.divf %191, %192 : vector<8x128xf32>
    %194 = vector.extract_strided_slice %187 {offsets = [0, 128], sizes = [8, 128], strides = [1, 1]} : vector<8x512xf32> to vector<8x128xf32>
    %195 = arith.negf %194 : vector<8x128xf32>
    %196 = math.exp %195 : vector<8x128xf32>
    %cst_109 = arith.constant 1.000000e+00 : f32
    %197 = vector.broadcast %cst_109 : f32 to vector<8x128xf32>
    %198 = arith.addf %197, %196 : vector<8x128xf32>
    %199 = arith.divf %197, %198 : vector<8x128xf32>
    %200 = vector.extract_strided_slice %187 {offsets = [0, 256], sizes = [8, 128], strides = [1, 1]} : vector<8x512xf32> to vector<8x128xf32>
    %201 = math.tanh %200 : vector<8x128xf32>
    %202 = vector.extract_strided_slice %187 {offsets = [0, 384], sizes = [8, 128], strides = [1, 1]} : vector<8x512xf32> to vector<8x128xf32>
    %203 = arith.negf %202 : vector<8x128xf32>
    %204 = math.exp %203 : vector<8x128xf32>
    %cst_110 = arith.constant 1.000000e+00 : f32
    %205 = vector.broadcast %cst_110 : f32 to vector<8x128xf32>
    %206 = arith.addf %205, %204 : vector<8x128xf32>
    %207 = arith.divf %205, %206 : vector<8x128xf32>
    %208 = arith.mulf %199, %182 : vector<8x128xf32>
    %209 = arith.mulf %193, %201 : vector<8x128xf32>
    %210 = arith.addf %208, %209 : vector<8x128xf32>
    %211 = math.tanh %210 : vector<8x128xf32>
    %212 = arith.mulf %207, %211 : vector<8x128xf32>
    %c0_111 = arith.constant 0 : index
    %c0_112 = arith.constant 0 : index
    %213 = vector.load %arg15[%c0_111, %c0_112] : memref<8x128xf32, #tpu.memory_space<vmem>>, vector<8x128xf32>
    tpu.vector_store %arg15[%c0_111, %c0_112], %212 {strides = array<i32>} : memref<8x128xf32, #tpu.memory_space<vmem>>, vector<8x128xf32>,
    %c0_113 = arith.constant 0 : index
    %c0_114 = arith.constant 0 : index
    %214 = vector.load %arg16[%c0_113, %c0_114] : memref<8x128xf32, #tpu.memory_space<vmem>>, vector<8x128xf32>
    tpu.vector_store %arg16[%c0_113, %c0_114], %210 {strides = array<i32>} : memref<8x128xf32, #tpu.memory_space<vmem>>, vector<8x128xf32>,
    %215 = arith.index_cast %180 : i32 to index
    %c0_115 = arith.constant 0 : index
    %216 = vector.load %arg12[%215, %c0_115] : memref<64x128xf32, #tpu.memory_space<vmem>>, vector<8x128xf32>
    tpu.vector_store %arg12[%215, %c0_115], %212 {strides = array<i32>} : memref<64x128xf32, #tpu.memory_space<vmem>>, vector<8x128xf32>,
    %c5_i32 = arith.constant 5 : i32
    %c8_i32_116 = arith.constant 8 : i32
    %217 = arith.muli %c5_i32, %c8_i32_116 : i32
    %218 = tpu.assume_multiple %217, 8 : i32
    %c0_117 = arith.constant 0 : index
    %c0_118 = arith.constant 0 : index
    %219 = vector.load %arg15[%c0_117, %c0_118] : memref<8x128xf32, #tpu.memory_space<vmem>>, vector<8x128xf32>
    %c0_119 = arith.constant 0 : index
    %c0_120 = arith.constant 0 : index
    %220 = vector.load %arg16[%c0_119, %c0_120] : memref<8x128xf32, #tpu.memory_space<vmem>>, vector<8x128xf32>
    %221 = arith.index_cast %218 : i32 to index
    %c0_121 = arith.constant 0 : index
    %222 = vector.load %arg11[%221, %c0_121] : memref<64x512xf32, #tpu.memory_space<vmem>>, vector<8x512xf32>
    %c0_122 = arith.constant 0 : index
    %c0_123 = arith.constant 0 : index
    %223 = vector.load %arg2[%c0_122, %c0_123] : memref<128x512xf32, #tpu.memory_space<vmem>>, vector<128x512xf32>
    %cst_124 = arith.constant dense<0.000000e+00> : vector<8x512xf32>
    %224 = tpu.matmul %219, %223, %cst_124 {dimension_numbers = #tpu.dot_dimension_numbers<[1], [0], [0], [1], [0, 0, 1, 1], [], []>} : vector<8x128xf32>, vector<128x512xf32>, vector<8x512xf32> -> vector<8x512xf32>
    %225 = arith.addf %222, %224 : vector<8x512xf32>
    %226 = vector.extract_strided_slice %225 {offsets = [0, 0], sizes = [8, 128], strides = [1, 1]} : vector<8x512xf32> to vector<8x128xf32>
    %227 = arith.negf %226 : vector<8x128xf32>
    %228 = math.exp %227 : vector<8x128xf32>
    %cst_125 = arith.constant 1.000000e+00 : f32
    %229 = vector.broadcast %cst_125 : f32 to vector<8x128xf32>
    %230 = arith.addf %229, %228 : vector<8x128xf32>
    %231 = arith.divf %229, %230 : vector<8x128xf32>
    %232 = vector.extract_strided_slice %225 {offsets = [0, 128], sizes = [8, 128], strides = [1, 1]} : vector<8x512xf32> to vector<8x128xf32>
    %233 = arith.negf %232 : vector<8x128xf32>
    %234 = math.exp %233 : vector<8x128xf32>
    %cst_126 = arith.constant 1.000000e+00 : f32
    %235 = vector.broadcast %cst_126 : f32 to vector<8x128xf32>
    %236 = arith.addf %235, %234 : vector<8x128xf32>
    %237 = arith.divf %235, %236 : vector<8x128xf32>
    %238 = vector.extract_strided_slice %225 {offsets = [0, 256], sizes = [8, 128], strides = [1, 1]} : vector<8x512xf32> to vector<8x128xf32>
    %239 = math.tanh %238 : vector<8x128xf32>
    %240 = vector.extract_strided_slice %225 {offsets = [0, 384], sizes = [8, 128], strides = [1, 1]} : vector<8x512xf32> to vector<8x128xf32>
    %241 = arith.negf %240 : vector<8x128xf32>
    %242 = math.exp %241 : vector<8x128xf32>
    %cst_127 = arith.constant 1.000000e+00 : f32
    %243 = vector.broadcast %cst_127 : f32 to vector<8x128xf32>
    %244 = arith.addf %243, %242 : vector<8x128xf32>
    %245 = arith.divf %243, %244 : vector<8x128xf32>
    %246 = arith.mulf %237, %220 : vector<8x128xf32>
    %247 = arith.mulf %231, %239 : vector<8x128xf32>
    %248 = arith.addf %246, %247 : vector<8x128xf32>
    %249 = math.tanh %248 : vector<8x128xf32>
    %250 = arith.mulf %245, %249 : vector<8x128xf32>
    %c0_128 = arith.constant 0 : index
    %c0_129 = arith.constant 0 : index
    %251 = vector.load %arg15[%c0_128, %c0_129] : memref<8x128xf32, #tpu.memory_space<vmem>>, vector<8x128xf32>
    tpu.vector_store %arg15[%c0_128, %c0_129], %250 {strides = array<i32>} : memref<8x128xf32, #tpu.memory_space<vmem>>, vector<8x128xf32>,
    %c0_130 = arith.constant 0 : index
    %c0_131 = arith.constant 0 : index
    %252 = vector.load %arg16[%c0_130, %c0_131] : memref<8x128xf32, #tpu.memory_space<vmem>>, vector<8x128xf32>
    tpu.vector_store %arg16[%c0_130, %c0_131], %248 {strides = array<i32>} : memref<8x128xf32, #tpu.memory_space<vmem>>, vector<8x128xf32>,
    %253 = arith.index_cast %218 : i32 to index
    %c0_132 = arith.constant 0 : index
    %254 = vector.load %arg12[%253, %c0_132] : memref<64x128xf32, #tpu.memory_space<vmem>>, vector<8x128xf32>
    tpu.vector_store %arg12[%253, %c0_132], %250 {strides = array<i32>} : memref<64x128xf32, #tpu.memory_space<vmem>>, vector<8x128xf32>,
    %c6_i32 = arith.constant 6 : i32
    %c8_i32_133 = arith.constant 8 : i32
    %255 = arith.muli %c6_i32, %c8_i32_133 : i32
    %256 = tpu.assume_multiple %255, 8 : i32
    %c0_134 = arith.constant 0 : index
    %c0_135 = arith.constant 0 : index
    %257 = vector.load %arg15[%c0_134, %c0_135] : memref<8x128xf32, #tpu.memory_space<vmem>>, vector<8x128xf32>
    %c0_136 = arith.constant 0 : index
    %c0_137 = arith.constant 0 : index
    %258 = vector.load %arg16[%c0_136, %c0_137] : memref<8x128xf32, #tpu.memory_space<vmem>>, vector<8x128xf32>
    %259 = arith.index_cast %256 : i32 to index
    %c0_138 = arith.constant 0 : index
    %260 = vector.load %arg11[%259, %c0_138] : memref<64x512xf32, #tpu.memory_space<vmem>>, vector<8x512xf32>
    %c0_139 = arith.constant 0 : index
    %c0_140 = arith.constant 0 : index
    %261 = vector.load %arg2[%c0_139, %c0_140] : memref<128x512xf32, #tpu.memory_space<vmem>>, vector<128x512xf32>
    %cst_141 = arith.constant dense<0.000000e+00> : vector<8x512xf32>
    %262 = tpu.matmul %257, %261, %cst_141 {dimension_numbers = #tpu.dot_dimension_numbers<[1], [0], [0], [1], [0, 0, 1, 1], [], []>} : vector<8x128xf32>, vector<128x512xf32>, vector<8x512xf32> -> vector<8x512xf32>
    %263 = arith.addf %260, %262 : vector<8x512xf32>
    %264 = vector.extract_strided_slice %263 {offsets = [0, 0], sizes = [8, 128], strides = [1, 1]} : vector<8x512xf32> to vector<8x128xf32>
    %265 = arith.negf %264 : vector<8x128xf32>
    %266 = math.exp %265 : vector<8x128xf32>
    %cst_142 = arith.constant 1.000000e+00 : f32
    %267 = vector.broadcast %cst_142 : f32 to vector<8x128xf32>
    %268 = arith.addf %267, %266 : vector<8x128xf32>
    %269 = arith.divf %267, %268 : vector<8x128xf32>
    %270 = vector.extract_strided_slice %263 {offsets = [0, 128], sizes = [8, 128], strides = [1, 1]} : vector<8x512xf32> to vector<8x128xf32>
    %271 = arith.negf %270 : vector<8x128xf32>
    %272 = math.exp %271 : vector<8x128xf32>
    %cst_143 = arith.constant 1.000000e+00 : f32
    %273 = vector.broadcast %cst_143 : f32 to vector<8x128xf32>
    %274 = arith.addf %273, %272 : vector<8x128xf32>
    %275 = arith.divf %273, %274 : vector<8x128xf32>
    %276 = vector.extract_strided_slice %263 {offsets = [0, 256], sizes = [8, 128], strides = [1, 1]} : vector<8x512xf32> to vector<8x128xf32>
    %277 = math.tanh %276 : vector<8x128xf32>
    %278 = vector.extract_strided_slice %263 {offsets = [0, 384], sizes = [8, 128], strides = [1, 1]} : vector<8x512xf32> to vector<8x128xf32>
    %279 = arith.negf %278 : vector<8x128xf32>
    %280 = math.exp %279 : vector<8x128xf32>
    %cst_144 = arith.constant 1.000000e+00 : f32
    %281 = vector.broadcast %cst_144 : f32 to vector<8x128xf32>
    %282 = arith.addf %281, %280 : vector<8x128xf32>
    %283 = arith.divf %281, %282 : vector<8x128xf32>
    %284 = arith.mulf %275, %258 : vector<8x128xf32>
    %285 = arith.mulf %269, %277 : vector<8x128xf32>
    %286 = arith.addf %284, %285 : vector<8x128xf32>
    %287 = math.tanh %286 : vector<8x128xf32>
    %288 = arith.mulf %283, %287 : vector<8x128xf32>
    %c0_145 = arith.constant 0 : index
    %c0_146 = arith.constant 0 : index
    %289 = vector.load %arg15[%c0_145, %c0_146] : memref<8x128xf32, #tpu.memory_space<vmem>>, vector<8x128xf32>
    tpu.vector_store %arg15[%c0_145, %c0_146], %288 {strides = array<i32>} : memref<8x128xf32, #tpu.memory_space<vmem>>, vector<8x128xf32>,
    %c0_147 = arith.constant 0 : index
    %c0_148 = arith.constant 0 : index
    %290 = vector.load %arg16[%c0_147, %c0_148] : memref<8x128xf32, #tpu.memory_space<vmem>>, vector<8x128xf32>
    tpu.vector_store %arg16[%c0_147, %c0_148], %286 {strides = array<i32>} : memref<8x128xf32, #tpu.memory_space<vmem>>, vector<8x128xf32>,
    %291 = arith.index_cast %256 : i32 to index
    %c0_149 = arith.constant 0 : index
    %292 = vector.load %arg12[%291, %c0_149] : memref<64x128xf32, #tpu.memory_space<vmem>>, vector<8x128xf32>
    tpu.vector_store %arg12[%291, %c0_149], %288 {strides = array<i32>} : memref<64x128xf32, #tpu.memory_space<vmem>>, vector<8x128xf32>,
    %c7_i32 = arith.constant 7 : i32
    %c8_i32_150 = arith.constant 8 : i32
    %293 = arith.muli %c7_i32, %c8_i32_150 : i32
    %294 = tpu.assume_multiple %293, 8 : i32
    %c0_151 = arith.constant 0 : index
    %c0_152 = arith.constant 0 : index
    %295 = vector.load %arg15[%c0_151, %c0_152] : memref<8x128xf32, #tpu.memory_space<vmem>>, vector<8x128xf32>
    %c0_153 = arith.constant 0 : index
    %c0_154 = arith.constant 0 : index
    %296 = vector.load %arg16[%c0_153, %c0_154] : memref<8x128xf32, #tpu.memory_space<vmem>>, vector<8x128xf32>
    %297 = arith.index_cast %294 : i32 to index
    %c0_155 = arith.constant 0 : index
    %298 = vector.load %arg11[%297, %c0_155] : memref<64x512xf32, #tpu.memory_space<vmem>>, vector<8x512xf32>
    %c0_156 = arith.constant 0 : index
    %c0_157 = arith.constant 0 : index
    %299 = vector.load %arg2[%c0_156, %c0_157] : memref<128x512xf32, #tpu.memory_space<vmem>>, vector<128x512xf32>
    %cst_158 = arith.constant dense<0.000000e+00> : vector<8x512xf32>
    %300 = tpu.matmul %295, %299, %cst_158 {dimension_numbers = #tpu.dot_dimension_numbers<[1], [0], [0], [1], [0, 0, 1, 1], [], []>} : vector<8x128xf32>, vector<128x512xf32>, vector<8x512xf32> -> vector<8x512xf32>
    %301 = arith.addf %298, %300 : vector<8x512xf32>
    %302 = vector.extract_strided_slice %301 {offsets = [0, 0], sizes = [8, 128], strides = [1, 1]} : vector<8x512xf32> to vector<8x128xf32>
    %303 = arith.negf %302 : vector<8x128xf32>
    %304 = math.exp %303 : vector<8x128xf32>
    %cst_159 = arith.constant 1.000000e+00 : f32
    %305 = vector.broadcast %cst_159 : f32 to vector<8x128xf32>
    %306 = arith.addf %305, %304 : vector<8x128xf32>
    %307 = arith.divf %305, %306 : vector<8x128xf32>
    %308 = vector.extract_strided_slice %301 {offsets = [0, 128], sizes = [8, 128], strides = [1, 1]} : vector<8x512xf32> to vector<8x128xf32>
    %309 = arith.negf %308 : vector<8x128xf32>
    %310 = math.exp %309 : vector<8x128xf32>
    %cst_160 = arith.constant 1.000000e+00 : f32
    %311 = vector.broadcast %cst_160 : f32 to vector<8x128xf32>
    %312 = arith.addf %311, %310 : vector<8x128xf32>
    %313 = arith.divf %311, %312 : vector<8x128xf32>
    %314 = vector.extract_strided_slice %301 {offsets = [0, 256], sizes = [8, 128], strides = [1, 1]} : vector<8x512xf32> to vector<8x128xf32>
    %315 = math.tanh %314 : vector<8x128xf32>
    %316 = vector.extract_strided_slice %301 {offsets = [0, 384], sizes = [8, 128], strides = [1, 1]} : vector<8x512xf32> to vector<8x128xf32>
    %317 = arith.negf %316 : vector<8x128xf32>
    %318 = math.exp %317 : vector<8x128xf32>
    %cst_161 = arith.constant 1.000000e+00 : f32
    %319 = vector.broadcast %cst_161 : f32 to vector<8x128xf32>
    %320 = arith.addf %319, %318 : vector<8x128xf32>
    %321 = arith.divf %319, %320 : vector<8x128xf32>
    %322 = arith.mulf %313, %296 : vector<8x128xf32>
    %323 = arith.mulf %307, %315 : vector<8x128xf32>
    %324 = arith.addf %322, %323 : vector<8x128xf32>
    %325 = math.tanh %324 : vector<8x128xf32>
    %326 = arith.mulf %321, %325 : vector<8x128xf32>
    %c0_162 = arith.constant 0 : index
    %c0_163 = arith.constant 0 : index
    %327 = vector.load %arg15[%c0_162, %c0_163] : memref<8x128xf32, #tpu.memory_space<vmem>>, vector<8x128xf32>
    tpu.vector_store %arg15[%c0_162, %c0_163], %326 {strides = array<i32>} : memref<8x128xf32, #tpu.memory_space<vmem>>, vector<8x128xf32>,
    %c0_164 = arith.constant 0 : index
    %c0_165 = arith.constant 0 : index
    %328 = vector.load %arg16[%c0_164, %c0_165] : memref<8x128xf32, #tpu.memory_space<vmem>>, vector<8x128xf32>
    tpu.vector_store %arg16[%c0_164, %c0_165], %324 {strides = array<i32>} : memref<8x128xf32, #tpu.memory_space<vmem>>, vector<8x128xf32>,
    %329 = arith.index_cast %294 : i32 to index
    %c0_166 = arith.constant 0 : index
    %330 = vector.load %arg12[%329, %c0_166] : memref<64x128xf32, #tpu.memory_space<vmem>>, vector<8x128xf32>
    tpu.vector_store %arg12[%329, %c0_166], %326 {strides = array<i32>} : memref<64x128xf32, #tpu.memory_space<vmem>>, vector<8x128xf32>,
    %c8_i32_167 = arith.constant 8 : i32
    %c0_168 = arith.constant 0 : index
    %c0_169 = arith.constant 0 : index
    %331 = vector.load %arg15[%c0_168, %c0_169] : memref<8x128xf32, #tpu.memory_space<vmem>>, vector<8x128xf32>
    %c0_170 = arith.constant 0 : index
    %c0_171 = arith.constant 0 : index
    %332 = vector.load %arg4[%c0_170, %c0_171] : memref<128x128xf32, #tpu.memory_space<vmem>>, vector<128x128xf32>
    %cst_172 = arith.constant dense<0.000000e+00> : vector<8x128xf32>
    %333 = tpu.matmul %331, %332, %cst_172 {dimension_numbers = #tpu.dot_dimension_numbers<[1], [0], [0], [1], [0, 0, 1, 1], [], []>} : vector<8x128xf32>, vector<128x128xf32>, vector<8x128xf32> -> vector<8x128xf32>
    %c0_173 = arith.constant 0 : index
    %c0_174 = arith.constant 0 : index
    %334 = vector.load %arg5[%c0_173, %c0_174] : memref<1x128xf32, #tpu.memory_space<vmem>>, vector<1x128xf32>
    %335 = vector.broadcast %334 : vector<1x128xf32> to vector<8x128xf32>
    %336 = arith.addf %333, %335 : vector<8x128xf32>
    %c0_175 = arith.constant 0 : index
    %c0_176 = arith.constant 0 : index
    %337 = vector.load %arg17[%c0_175, %c0_176] : memref<8x128xf32, #tpu.memory_space<vmem>>, vector<8x128xf32>
    tpu.vector_store %arg17[%c0_175, %c0_176], %336 {strides = array<i32>} : memref<8x128xf32, #tpu.memory_space<vmem>>, vector<8x128xf32>,
    %c0_177 = arith.constant 0 : index
    %c0_178 = arith.constant 0 : index
    %338 = vector.load %arg16[%c0_177, %c0_178] : memref<8x128xf32, #tpu.memory_space<vmem>>, vector<8x128xf32>
    %c0_179 = arith.constant 0 : index
    %c0_180 = arith.constant 0 : index
    %339 = vector.load %arg4[%c0_179, %c0_180] : memref<128x128xf32, #tpu.memory_space<vmem>>, vector<128x128xf32>
    %cst_181 = arith.constant dense<0.000000e+00> : vector<8x128xf32>
    %340 = tpu.matmul %338, %339, %cst_181 {dimension_numbers = #tpu.dot_dimension_numbers<[1], [0], [0], [1], [0, 0, 1, 1], [], []>} : vector<8x128xf32>, vector<128x128xf32>, vector<8x128xf32> -> vector<8x128xf32>
    %c0_182 = arith.constant 0 : index
    %c0_183 = arith.constant 0 : index
    %341 = vector.load %arg5[%c0_182, %c0_183] : memref<1x128xf32, #tpu.memory_space<vmem>>, vector<1x128xf32>
    %342 = vector.broadcast %341 : vector<1x128xf32> to vector<8x128xf32>
    %343 = arith.addf %340, %342 : vector<8x128xf32>
    %c0_184 = arith.constant 0 : index
    %c0_185 = arith.constant 0 : index
    %344 = vector.load %arg18[%c0_184, %c0_185] : memref<8x128xf32, #tpu.memory_space<vmem>>, vector<8x128xf32>
    tpu.vector_store %arg18[%c0_184, %c0_185], %343 {strides = array<i32>} : memref<8x128xf32, #tpu.memory_space<vmem>>, vector<8x128xf32>,
    %c0_186 = arith.constant 0 : index
    %c0_187 = arith.constant 0 : index
    %345 = vector.load %arg12[%c0_186, %c0_187] : memref<64x128xf32, #tpu.memory_space<vmem>>, vector<64x128xf32>
    %c0_188 = arith.constant 0 : index
    %c0_189 = arith.constant 0 : index
    %346 = vector.load %arg6[%c0_188, %c0_189] : memref<128x512xf32, #tpu.memory_space<vmem>>, vector<128x512xf32>
    %cst_190 = arith.constant dense<0.000000e+00> : vector<64x512xf32>
    %347 = tpu.matmul %345, %346, %cst_190 {dimension_numbers = #tpu.dot_dimension_numbers<[1], [0], [0], [1], [0, 0, 1, 1], [], []>} : vector<64x128xf32>, vector<128x512xf32>, vector<64x512xf32> -> vector<64x512xf32>
    %c0_191 = arith.constant 0 : index
    %c0_192 = arith.constant 0 : index
    %348 = vector.load %arg8[%c0_191, %c0_192] : memref<1x512xf32, #tpu.memory_space<vmem>>, vector<1x512xf32>
    %349 = vector.broadcast %348 : vector<1x512xf32> to vector<64x512xf32>
    %350 = arith.addf %347, %349 : vector<64x512xf32>
    %c0_193 = arith.constant 0 : index
    %c0_194 = arith.constant 0 : index
    %351 = vector.load %arg13[%c0_193, %c0_194] : memref<64x512xf32, #tpu.memory_space<vmem>>, vector<64x512xf32>
    tpu.vector_store %arg13[%c0_193, %c0_194], %350 {strides = array<i32>} : memref<64x512xf32, #tpu.memory_space<vmem>>, vector<64x512xf32>,
    %c0_i32_195 = arith.constant 0 : i32
    %c8_i32_196 = arith.constant 8 : i32
    %352 = arith.muli %c0_i32_195, %c8_i32_196 : i32
    %353 = tpu.assume_multiple %352, 8 : i32
    %c0_197 = arith.constant 0 : index
    %c0_198 = arith.constant 0 : index
    %354 = vector.load %arg17[%c0_197, %c0_198] : memref<8x128xf32, #tpu.memory_space<vmem>>, vector<8x128xf32>
    %c0_199 = arith.constant 0 : index
    %c0_200 = arith.constant 0 : index
    %355 = vector.load %arg18[%c0_199, %c0_200] : memref<8x128xf32, #tpu.memory_space<vmem>>, vector<8x128xf32>
    %356 = arith.index_cast %353 : i32 to index
    %c0_201 = arith.constant 0 : index
    %357 = vector.load %arg13[%356, %c0_201] : memref<64x512xf32, #tpu.memory_space<vmem>>, vector<8x512xf32>
    %c0_202 = arith.constant 0 : index
    %c0_203 = arith.constant 0 : index
    %358 = vector.load %arg7[%c0_202, %c0_203] : memref<128x512xf32, #tpu.memory_space<vmem>>, vector<128x512xf32>
    %cst_204 = arith.constant dense<0.000000e+00> : vector<8x512xf32>
    %359 = tpu.matmul %354, %358, %cst_204 {dimension_numbers = #tpu.dot_dimension_numbers<[1], [0], [0], [1], [0, 0, 1, 1], [], []>} : vector<8x128xf32>, vector<128x512xf32>, vector<8x512xf32> -> vector<8x512xf32>
    %360 = arith.addf %357, %359 : vector<8x512xf32>
    %361 = vector.extract_strided_slice %360 {offsets = [0, 0], sizes = [8, 128], strides = [1, 1]} : vector<8x512xf32> to vector<8x128xf32>
    %362 = arith.negf %361 : vector<8x128xf32>
    %363 = math.exp %362 : vector<8x128xf32>
    %cst_205 = arith.constant 1.000000e+00 : f32
    %364 = vector.broadcast %cst_205 : f32 to vector<8x128xf32>
    %365 = arith.addf %364, %363 : vector<8x128xf32>
    %366 = arith.divf %364, %365 : vector<8x128xf32>
    %367 = vector.extract_strided_slice %360 {offsets = [0, 128], sizes = [8, 128], strides = [1, 1]} : vector<8x512xf32> to vector<8x128xf32>
    %368 = arith.negf %367 : vector<8x128xf32>
    %369 = math.exp %368 : vector<8x128xf32>
    %cst_206 = arith.constant 1.000000e+00 : f32
    %370 = vector.broadcast %cst_206 : f32 to vector<8x128xf32>
    %371 = arith.addf %370, %369 : vector<8x128xf32>
    %372 = arith.divf %370, %371 : vector<8x128xf32>
    %373 = vector.extract_strided_slice %360 {offsets = [0, 256], sizes = [8, 128], strides = [1, 1]} : vector<8x512xf32> to vector<8x128xf32>
    %374 = math.tanh %373 : vector<8x128xf32>
    %375 = vector.extract_strided_slice %360 {offsets = [0, 384], sizes = [8, 128], strides = [1, 1]} : vector<8x512xf32> to vector<8x128xf32>
    %376 = arith.negf %375 : vector<8x128xf32>
    %377 = math.exp %376 : vector<8x128xf32>
    %cst_207 = arith.constant 1.000000e+00 : f32
    %378 = vector.broadcast %cst_207 : f32 to vector<8x128xf32>
    %379 = arith.addf %378, %377 : vector<8x128xf32>
    %380 = arith.divf %378, %379 : vector<8x128xf32>
    %381 = arith.mulf %372, %355 : vector<8x128xf32>
    %382 = arith.mulf %366, %374 : vector<8x128xf32>
    %383 = arith.addf %381, %382 : vector<8x128xf32>
    %384 = math.tanh %383 : vector<8x128xf32>
    %385 = arith.mulf %380, %384 : vector<8x128xf32>
    %c0_208 = arith.constant 0 : index
    %c0_209 = arith.constant 0 : index
    %386 = vector.load %arg17[%c0_208, %c0_209] : memref<8x128xf32, #tpu.memory_space<vmem>>, vector<8x128xf32>
    tpu.vector_store %arg17[%c0_208, %c0_209], %385 {strides = array<i32>} : memref<8x128xf32, #tpu.memory_space<vmem>>, vector<8x128xf32>,
    %c0_210 = arith.constant 0 : index
    %c0_211 = arith.constant 0 : index
    %387 = vector.load %arg18[%c0_210, %c0_211] : memref<8x128xf32, #tpu.memory_space<vmem>>, vector<8x128xf32>
    tpu.vector_store %arg18[%c0_210, %c0_211], %383 {strides = array<i32>} : memref<8x128xf32, #tpu.memory_space<vmem>>, vector<8x128xf32>,
    %388 = arith.index_cast %353 : i32 to index
    %c0_212 = arith.constant 0 : index
    %389 = vector.load %arg14[%388, %c0_212] : memref<64x128xf32, #tpu.memory_space<vmem>>, vector<8x128xf32>
    tpu.vector_store %arg14[%388, %c0_212], %385 {strides = array<i32>} : memref<64x128xf32, #tpu.memory_space<vmem>>, vector<8x128xf32>,
    %c1_i32_213 = arith.constant 1 : i32
    %c8_i32_214 = arith.constant 8 : i32
    %390 = arith.muli %c1_i32_213, %c8_i32_214 : i32
    %391 = tpu.assume_multiple %390, 8 : i32
    %c0_215 = arith.constant 0 : index
    %c0_216 = arith.constant 0 : index
    %392 = vector.load %arg17[%c0_215, %c0_216] : memref<8x128xf32, #tpu.memory_space<vmem>>, vector<8x128xf32>
    %c0_217 = arith.constant 0 : index
    %c0_218 = arith.constant 0 : index
    %393 = vector.load %arg18[%c0_217, %c0_218] : memref<8x128xf32, #tpu.memory_space<vmem>>, vector<8x128xf32>
    %394 = arith.index_cast %391 : i32 to index
    %c0_219 = arith.constant 0 : index
    %395 = vector.load %arg13[%394, %c0_219] : memref<64x512xf32, #tpu.memory_space<vmem>>, vector<8x512xf32>
    %c0_220 = arith.constant 0 : index
    %c0_221 = arith.constant 0 : index
    %396 = vector.load %arg7[%c0_220, %c0_221] : memref<128x512xf32, #tpu.memory_space<vmem>>, vector<128x512xf32>
    %cst_222 = arith.constant dense<0.000000e+00> : vector<8x512xf32>
    %397 = tpu.matmul %392, %396, %cst_222 {dimension_numbers = #tpu.dot_dimension_numbers<[1], [0], [0], [1], [0, 0, 1, 1], [], []>} : vector<8x128xf32>, vector<128x512xf32>, vector<8x512xf32> -> vector<8x512xf32>
    %398 = arith.addf %395, %397 : vector<8x512xf32>
    %399 = vector.extract_strided_slice %398 {offsets = [0, 0], sizes = [8, 128], strides = [1, 1]} : vector<8x512xf32> to vector<8x128xf32>
    %400 = arith.negf %399 : vector<8x128xf32>
    %401 = math.exp %400 : vector<8x128xf32>
    %cst_223 = arith.constant 1.000000e+00 : f32
    %402 = vector.broadcast %cst_223 : f32 to vector<8x128xf32>
    %403 = arith.addf %402, %401 : vector<8x128xf32>
    %404 = arith.divf %402, %403 : vector<8x128xf32>
    %405 = vector.extract_strided_slice %398 {offsets = [0, 128], sizes = [8, 128], strides = [1, 1]} : vector<8x512xf32> to vector<8x128xf32>
    %406 = arith.negf %405 : vector<8x128xf32>
    %407 = math.exp %406 : vector<8x128xf32>
    %cst_224 = arith.constant 1.000000e+00 : f32
    %408 = vector.broadcast %cst_224 : f32 to vector<8x128xf32>
    %409 = arith.addf %408, %407 : vector<8x128xf32>
    %410 = arith.divf %408, %409 : vector<8x128xf32>
    %411 = vector.extract_strided_slice %398 {offsets = [0, 256], sizes = [8, 128], strides = [1, 1]} : vector<8x512xf32> to vector<8x128xf32>
    %412 = math.tanh %411 : vector<8x128xf32>
    %413 = vector.extract_strided_slice %398 {offsets = [0, 384], sizes = [8, 128], strides = [1, 1]} : vector<8x512xf32> to vector<8x128xf32>
    %414 = arith.negf %413 : vector<8x128xf32>
    %415 = math.exp %414 : vector<8x128xf32>
    %cst_225 = arith.constant 1.000000e+00 : f32
    %416 = vector.broadcast %cst_225 : f32 to vector<8x128xf32>
    %417 = arith.addf %416, %415 : vector<8x128xf32>
    %418 = arith.divf %416, %417 : vector<8x128xf32>
    %419 = arith.mulf %410, %393 : vector<8x128xf32>
    %420 = arith.mulf %404, %412 : vector<8x128xf32>
    %421 = arith.addf %419, %420 : vector<8x128xf32>
    %422 = math.tanh %421 : vector<8x128xf32>
    %423 = arith.mulf %418, %422 : vector<8x128xf32>
    %c0_226 = arith.constant 0 : index
    %c0_227 = arith.constant 0 : index
    %424 = vector.load %arg17[%c0_226, %c0_227] : memref<8x128xf32, #tpu.memory_space<vmem>>, vector<8x128xf32>
    tpu.vector_store %arg17[%c0_226, %c0_227], %423 {strides = array<i32>} : memref<8x128xf32, #tpu.memory_space<vmem>>, vector<8x128xf32>,
    %c0_228 = arith.constant 0 : index
    %c0_229 = arith.constant 0 : index
    %425 = vector.load %arg18[%c0_228, %c0_229] : memref<8x128xf32, #tpu.memory_space<vmem>>, vector<8x128xf32>
    tpu.vector_store %arg18[%c0_228, %c0_229], %421 {strides = array<i32>} : memref<8x128xf32, #tpu.memory_space<vmem>>, vector<8x128xf32>,
    %426 = arith.index_cast %391 : i32 to index
    %c0_230 = arith.constant 0 : index
    %427 = vector.load %arg14[%426, %c0_230] : memref<64x128xf32, #tpu.memory_space<vmem>>, vector<8x128xf32>
    tpu.vector_store %arg14[%426, %c0_230], %423 {strides = array<i32>} : memref<64x128xf32, #tpu.memory_space<vmem>>, vector<8x128xf32>,
    %c2_i32_231 = arith.constant 2 : i32
    %c8_i32_232 = arith.constant 8 : i32
    %428 = arith.muli %c2_i32_231, %c8_i32_232 : i32
    %429 = tpu.assume_multiple %428, 8 : i32
    %c0_233 = arith.constant 0 : index
    %c0_234 = arith.constant 0 : index
    %430 = vector.load %arg17[%c0_233, %c0_234] : memref<8x128xf32, #tpu.memory_space<vmem>>, vector<8x128xf32>
    %c0_235 = arith.constant 0 : index
    %c0_236 = arith.constant 0 : index
    %431 = vector.load %arg18[%c0_235, %c0_236] : memref<8x128xf32, #tpu.memory_space<vmem>>, vector<8x128xf32>
    %432 = arith.index_cast %429 : i32 to index
    %c0_237 = arith.constant 0 : index
    %433 = vector.load %arg13[%432, %c0_237] : memref<64x512xf32, #tpu.memory_space<vmem>>, vector<8x512xf32>
    %c0_238 = arith.constant 0 : index
    %c0_239 = arith.constant 0 : index
    %434 = vector.load %arg7[%c0_238, %c0_239] : memref<128x512xf32, #tpu.memory_space<vmem>>, vector<128x512xf32>
    %cst_240 = arith.constant dense<0.000000e+00> : vector<8x512xf32>
    %435 = tpu.matmul %430, %434, %cst_240 {dimension_numbers = #tpu.dot_dimension_numbers<[1], [0], [0], [1], [0, 0, 1, 1], [], []>} : vector<8x128xf32>, vector<128x512xf32>, vector<8x512xf32> -> vector<8x512xf32>
    %436 = arith.addf %433, %435 : vector<8x512xf32>
    %437 = vector.extract_strided_slice %436 {offsets = [0, 0], sizes = [8, 128], strides = [1, 1]} : vector<8x512xf32> to vector<8x128xf32>
    %438 = arith.negf %437 : vector<8x128xf32>
    %439 = math.exp %438 : vector<8x128xf32>
    %cst_241 = arith.constant 1.000000e+00 : f32
    %440 = vector.broadcast %cst_241 : f32 to vector<8x128xf32>
    %441 = arith.addf %440, %439 : vector<8x128xf32>
    %442 = arith.divf %440, %441 : vector<8x128xf32>
    %443 = vector.extract_strided_slice %436 {offsets = [0, 128], sizes = [8, 128], strides = [1, 1]} : vector<8x512xf32> to vector<8x128xf32>
    %444 = arith.negf %443 : vector<8x128xf32>
    %445 = math.exp %444 : vector<8x128xf32>
    %cst_242 = arith.constant 1.000000e+00 : f32
    %446 = vector.broadcast %cst_242 : f32 to vector<8x128xf32>
    %447 = arith.addf %446, %445 : vector<8x128xf32>
    %448 = arith.divf %446, %447 : vector<8x128xf32>
    %449 = vector.extract_strided_slice %436 {offsets = [0, 256], sizes = [8, 128], strides = [1, 1]} : vector<8x512xf32> to vector<8x128xf32>
    %450 = math.tanh %449 : vector<8x128xf32>
    %451 = vector.extract_strided_slice %436 {offsets = [0, 384], sizes = [8, 128], strides = [1, 1]} : vector<8x512xf32> to vector<8x128xf32>
    %452 = arith.negf %451 : vector<8x128xf32>
    %453 = math.exp %452 : vector<8x128xf32>
    %cst_243 = arith.constant 1.000000e+00 : f32
    %454 = vector.broadcast %cst_243 : f32 to vector<8x128xf32>
    %455 = arith.addf %454, %453 : vector<8x128xf32>
    %456 = arith.divf %454, %455 : vector<8x128xf32>
    %457 = arith.mulf %448, %431 : vector<8x128xf32>
    %458 = arith.mulf %442, %450 : vector<8x128xf32>
    %459 = arith.addf %457, %458 : vector<8x128xf32>
    %460 = math.tanh %459 : vector<8x128xf32>
    %461 = arith.mulf %456, %460 : vector<8x128xf32>
    %c0_244 = arith.constant 0 : index
    %c0_245 = arith.constant 0 : index
    %462 = vector.load %arg17[%c0_244, %c0_245] : memref<8x128xf32, #tpu.memory_space<vmem>>, vector<8x128xf32>
    tpu.vector_store %arg17[%c0_244, %c0_245], %461 {strides = array<i32>} : memref<8x128xf32, #tpu.memory_space<vmem>>, vector<8x128xf32>,
    %c0_246 = arith.constant 0 : index
    %c0_247 = arith.constant 0 : index
    %463 = vector.load %arg18[%c0_246, %c0_247] : memref<8x128xf32, #tpu.memory_space<vmem>>, vector<8x128xf32>
    tpu.vector_store %arg18[%c0_246, %c0_247], %459 {strides = array<i32>} : memref<8x128xf32, #tpu.memory_space<vmem>>, vector<8x128xf32>,
    %464 = arith.index_cast %429 : i32 to index
    %c0_248 = arith.constant 0 : index
    %465 = vector.load %arg14[%464, %c0_248] : memref<64x128xf32, #tpu.memory_space<vmem>>, vector<8x128xf32>
    tpu.vector_store %arg14[%464, %c0_248], %461 {strides = array<i32>} : memref<64x128xf32, #tpu.memory_space<vmem>>, vector<8x128xf32>,
    %c3_i32_249 = arith.constant 3 : i32
    %c8_i32_250 = arith.constant 8 : i32
    %466 = arith.muli %c3_i32_249, %c8_i32_250 : i32
    %467 = tpu.assume_multiple %466, 8 : i32
    %c0_251 = arith.constant 0 : index
    %c0_252 = arith.constant 0 : index
    %468 = vector.load %arg17[%c0_251, %c0_252] : memref<8x128xf32, #tpu.memory_space<vmem>>, vector<8x128xf32>
    %c0_253 = arith.constant 0 : index
    %c0_254 = arith.constant 0 : index
    %469 = vector.load %arg18[%c0_253, %c0_254] : memref<8x128xf32, #tpu.memory_space<vmem>>, vector<8x128xf32>
    %470 = arith.index_cast %467 : i32 to index
    %c0_255 = arith.constant 0 : index
    %471 = vector.load %arg13[%470, %c0_255] : memref<64x512xf32, #tpu.memory_space<vmem>>, vector<8x512xf32>
    %c0_256 = arith.constant 0 : index
    %c0_257 = arith.constant 0 : index
    %472 = vector.load %arg7[%c0_256, %c0_257] : memref<128x512xf32, #tpu.memory_space<vmem>>, vector<128x512xf32>
    %cst_258 = arith.constant dense<0.000000e+00> : vector<8x512xf32>
    %473 = tpu.matmul %468, %472, %cst_258 {dimension_numbers = #tpu.dot_dimension_numbers<[1], [0], [0], [1], [0, 0, 1, 1], [], []>} : vector<8x128xf32>, vector<128x512xf32>, vector<8x512xf32> -> vector<8x512xf32>
    %474 = arith.addf %471, %473 : vector<8x512xf32>
    %475 = vector.extract_strided_slice %474 {offsets = [0, 0], sizes = [8, 128], strides = [1, 1]} : vector<8x512xf32> to vector<8x128xf32>
    %476 = arith.negf %475 : vector<8x128xf32>
    %477 = math.exp %476 : vector<8x128xf32>
    %cst_259 = arith.constant 1.000000e+00 : f32
    %478 = vector.broadcast %cst_259 : f32 to vector<8x128xf32>
    %479 = arith.addf %478, %477 : vector<8x128xf32>
    %480 = arith.divf %478, %479 : vector<8x128xf32>
    %481 = vector.extract_strided_slice %474 {offsets = [0, 128], sizes = [8, 128], strides = [1, 1]} : vector<8x512xf32> to vector<8x128xf32>
    %482 = arith.negf %481 : vector<8x128xf32>
    %483 = math.exp %482 : vector<8x128xf32>
    %cst_260 = arith.constant 1.000000e+00 : f32
    %484 = vector.broadcast %cst_260 : f32 to vector<8x128xf32>
    %485 = arith.addf %484, %483 : vector<8x128xf32>
    %486 = arith.divf %484, %485 : vector<8x128xf32>
    %487 = vector.extract_strided_slice %474 {offsets = [0, 256], sizes = [8, 128], strides = [1, 1]} : vector<8x512xf32> to vector<8x128xf32>
    %488 = math.tanh %487 : vector<8x128xf32>
    %489 = vector.extract_strided_slice %474 {offsets = [0, 384], sizes = [8, 128], strides = [1, 1]} : vector<8x512xf32> to vector<8x128xf32>
    %490 = arith.negf %489 : vector<8x128xf32>
    %491 = math.exp %490 : vector<8x128xf32>
    %cst_261 = arith.constant 1.000000e+00 : f32
    %492 = vector.broadcast %cst_261 : f32 to vector<8x128xf32>
    %493 = arith.addf %492, %491 : vector<8x128xf32>
    %494 = arith.divf %492, %493 : vector<8x128xf32>
    %495 = arith.mulf %486, %469 : vector<8x128xf32>
    %496 = arith.mulf %480, %488 : vector<8x128xf32>
    %497 = arith.addf %495, %496 : vector<8x128xf32>
    %498 = math.tanh %497 : vector<8x128xf32>
    %499 = arith.mulf %494, %498 : vector<8x128xf32>
    %c0_262 = arith.constant 0 : index
    %c0_263 = arith.constant 0 : index
    %500 = vector.load %arg17[%c0_262, %c0_263] : memref<8x128xf32, #tpu.memory_space<vmem>>, vector<8x128xf32>
    tpu.vector_store %arg17[%c0_262, %c0_263], %499 {strides = array<i32>} : memref<8x128xf32, #tpu.memory_space<vmem>>, vector<8x128xf32>,
    %c0_264 = arith.constant 0 : index
    %c0_265 = arith.constant 0 : index
    %501 = vector.load %arg18[%c0_264, %c0_265] : memref<8x128xf32, #tpu.memory_space<vmem>>, vector<8x128xf32>
    tpu.vector_store %arg18[%c0_264, %c0_265], %497 {strides = array<i32>} : memref<8x128xf32, #tpu.memory_space<vmem>>, vector<8x128xf32>,
    %502 = arith.index_cast %467 : i32 to index
    %c0_266 = arith.constant 0 : index
    %503 = vector.load %arg14[%502, %c0_266] : memref<64x128xf32, #tpu.memory_space<vmem>>, vector<8x128xf32>
    tpu.vector_store %arg14[%502, %c0_266], %499 {strides = array<i32>} : memref<64x128xf32, #tpu.memory_space<vmem>>, vector<8x128xf32>,
    %c4_i32_267 = arith.constant 4 : i32
    %c8_i32_268 = arith.constant 8 : i32
    %504 = arith.muli %c4_i32_267, %c8_i32_268 : i32
    %505 = tpu.assume_multiple %504, 8 : i32
    %c0_269 = arith.constant 0 : index
    %c0_270 = arith.constant 0 : index
    %506 = vector.load %arg17[%c0_269, %c0_270] : memref<8x128xf32, #tpu.memory_space<vmem>>, vector<8x128xf32>
    %c0_271 = arith.constant 0 : index
    %c0_272 = arith.constant 0 : index
    %507 = vector.load %arg18[%c0_271, %c0_272] : memref<8x128xf32, #tpu.memory_space<vmem>>, vector<8x128xf32>
    %508 = arith.index_cast %505 : i32 to index
    %c0_273 = arith.constant 0 : index
    %509 = vector.load %arg13[%508, %c0_273] : memref<64x512xf32, #tpu.memory_space<vmem>>, vector<8x512xf32>
    %c0_274 = arith.constant 0 : index
    %c0_275 = arith.constant 0 : index
    %510 = vector.load %arg7[%c0_274, %c0_275] : memref<128x512xf32, #tpu.memory_space<vmem>>, vector<128x512xf32>
    %cst_276 = arith.constant dense<0.000000e+00> : vector<8x512xf32>
    %511 = tpu.matmul %506, %510, %cst_276 {dimension_numbers = #tpu.dot_dimension_numbers<[1], [0], [0], [1], [0, 0, 1, 1], [], []>} : vector<8x128xf32>, vector<128x512xf32>, vector<8x512xf32> -> vector<8x512xf32>
    %512 = arith.addf %509, %511 : vector<8x512xf32>
    %513 = vector.extract_strided_slice %512 {offsets = [0, 0], sizes = [8, 128], strides = [1, 1]} : vector<8x512xf32> to vector<8x128xf32>
    %514 = arith.negf %513 : vector<8x128xf32>
    %515 = math.exp %514 : vector<8x128xf32>
    %cst_277 = arith.constant 1.000000e+00 : f32
    %516 = vector.broadcast %cst_277 : f32 to vector<8x128xf32>
    %517 = arith.addf %516, %515 : vector<8x128xf32>
    %518 = arith.divf %516, %517 : vector<8x128xf32>
    %519 = vector.extract_strided_slice %512 {offsets = [0, 128], sizes = [8, 128], strides = [1, 1]} : vector<8x512xf32> to vector<8x128xf32>
    %520 = arith.negf %519 : vector<8x128xf32>
    %521 = math.exp %520 : vector<8x128xf32>
    %cst_278 = arith.constant 1.000000e+00 : f32
    %522 = vector.broadcast %cst_278 : f32 to vector<8x128xf32>
    %523 = arith.addf %522, %521 : vector<8x128xf32>
    %524 = arith.divf %522, %523 : vector<8x128xf32>
    %525 = vector.extract_strided_slice %512 {offsets = [0, 256], sizes = [8, 128], strides = [1, 1]} : vector<8x512xf32> to vector<8x128xf32>
    %526 = math.tanh %525 : vector<8x128xf32>
    %527 = vector.extract_strided_slice %512 {offsets = [0, 384], sizes = [8, 128], strides = [1, 1]} : vector<8x512xf32> to vector<8x128xf32>
    %528 = arith.negf %527 : vector<8x128xf32>
    %529 = math.exp %528 : vector<8x128xf32>
    %cst_279 = arith.constant 1.000000e+00 : f32
    %530 = vector.broadcast %cst_279 : f32 to vector<8x128xf32>
    %531 = arith.addf %530, %529 : vector<8x128xf32>
    %532 = arith.divf %530, %531 : vector<8x128xf32>
    %533 = arith.mulf %524, %507 : vector<8x128xf32>
    %534 = arith.mulf %518, %526 : vector<8x128xf32>
    %535 = arith.addf %533, %534 : vector<8x128xf32>
    %536 = math.tanh %535 : vector<8x128xf32>
    %537 = arith.mulf %532, %536 : vector<8x128xf32>
    %c0_280 = arith.constant 0 : index
    %c0_281 = arith.constant 0 : index
    %538 = vector.load %arg17[%c0_280, %c0_281] : memref<8x128xf32, #tpu.memory_space<vmem>>, vector<8x128xf32>
    tpu.vector_store %arg17[%c0_280, %c0_281], %537 {strides = array<i32>} : memref<8x128xf32, #tpu.memory_space<vmem>>, vector<8x128xf32>,
    %c0_282 = arith.constant 0 : index
    %c0_283 = arith.constant 0 : index
    %539 = vector.load %arg18[%c0_282, %c0_283] : memref<8x128xf32, #tpu.memory_space<vmem>>, vector<8x128xf32>
    tpu.vector_store %arg18[%c0_282, %c0_283], %535 {strides = array<i32>} : memref<8x128xf32, #tpu.memory_space<vmem>>, vector<8x128xf32>,
    %540 = arith.index_cast %505 : i32 to index
    %c0_284 = arith.constant 0 : index
    %541 = vector.load %arg14[%540, %c0_284] : memref<64x128xf32, #tpu.memory_space<vmem>>, vector<8x128xf32>
    tpu.vector_store %arg14[%540, %c0_284], %537 {strides = array<i32>} : memref<64x128xf32, #tpu.memory_space<vmem>>, vector<8x128xf32>,
    %c5_i32_285 = arith.constant 5 : i32
    %c8_i32_286 = arith.constant 8 : i32
    %542 = arith.muli %c5_i32_285, %c8_i32_286 : i32
    %543 = tpu.assume_multiple %542, 8 : i32
    %c0_287 = arith.constant 0 : index
    %c0_288 = arith.constant 0 : index
    %544 = vector.load %arg17[%c0_287, %c0_288] : memref<8x128xf32, #tpu.memory_space<vmem>>, vector<8x128xf32>
    %c0_289 = arith.constant 0 : index
    %c0_290 = arith.constant 0 : index
    %545 = vector.load %arg18[%c0_289, %c0_290] : memref<8x128xf32, #tpu.memory_space<vmem>>, vector<8x128xf32>
    %546 = arith.index_cast %543 : i32 to index
    %c0_291 = arith.constant 0 : index
    %547 = vector.load %arg13[%546, %c0_291] : memref<64x512xf32, #tpu.memory_space<vmem>>, vector<8x512xf32>
    %c0_292 = arith.constant 0 : index
    %c0_293 = arith.constant 0 : index
    %548 = vector.load %arg7[%c0_292, %c0_293] : memref<128x512xf32, #tpu.memory_space<vmem>>, vector<128x512xf32>
    %cst_294 = arith.constant dense<0.000000e+00> : vector<8x512xf32>
    %549 = tpu.matmul %544, %548, %cst_294 {dimension_numbers = #tpu.dot_dimension_numbers<[1], [0], [0], [1], [0, 0, 1, 1], [], []>} : vector<8x128xf32>, vector<128x512xf32>, vector<8x512xf32> -> vector<8x512xf32>
    %550 = arith.addf %547, %549 : vector<8x512xf32>
    %551 = vector.extract_strided_slice %550 {offsets = [0, 0], sizes = [8, 128], strides = [1, 1]} : vector<8x512xf32> to vector<8x128xf32>
    %552 = arith.negf %551 : vector<8x128xf32>
    %553 = math.exp %552 : vector<8x128xf32>
    %cst_295 = arith.constant 1.000000e+00 : f32
    %554 = vector.broadcast %cst_295 : f32 to vector<8x128xf32>
    %555 = arith.addf %554, %553 : vector<8x128xf32>
    %556 = arith.divf %554, %555 : vector<8x128xf32>
    %557 = vector.extract_strided_slice %550 {offsets = [0, 128], sizes = [8, 128], strides = [1, 1]} : vector<8x512xf32> to vector<8x128xf32>
    %558 = arith.negf %557 : vector<8x128xf32>
    %559 = math.exp %558 : vector<8x128xf32>
    %cst_296 = arith.constant 1.000000e+00 : f32
    %560 = vector.broadcast %cst_296 : f32 to vector<8x128xf32>
    %561 = arith.addf %560, %559 : vector<8x128xf32>
    %562 = arith.divf %560, %561 : vector<8x128xf32>
    %563 = vector.extract_strided_slice %550 {offsets = [0, 256], sizes = [8, 128], strides = [1, 1]} : vector<8x512xf32> to vector<8x128xf32>
    %564 = math.tanh %563 : vector<8x128xf32>
    %565 = vector.extract_strided_slice %550 {offsets = [0, 384], sizes = [8, 128], strides = [1, 1]} : vector<8x512xf32> to vector<8x128xf32>
    %566 = arith.negf %565 : vector<8x128xf32>
    %567 = math.exp %566 : vector<8x128xf32>
    %cst_297 = arith.constant 1.000000e+00 : f32
    %568 = vector.broadcast %cst_297 : f32 to vector<8x128xf32>
    %569 = arith.addf %568, %567 : vector<8x128xf32>
    %570 = arith.divf %568, %569 : vector<8x128xf32>
    %571 = arith.mulf %562, %545 : vector<8x128xf32>
    %572 = arith.mulf %556, %564 : vector<8x128xf32>
    %573 = arith.addf %571, %572 : vector<8x128xf32>
    %574 = math.tanh %573 : vector<8x128xf32>
    %575 = arith.mulf %570, %574 : vector<8x128xf32>
    %c0_298 = arith.constant 0 : index
    %c0_299 = arith.constant 0 : index
    %576 = vector.load %arg17[%c0_298, %c0_299] : memref<8x128xf32, #tpu.memory_space<vmem>>, vector<8x128xf32>
    tpu.vector_store %arg17[%c0_298, %c0_299], %575 {strides = array<i32>} : memref<8x128xf32, #tpu.memory_space<vmem>>, vector<8x128xf32>,
    %c0_300 = arith.constant 0 : index
    %c0_301 = arith.constant 0 : index
    %577 = vector.load %arg18[%c0_300, %c0_301] : memref<8x128xf32, #tpu.memory_space<vmem>>, vector<8x128xf32>
    tpu.vector_store %arg18[%c0_300, %c0_301], %573 {strides = array<i32>} : memref<8x128xf32, #tpu.memory_space<vmem>>, vector<8x128xf32>,
    %578 = arith.index_cast %543 : i32 to index
    %c0_302 = arith.constant 0 : index
    %579 = vector.load %arg14[%578, %c0_302] : memref<64x128xf32, #tpu.memory_space<vmem>>, vector<8x128xf32>
    tpu.vector_store %arg14[%578, %c0_302], %575 {strides = array<i32>} : memref<64x128xf32, #tpu.memory_space<vmem>>, vector<8x128xf32>,
    %c6_i32_303 = arith.constant 6 : i32
    %c8_i32_304 = arith.constant 8 : i32
    %580 = arith.muli %c6_i32_303, %c8_i32_304 : i32
    %581 = tpu.assume_multiple %580, 8 : i32
    %c0_305 = arith.constant 0 : index
    %c0_306 = arith.constant 0 : index
    %582 = vector.load %arg17[%c0_305, %c0_306] : memref<8x128xf32, #tpu.memory_space<vmem>>, vector<8x128xf32>
    %c0_307 = arith.constant 0 : index
    %c0_308 = arith.constant 0 : index
    %583 = vector.load %arg18[%c0_307, %c0_308] : memref<8x128xf32, #tpu.memory_space<vmem>>, vector<8x128xf32>
    %584 = arith.index_cast %581 : i32 to index
    %c0_309 = arith.constant 0 : index
    %585 = vector.load %arg13[%584, %c0_309] : memref<64x512xf32, #tpu.memory_space<vmem>>, vector<8x512xf32>
    %c0_310 = arith.constant 0 : index
    %c0_311 = arith.constant 0 : index
    %586 = vector.load %arg7[%c0_310, %c0_311] : memref<128x512xf32, #tpu.memory_space<vmem>>, vector<128x512xf32>
    %cst_312 = arith.constant dense<0.000000e+00> : vector<8x512xf32>
    %587 = tpu.matmul %582, %586, %cst_312 {dimension_numbers = #tpu.dot_dimension_numbers<[1], [0], [0], [1], [0, 0, 1, 1], [], []>} : vector<8x128xf32>, vector<128x512xf32>, vector<8x512xf32> -> vector<8x512xf32>
    %588 = arith.addf %585, %587 : vector<8x512xf32>
    %589 = vector.extract_strided_slice %588 {offsets = [0, 0], sizes = [8, 128], strides = [1, 1]} : vector<8x512xf32> to vector<8x128xf32>
    %590 = arith.negf %589 : vector<8x128xf32>
    %591 = math.exp %590 : vector<8x128xf32>
    %cst_313 = arith.constant 1.000000e+00 : f32
    %592 = vector.broadcast %cst_313 : f32 to vector<8x128xf32>
    %593 = arith.addf %592, %591 : vector<8x128xf32>
    %594 = arith.divf %592, %593 : vector<8x128xf32>
    %595 = vector.extract_strided_slice %588 {offsets = [0, 128], sizes = [8, 128], strides = [1, 1]} : vector<8x512xf32> to vector<8x128xf32>
    %596 = arith.negf %595 : vector<8x128xf32>
    %597 = math.exp %596 : vector<8x128xf32>
    %cst_314 = arith.constant 1.000000e+00 : f32
    %598 = vector.broadcast %cst_314 : f32 to vector<8x128xf32>
    %599 = arith.addf %598, %597 : vector<8x128xf32>
    %600 = arith.divf %598, %599 : vector<8x128xf32>
    %601 = vector.extract_strided_slice %588 {offsets = [0, 256], sizes = [8, 128], strides = [1, 1]} : vector<8x512xf32> to vector<8x128xf32>
    %602 = math.tanh %601 : vector<8x128xf32>
    %603 = vector.extract_strided_slice %588 {offsets = [0, 384], sizes = [8, 128], strides = [1, 1]} : vector<8x512xf32> to vector<8x128xf32>
    %604 = arith.negf %603 : vector<8x128xf32>
    %605 = math.exp %604 : vector<8x128xf32>
    %cst_315 = arith.constant 1.000000e+00 : f32
    %606 = vector.broadcast %cst_315 : f32 to vector<8x128xf32>
    %607 = arith.addf %606, %605 : vector<8x128xf32>
    %608 = arith.divf %606, %607 : vector<8x128xf32>
    %609 = arith.mulf %600, %583 : vector<8x128xf32>
    %610 = arith.mulf %594, %602 : vector<8x128xf32>
    %611 = arith.addf %609, %610 : vector<8x128xf32>
    %612 = math.tanh %611 : vector<8x128xf32>
    %613 = arith.mulf %608, %612 : vector<8x128xf32>
    %c0_316 = arith.constant 0 : index
    %c0_317 = arith.constant 0 : index
    %614 = vector.load %arg17[%c0_316, %c0_317] : memref<8x128xf32, #tpu.memory_space<vmem>>, vector<8x128xf32>
    tpu.vector_store %arg17[%c0_316, %c0_317], %613 {strides = array<i32>} : memref<8x128xf32, #tpu.memory_space<vmem>>, vector<8x128xf32>,
    %c0_318 = arith.constant 0 : index
    %c0_319 = arith.constant 0 : index
    %615 = vector.load %arg18[%c0_318, %c0_319] : memref<8x128xf32, #tpu.memory_space<vmem>>, vector<8x128xf32>
    tpu.vector_store %arg18[%c0_318, %c0_319], %611 {strides = array<i32>} : memref<8x128xf32, #tpu.memory_space<vmem>>, vector<8x128xf32>,
    %616 = arith.index_cast %581 : i32 to index
    %c0_320 = arith.constant 0 : index
    %617 = vector.load %arg14[%616, %c0_320] : memref<64x128xf32, #tpu.memory_space<vmem>>, vector<8x128xf32>
    tpu.vector_store %arg14[%616, %c0_320], %613 {strides = array<i32>} : memref<64x128xf32, #tpu.memory_space<vmem>>, vector<8x128xf32>,
    %c7_i32_321 = arith.constant 7 : i32
    %c8_i32_322 = arith.constant 8 : i32
    %618 = arith.muli %c7_i32_321, %c8_i32_322 : i32
    %619 = tpu.assume_multiple %618, 8 : i32
    %c0_323 = arith.constant 0 : index
    %c0_324 = arith.constant 0 : index
    %620 = vector.load %arg17[%c0_323, %c0_324] : memref<8x128xf32, #tpu.memory_space<vmem>>, vector<8x128xf32>
    %c0_325 = arith.constant 0 : index
    %c0_326 = arith.constant 0 : index
    %621 = vector.load %arg18[%c0_325, %c0_326] : memref<8x128xf32, #tpu.memory_space<vmem>>, vector<8x128xf32>
    %622 = arith.index_cast %619 : i32 to index
    %c0_327 = arith.constant 0 : index
    %623 = vector.load %arg13[%622, %c0_327] : memref<64x512xf32, #tpu.memory_space<vmem>>, vector<8x512xf32>
    %c0_328 = arith.constant 0 : index
    %c0_329 = arith.constant 0 : index
    %624 = vector.load %arg7[%c0_328, %c0_329] : memref<128x512xf32, #tpu.memory_space<vmem>>, vector<128x512xf32>
    %cst_330 = arith.constant dense<0.000000e+00> : vector<8x512xf32>
    %625 = tpu.matmul %620, %624, %cst_330 {dimension_numbers = #tpu.dot_dimension_numbers<[1], [0], [0], [1], [0, 0, 1, 1], [], []>} : vector<8x128xf32>, vector<128x512xf32>, vector<8x512xf32> -> vector<8x512xf32>
    %626 = arith.addf %623, %625 : vector<8x512xf32>
    %627 = vector.extract_strided_slice %626 {offsets = [0, 0], sizes = [8, 128], strides = [1, 1]} : vector<8x512xf32> to vector<8x128xf32>
    %628 = arith.negf %627 : vector<8x128xf32>
    %629 = math.exp %628 : vector<8x128xf32>
    %cst_331 = arith.constant 1.000000e+00 : f32
    %630 = vector.broadcast %cst_331 : f32 to vector<8x128xf32>
    %631 = arith.addf %630, %629 : vector<8x128xf32>
    %632 = arith.divf %630, %631 : vector<8x128xf32>
    %633 = vector.extract_strided_slice %626 {offsets = [0, 128], sizes = [8, 128], strides = [1, 1]} : vector<8x512xf32> to vector<8x128xf32>
    %634 = arith.negf %633 : vector<8x128xf32>
    %635 = math.exp %634 : vector<8x128xf32>
    %cst_332 = arith.constant 1.000000e+00 : f32
    %636 = vector.broadcast %cst_332 : f32 to vector<8x128xf32>
    %637 = arith.addf %636, %635 : vector<8x128xf32>
    %638 = arith.divf %636, %637 : vector<8x128xf32>
    %639 = vector.extract_strided_slice %626 {offsets = [0, 256], sizes = [8, 128], strides = [1, 1]} : vector<8x512xf32> to vector<8x128xf32>
    %640 = math.tanh %639 : vector<8x128xf32>
    %641 = vector.extract_strided_slice %626 {offsets = [0, 384], sizes = [8, 128], strides = [1, 1]} : vector<8x512xf32> to vector<8x128xf32>
    %642 = arith.negf %641 : vector<8x128xf32>
    %643 = math.exp %642 : vector<8x128xf32>
    %cst_333 = arith.constant 1.000000e+00 : f32
    %644 = vector.broadcast %cst_333 : f32 to vector<8x128xf32>
    %645 = arith.addf %644, %643 : vector<8x128xf32>
    %646 = arith.divf %644, %645 : vector<8x128xf32>
    %647 = arith.mulf %638, %621 : vector<8x128xf32>
    %648 = arith.mulf %632, %640 : vector<8x128xf32>
    %649 = arith.addf %647, %648 : vector<8x128xf32>
    %650 = math.tanh %649 : vector<8x128xf32>
    %651 = arith.mulf %646, %650 : vector<8x128xf32>
    %c0_334 = arith.constant 0 : index
    %c0_335 = arith.constant 0 : index
    %652 = vector.load %arg17[%c0_334, %c0_335] : memref<8x128xf32, #tpu.memory_space<vmem>>, vector<8x128xf32>
    tpu.vector_store %arg17[%c0_334, %c0_335], %651 {strides = array<i32>} : memref<8x128xf32, #tpu.memory_space<vmem>>, vector<8x128xf32>,
    %c0_336 = arith.constant 0 : index
    %c0_337 = arith.constant 0 : index
    %653 = vector.load %arg18[%c0_336, %c0_337] : memref<8x128xf32, #tpu.memory_space<vmem>>, vector<8x128xf32>
    tpu.vector_store %arg18[%c0_336, %c0_337], %649 {strides = array<i32>} : memref<8x128xf32, #tpu.memory_space<vmem>>, vector<8x128xf32>,
    %654 = arith.index_cast %619 : i32 to index
    %c0_338 = arith.constant 0 : index
    %655 = vector.load %arg14[%654, %c0_338] : memref<64x128xf32, #tpu.memory_space<vmem>>, vector<8x128xf32>
    tpu.vector_store %arg14[%654, %c0_338], %651 {strides = array<i32>} : memref<64x128xf32, #tpu.memory_space<vmem>>, vector<8x128xf32>,
    %c8_i32_339 = arith.constant 8 : i32
    %c0_340 = arith.constant 0 : index
    %c0_341 = arith.constant 0 : index
    %656 = vector.load %arg14[%c0_340, %c0_341] : memref<64x128xf32, #tpu.memory_space<vmem>>, vector<8x32xf32>
    %c0_342 = arith.constant 0 : index
    %c0_343 = arith.constant 0 : index
    %657 = vector.load %arg9[%c0_342, %c0_343] : memref<8x256xf32, #tpu.memory_space<vmem>>, vector<8x32xf32>
    tpu.vector_store %arg9[%c0_342, %c0_343], %656 {strides = array<i32>} : memref<8x256xf32, #tpu.memory_space<vmem>>, vector<8x32xf32>,
    %c8_344 = arith.constant 8 : index
    %c0_345 = arith.constant 0 : index
    %658 = vector.load %arg14[%c8_344, %c0_345] : memref<64x128xf32, #tpu.memory_space<vmem>>, vector<8x32xf32>
    %c0_346 = arith.constant 0 : index
    %c32_347 = arith.constant 32 : index
    %659 = vector.load %arg9[%c0_346, %c32_347] : memref<8x256xf32, #tpu.memory_space<vmem>>, vector<8x32xf32>
    tpu.vector_store %arg9[%c0_346, %c32_347], %658 {strides = array<i32>} : memref<8x256xf32, #tpu.memory_space<vmem>>, vector<8x32xf32>,
    %c16_348 = arith.constant 16 : index
    %c0_349 = arith.constant 0 : index
    %660 = vector.load %arg14[%c16_348, %c0_349] : memref<64x128xf32, #tpu.memory_space<vmem>>, vector<8x32xf32>
    %c0_350 = arith.constant 0 : index
    %c64_351 = arith.constant 64 : index
    %661 = vector.load %arg9[%c0_350, %c64_351] : memref<8x256xf32, #tpu.memory_space<vmem>>, vector<8x32xf32>
    tpu.vector_store %arg9[%c0_350, %c64_351], %660 {strides = array<i32>} : memref<8x256xf32, #tpu.memory_space<vmem>>, vector<8x32xf32>,
    %c24_352 = arith.constant 24 : index
    %c0_353 = arith.constant 0 : index
    %662 = vector.load %arg14[%c24_352, %c0_353] : memref<64x128xf32, #tpu.memory_space<vmem>>, vector<8x32xf32>
    %c0_354 = arith.constant 0 : index
    %c96_355 = arith.constant 96 : index
    %663 = vector.load %arg9[%c0_354, %c96_355] : memref<8x256xf32, #tpu.memory_space<vmem>>, vector<8x32xf32>
    tpu.vector_store %arg9[%c0_354, %c96_355], %662 {strides = array<i32>} : memref<8x256xf32, #tpu.memory_space<vmem>>, vector<8x32xf32>,
    %c32_356 = arith.constant 32 : index
    %c0_357 = arith.constant 0 : index
    %664 = vector.load %arg14[%c32_356, %c0_357] : memref<64x128xf32, #tpu.memory_space<vmem>>, vector<8x32xf32>
    %c0_358 = arith.constant 0 : index
    %c128_359 = arith.constant 128 : index
    %665 = vector.load %arg9[%c0_358, %c128_359] : memref<8x256xf32, #tpu.memory_space<vmem>>, vector<8x32xf32>
    tpu.vector_store %arg9[%c0_358, %c128_359], %664 {strides = array<i32>} : memref<8x256xf32, #tpu.memory_space<vmem>>, vector<8x32xf32>,
    %c40_360 = arith.constant 40 : index
    %c0_361 = arith.constant 0 : index
    %666 = vector.load %arg14[%c40_360, %c0_361] : memref<64x128xf32, #tpu.memory_space<vmem>>, vector<8x32xf32>
    %c0_362 = arith.constant 0 : index
    %c160_363 = arith.constant 160 : index
    %667 = vector.load %arg9[%c0_362, %c160_363] : memref<8x256xf32, #tpu.memory_space<vmem>>, vector<8x32xf32>
    tpu.vector_store %arg9[%c0_362, %c160_363], %666 {strides = array<i32>} : memref<8x256xf32, #tpu.memory_space<vmem>>, vector<8x32xf32>,
    %c48_364 = arith.constant 48 : index
    %c0_365 = arith.constant 0 : index
    %668 = vector.load %arg14[%c48_364, %c0_365] : memref<64x128xf32, #tpu.memory_space<vmem>>, vector<8x32xf32>
    %c0_366 = arith.constant 0 : index
    %c192_367 = arith.constant 192 : index
    %669 = vector.load %arg9[%c0_366, %c192_367] : memref<8x256xf32, #tpu.memory_space<vmem>>, vector<8x32xf32>
    tpu.vector_store %arg9[%c0_366, %c192_367], %668 {strides = array<i32>} : memref<8x256xf32, #tpu.memory_space<vmem>>, vector<8x32xf32>,
    %c56_368 = arith.constant 56 : index
    %c0_369 = arith.constant 0 : index
    %670 = vector.load %arg14[%c56_368, %c0_369] : memref<64x128xf32, #tpu.memory_space<vmem>>, vector<8x32xf32>
    %c0_370 = arith.constant 0 : index
    %c224_371 = arith.constant 224 : index
    %671 = vector.load %arg9[%c0_370, %c224_371] : memref<8x256xf32, #tpu.memory_space<vmem>>, vector<8x32xf32>
    tpu.vector_store %arg9[%c0_370, %c224_371], %670 {strides = array<i32>} : memref<8x256xf32, #tpu.memory_space<vmem>>, vector<8x32xf32>,
    return
  }
}

</mosaic_0001>

<bundles_post_ra>
// kernel: lstm_autoencoder_forward.1
= control target key start
LH: loop header
LB: loop body
LE: loop exit
PB: predicated region body
PF: predicated region fallthrough
CT: control target
= control target key end

     0   :  { %vm33_vm0 = vcmask 261120   ;;  %v6660_v3 = vmov 0.0   ;;  %s6661_s15 = smov 96   ;;  %s6662_s16 = smov 32   ;;  %vm6665_vm1 = vmmov 0   ;;  %vm4894_vm2 = vcmask 523520   ;;  %s8950_s0 = inlined_call_operand.vmem [shape: f32[8,256], index: 0, kind: input, shape index: {}]   ;;  %s8951_s1 = inlined_call_operand.vmem [shape: f32[32,512], index: 1, kind: input, shape index: {}]   ;;  %s8952_s2 = inlined_call_operand.vmem [shape: f32[128,512], index: 2, kind: input, shape index: {}]   ;;  %s8953_s3 = inlined_call_operand.vmem [shape: f32[1,512], index: 3, kind: input, shape index: {}]   ;;  %s8954_s4 = inlined_call_operand.vmem [shape: f32[128,128], index: 4, kind: input, shape index: {}]   ;;  %s8955_s6 = inlined_call_operand.vmem [shape: f32[128,512], index: 6, kind: input, shape index: {}]   ;;  %s8956_s7 = inlined_call_operand.vmem [shape: f32[128,512], index: 7, kind: input, shape index: {}]   ;;  %s8957_s5 = inlined_call_operand.vmem [shape: f32[1,128], index: 5, kind: input, shape index: {}]   ;;  %s8958_s8 = inlined_call_operand.vmem [shape: f32[1,512], index: 8, kind: input, shape index: {}]   ;;  %s8959_s9 = inlined_call_operand.vmem [shape: f32[8,256], index: 9, kind: output, shape index: {}]  }
   0x1   :  { %v35_v0 = vld [vmem:[%s8950_s0] sm:$0xff]  ;;  %v53_v1 = vld [vmem:[%s8950_s0 + $0x8] sm:$0xff]  ;;  %207 = vmatprep.mubr.f32.mxu0 %v6660_v3  ;;  %320 = vmatprep.mubr.f32.mxu1 %v6660_v3  ;;  %v84_v8 = vld [vmem:[%s8951_s1 + $0x18] sm:$0xff]  ;;  %s6663_s18 = smov 64   ;;  %vm4901_vm3 = vcmask 785920   ;;  %vm4908_vm4 = vcmask 1048320  }
   0x2   :  { %v82_v2 = vld [vmem:[%s8951_s1 + $0x8] sm:$0xff]  ;;  %54 = vst.msk [vmem:[#allocation2 + $0x20] sm:$0xff] %vm33_vm0, %v53_v1  ;;  %37 = vrot.lane.b32.xlu0 %v35_v0, %s6661_s15  ;;  %34 = vst.msk [vmem:[#allocation2] sm:$0xff] %vm33_vm0, %v35_v0  ;;  %49 = vrot.lane.b32.xlu1 %v35_v0, %s6662_s16  ;;  %v81_v5 = vld [vmem:[%s8951_s1] sm:$0xff] }
   0x3   :  { %v86_v4 = vld [vmem:[%s8951_s1 + $0x28] sm:$0xff]  ;;  %v85_v7 = vld [vmem:[%s8951_s1 + $0x20] sm:$0xff]  ;;  %v88_v9 = vld [vmem:[%s8951_s1 + $0x38] sm:$0xff] }
   0x4   :  { %v5118_v6 = vpack.c.bf16 %v86_v4, %v82_v2  ;;  %v5120_v10 = vpack.c.bf16 %v85_v7, %v81_v5  ;;  %v5126_v11 = vpack.c.bf16 %v88_v9, %v84_v8  ;;  %v83_v12 = vld [vmem:[%s8951_s1 + $0x10] sm:$0xff]  ;;  %v90_v14 = vld [vmem:[%s8951_s1 + $0x48] sm:$0xff]  ;;  %v89_v17 = vld [vmem:[%s8951_s1 + $0x40] sm:$0xff] }
   0x5   :  { %v87_v13 = vld [vmem:[%s8951_s1 + $0x30] sm:$0xff]  ;;  %v94_v16 = vld [vmem:[%s8951_s1 + $0x68] sm:$0xff]  ;;  %v93_v18 = vld [vmem:[%s8951_s1 + $0x60] sm:$0xff] }
   0x6   :  { %5119 = vmatprep.subr.bf16.mxu0 %v5118_v6  ;;  %v5128_v15 = vpack.c.bf16 %v87_v13, %v83_v12  ;;  %43 = vrot.lane.b32.xlu0 %v35_v0, %s6663_s18  ;;  %v5122_v19 = vpack.c.bf16 %v94_v16, %v90_v14  ;;  %v92_v20 = vld [vmem:[%s8951_s1 + $0x58] sm:$0xff]  ;;  %v5124_v22 = vpack.c.bf16 %v93_v18, %v89_v17  ;;  %v91_v24 = vld [vmem:[%s8951_s1 + $0x50] sm:$0xff]  ;;  %v413_v26 = vld [vmem:[%s8952_s2 + $0x8] sm:$0xff] }
   0x7   :  { %57 = vrot.lane.b32.xlu1 %v53_v1, %s6661_s15  ;;  %v96_v21 = vld [vmem:[%s8951_s1 + $0x78] sm:$0xff]  ;;  %5121 = vmatpush1.bf16.msra.mxu0 %v5120_v10  ;;  %v95_v25 = vld [vmem:[%s8951_s1 + $0x70] sm:$0xff]  ;;  %v417_v28 = vld [vmem:[%s8952_s2 + $0x28] sm:$0xff] }
   0x8   :  { %5127 = vmatprep.subr.bf16.mxu1 %v5126_v11  ;;  %v5130_v23 = vpack.c.bf16 %v96_v21, %v92_v20  ;;  %5123 = vmatprep.subr.bf16.mxu0 %v5122_v19  ;;  %v5132_v27 = vpack.c.bf16 %v95_v25, %v91_v24  ;;  %v412_v29 = vld [vmem:[%s8952_s2] sm:$0xff]  ;;  %v6790_v31 = vpack.c.bf16 %v417_v28, %v413_v26  ;;  %v415_v32 = vld [vmem:[%s8952_s2 + $0x18] sm:$0xff]  ;;  %v414_v36 = vld [vmem:[%s8952_s2 + $0x10] sm:$0xff] }
   0x9   :  { %5129 = vmatpush1.bf16.msra.mxu1 %v5128_v15  ;;  %v416_v30 = vld [vmem:[%s8952_s2 + $0x20] sm:$0xff]  ;;  %v419_v33 = vld [vmem:[%s8952_s2 + $0x38] sm:$0xff]  ;;  %v418_v37 = vld [vmem:[%s8952_s2 + $0x30] sm:$0xff] }
   0xa   :  { %5131 = vmatprep.subr.bf16.mxu1 %v5130_v23  ;;  %63 = vrot.lane.b32.xlu0 %v53_v1, %s6663_s18  ;;  %v73_v34 = vld [vmem:[#allocation2] sm:$0xff]  ;;  %v6800_v35 = vpack.c.bf16 %v419_v33, %v415_v32  ;;  %v6808_v38 = vpack.c.bf16 %v416_v30, %v412_v29  ;;  %v421_v39 = vld [vmem:[%s8952_s2 + $0x48] sm:$0xff]  ;;  %v6820_v42 = vpack.c.bf16 %v418_v37, %v414_v36  ;;  %v423_v44 = vld [vmem:[%s8952_s2 + $0x58] sm:$0xff] }
   0xb   :  { %69 = vrot.lane.b32.xlu1 %v53_v1, %s6662_s16  ;;  %5125 = vmatpush1.bf16.msra.mxu0 %v5124_v22  ;;  %v425_v40 = vld [vmem:[%s8952_s2 + $0x68] sm:$0xff]  ;;  %v420_v41 = vld [vmem:[%s8952_s2 + $0x40] sm:$0xff]  ;;  %v427_v45 = vld [vmem:[%s8952_s2 + $0x78] sm:$0xff] }
   0xc   :  { %5135 = vmatprep.subr.bf16.mxu0 %v6790_v31  ;;  %v424_v43 = vld [vmem:[%s8952_s2 + $0x60] sm:$0xff]  ;;  %v6832_v46 = vpack.c.bf16 %v425_v40, %v421_v39  ;;  %v422_v47 = vld [vmem:[%s8952_s2 + $0x50] sm:$0xff]  ;;  %v429_v49 = vld [vmem:[%s8952_s2 + $0x88] sm:$0xff]  ;;  %v6844_v50 = vpack.c.bf16 %v427_v45, %v423_v44 }
   0xd   :  { %5133 = vmatpush1.bf16.msra.mxu1 %v5132_v27  ;;  %v426_v48 = vld [vmem:[%s8952_s2 + $0x70] sm:$0xff]  ;;  %v433_v51 = vld [vmem:[%s8952_s2 + $0xa8] sm:$0xff]  ;;  %v6851_v52 = vpack.c.bf16 %v424_v43, %v420_v41  ;;  %v431_v53 = vld [vmem:[%s8952_s2 + $0x98] sm:$0xff] }
   0xe   :  { %5167 = vmatprep.subr.bf16.mxu1 %v6800_v35  ;;  %4948 = vmatmul.mubr.msk.f32.vlgmr.msra.gmra.mrb[0].mxu0 %vm33_vm0, %v73_v34  ;;  %v435_v54 = vld [vmem:[%s8952_s2 + $0xb8] sm:$0xff]  ;;  %v6861_v55 = vpack.c.bf16 %v426_v48, %v422_v47  ;;  %v6863_v56 = vpack.c.bf16 %v433_v51, %v429_v49  ;;  %v428_v57 = vld [vmem:[%s8952_s2 + $0x80] sm:$0xff]  ;;  %v430_v59 = vld [vmem:[%s8952_s2 + $0x90] sm:$0xff] }
   0xf   :  { %5137 = vmatpush1.bf16.msra.mxu0 %v6808_v38  ;;  %213 = vmatprep.mubr.f32.mxu0 %v6660_v3  ;;  %v432_v58 = vld [vmem:[%s8952_s2 + $0xa0] sm:$0xff]  ;;  %v6876_v60 = vpack.c.bf16 %v435_v54, %v431_v53  ;;  %v434_v61 = vld [vmem:[%s8952_s2 + $0xb0] sm:$0xff]  ;;  %v437_v62 = vld [vmem:[%s8952_s2 + $0xc8] sm:$0xff] }
  0x10   :  { %4956 = vmatmul.mubr.msk.f32.vlgmr.msra.gmra.mrb[0].mxu1 %vm33_vm0, %v73_v34  ;;  %5139 = vmatprep.subr.bf16.mxu0 %v6832_v46  ;;  %v441_v63 = vld [vmem:[%s8952_s2 + $0xe8] sm:$0xff]  ;;  %v439_v0 = vld [vmem:[%s8952_s2 + $0xd8] sm:$0xff]  ;;  %v6895_v2 = vpack.c.bf16 %v432_v58, %v428_v57  ;;  %v6899_v4 = vpack.c.bf16 %v434_v61, %v430_v59  ;;  %v436_v6 = vld [vmem:[%s8952_s2 + $0xc0] sm:$0xff] }
  0x11   :  { %5169 = vmatpush1.bf16.msra.mxu1 %v6820_v42  ;;  %326 = vmatprep.mubr.f32.mxu1 %v6660_v3  ;;  %v443_v1 = vld [vmem:[%s8952_s2 + $0xf8] sm:$0xff]  ;;  %v6901_v5 = vpack.c.bf16 %v441_v63, %v437_v62  ;;  %v440_v7 = vld [vmem:[%s8952_s2 + $0xe0] sm:$0xff]  ;;  %v438_v8 = vld [vmem:[%s8952_s2 + $0xd0] sm:$0xff] }
  0x12   :  { %5171 = vmatprep.subr.bf16.mxu1 %v6844_v50  ;;  %v6913_v9 = vpack.c.bf16 %v443_v1, %v439_v0  ;;  %v442_v10 = vld [vmem:[%s8952_s2 + $0xf0] sm:$0xff]  ;;  %v445_v11 = vld [vmem:[%s8952_s2 + $0x108] sm:$0xff]  ;;  %v447_v13 = vld [vmem:[%s8952_s2 + $0x118] sm:$0xff]  ;;  %v6931_v15 = vpack.c.bf16 %v440_v7, %v436_v6 }
  0x13   :  { %5141 = vmatpush1.bf16.msra.mxu0 %v6851_v52  ;;  %v449_v12 = vld [vmem:[%s8952_s2 + $0x128] sm:$0xff]  ;;  %v451_v14 = vld [vmem:[%s8952_s2 + $0x138] sm:$0xff]  ;;  %v6935_v16 = vpack.c.bf16 %v442_v10, %v438_v8  ;;  %v444_v18 = vld [vmem:[%s8952_s2 + $0x100] sm:$0xff] }
  0x14   :  { %5143 = vmatprep.subr.bf16.mxu0 %v6863_v56  ;;  %v6937_v17 = vpack.c.bf16 %v449_v12, %v445_v11  ;;  %v448_v19 = vld [vmem:[%s8952_s2 + $0x120] sm:$0xff]  ;;  %v446_v20 = vld [vmem:[%s8952_s2 + $0x110] sm:$0xff]  ;;  %v6949_v21 = vpack.c.bf16 %v451_v14, %v447_v13  ;;  %v453_v23 = vld [vmem:[%s8952_s2 + $0x148] sm:$0xff] }
  0x15   :  { %5173 = vmatpush1.bf16.msra.mxu1 %v6861_v55  ;;  %v450_v22 = vld [vmem:[%s8952_s2 + $0x130] sm:$0xff]  ;;  %v457_v24 = vld [vmem:[%s8952_s2 + $0x168] sm:$0xff]  ;;  %v455_v25 = vld [vmem:[%s8952_s2 + $0x158] sm:$0xff]  ;;  %v6967_v27 = vpack.c.bf16 %v448_v19, %v444_v18 }
  0x16   :  { %5175 = vmatprep.subr.bf16.mxu1 %v6876_v60  ;;  %v459_v26 = vld [vmem:[%s8952_s2 + $0x178] sm:$0xff]  ;;  %v6971_v28 = vpack.c.bf16 %v450_v22, %v446_v20  ;;  %v6973_v29 = vpack.c.bf16 %v457_v24, %v453_v23  ;;  %v452_v30 = vld [vmem:[%s8952_s2 + $0x140] sm:$0xff]  ;;  %v454_v33 = vld [vmem:[%s8952_s2 + $0x150] sm:$0xff] }
  0x17   :  { %5145 = vmatpush1.bf16.msra.mxu0 %v6895_v2  ;;  %v456_v32 = vld [vmem:[%s8952_s2 + $0x160] sm:$0xff]  ;;  %v6985_v34 = vpack.c.bf16 %v459_v26, %v455_v25  ;;  %v458_v36 = vld [vmem:[%s8952_s2 + $0x170] sm:$0xff]  ;;  %v461_v37 = vld [vmem:[%s8952_s2 + $0x188] sm:$0xff] }
  0x18   :  { %5147 = vmatprep.subr.bf16.mxu0 %v6901_v5  ;;  %v465_v39 = vld [vmem:[%s8952_s2 + $0x1a8] sm:$0xff]  ;;  %v463_v40 = vld [vmem:[%s8952_s2 + $0x198] sm:$0xff]  ;;  %v7003_v43 = vpack.c.bf16 %v456_v32, %v452_v30  ;;  %v7007_v44 = vpack.c.bf16 %v458_v36, %v454_v33  ;;  %v460_v47 = vld [vmem:[%s8952_s2 + $0x180] sm:$0xff]  ;;  %v99_v33 = vlaneseq }
  0x19   :  { %5177 = vmatpush1.bf16.msra.mxu1 %v6899_v4  ;;  %v467_v41 = vld [vmem:[%s8952_s2 + $0x1b8] sm:$0xff]  ;;  %v7009_v45 = vpack.c.bf16 %v465_v39, %v461_v37  ;;  %v464_v48 = vld [vmem:[%s8952_s2 + $0x1a0] sm:$0xff]  ;;  %v462_v49 = vld [vmem:[%s8952_s2 + $0x190] sm:$0xff] }
  0x1a   :  { %5179 = vmatprep.subr.bf16.mxu1 %v6913_v9  ;;  %v7021_v51 = vpack.c.bf16 %v467_v41, %v463_v40  ;;  %v466_v53 = vld [vmem:[%s8952_s2 + $0x1b0] sm:$0xff]  ;;  %v469_v54 = vld [vmem:[%s8952_s2 + $0x1c8] sm:$0xff]  ;;  %v471_v58 = vld [vmem:[%s8952_s2 + $0x1d8] sm:$0xff]  ;;  %v7039_v61 = vpack.c.bf16 %v464_v48, %v460_v47  ;;  %v7144_v36 = vshrl.u32 %v99_v33, 7 }
  0x1b   :  { %5149 = vmatpush1.bf16.msra.mxu0 %v6931_v15  ;;  %v473_v57 = vld [vmem:[%s8952_s2 + $0x1e8] sm:$0xff]  ;;  %v475_v59 = vld [vmem:[%s8952_s2 + $0x1f8] sm:$0xff]  ;;  %v7043_v62 = vpack.c.bf16 %v466_v53, %v462_v49  ;;  %v468_v0 = vld [vmem:[%s8952_s2 + $0x1c0] sm:$0xff] }
  0x1c   :  { %5151 = vmatprep.subr.bf16.mxu0 %v6937_v17  ;;  %v7045_v63 = vpack.c.bf16 %v473_v57, %v469_v54  ;;  %v472_v1 = vld [vmem:[%s8952_s2 + $0x1e0] sm:$0xff]  ;;  %v7054_v6 = vpack.c.bf16 %v475_v59, %v471_v58  ;;  %v470_v7 = vld [vmem:[%s8952_s2 + $0x1d0] sm:$0xff]  ;;  %v101_v37 = vsub.s32 0, %v7144_v36  ;;  %v105_v40 = vsub.s32 1, %v7144_v36 }
  0x1d   :  { %5181 = vmatpush1.bf16.msra.mxu1 %v6935_v16  ;;  %v474_v8 = vld [vmem:[%s8952_s2 + $0x1f0] sm:$0xff]  ;;  %v7063_v10 = vpack.c.bf16 %v472_v1, %v468_v0  ;;  %v77_v25 = vld [vmem:[#allocation2 + $0x20] sm:$0xff]  ;;  %v113_v48 = vsub.s32 3, %v7144_v36  ;;  %v109_v1 = vsub.s32 2, %v7144_v36 }
  0x1e   :  { %5183 = vmatprep.subr.bf16.mxu1 %v6949_v21  ;;  %v7067_v11 = vpack.c.bf16 %v474_v8, %v470_v7  ;;  %v97_v39 = vld [vmem:[%s8953_s3] sm:$0xf] }
  0x1f   :  { %5153 = vmatpush1.bf16.msra.mxu0 %v6967_v27  ;;  %v7153_v41 = vrot.slane %v97_v39, %v101_v37  ;;  %v7164_v0 = vrot.slane %v97_v39, %v113_v48  ;;  %v7170_v8 = vrot.slane %v97_v39, %v109_v1 }
  0x20   :  { %5155 = vmatprep.subr.bf16.mxu0 %v6973_v29 }
  0x21   :  { %5185 = vmatpush1.bf16.msra.mxu1 %v6971_v28 }
  0x22   :  { %5187 = vmatprep.subr.bf16.mxu1 %v6985_v34 }
  0x23   :  { %5157 = vmatpush1.bf16.msra.mxu0 %v7003_v43 }
  0x24   :  { %5159 = vmatprep.subr.bf16.mxu0 %v7009_v45 }
  0x25   :  { %5189 = vmatpush1.bf16.msra.mxu1 %v7007_v44 }
  0x26   :  { %5191 = vmatprep.subr.bf16.mxu1 %v7021_v51 }
  0x27   :  { %5161 = vmatpush1.bf16.msra.mxu0 %v7039_v61 }
  0x28   :  { %5163 = vmatprep.subr.bf16.mxu0 %v7045_v63 }
  0x29   :  { %5193 = vmatpush1.bf16.msra.mxu1 %v7043_v62 }
  0x2a   :  { %5195 = vmatprep.subr.bf16.mxu1 %v7054_v6 }
  0x2b   :  { %5165 = vmatpush1.bf16.msra.mxu0 %v7063_v10 }
  0x2c   :  { %5199 = vmatprep.subr.bf16.mxu0 %v6790_v31 }
  0x2d   :  { %5197 = vmatpush1.bf16.msra.mxu1 %v7067_v11 }
  0x2e   :  { %5231 = vmatprep.subr.bf16.mxu1 %v6800_v35 }
  0x74   :  { %v38_v12 = vpop.permute.xlu0 %37  ;;  %v50_v13 = vpop.permute.xlu1 %49 }
  0x75   :  { %40 = vst.msk [vmem:[#allocation2 + $0x8] sm:$0xff] %vm33_vm0, %v38_v12  ;;  %52 = vst.msk [vmem:[#allocation2 + $0x18] sm:$0xff] %vm33_vm0, %v50_v13 }
  0x78   :  { %v44_v14 = vpop.permute.xlu0 %43 }
  0x79   :  { %v58_v18 = vpop.permute.xlu1 %57  ;;  %46 = vst.msk [vmem:[#allocation2 + $0x10] sm:$0xff] %vm33_vm0, %v44_v14 }
  0x7a   :  { %60 = vst.msk [vmem:[#allocation2 + $0x28] sm:$0xff] %vm33_vm0, %v58_v18 }
  0x7c   :  { %v74_v19 = vld [vmem:[#allocation2 + $0x8] sm:$0xff]  ;;  %v64_v20 = vpop.permute.xlu0 %63  ;;  %v76_v24 = vld [vmem:[#allocation2 + $0x18] sm:$0xff] }
  0x7d   :  { %v70_v22 = vpop.permute.xlu1 %69  ;;  %4949 = vmatmul.mubr.msk.f32.gmra.mrb[2].mxu0 %vm33_vm0, %v74_v19  ;;  %4957 = vmatmul.mubr.msk.f32.gmra.mrb[2].mxu1 %vm33_vm0, %v74_v19  ;;  %66 = vst.msk [vmem:[#allocation2 + $0x30] sm:$0xff] %vm33_vm0, %v64_v20 }
  0x7e   :  { %72 = vst.msk [vmem:[#allocation2 + $0x38] sm:$0xff] %vm33_vm0, %v70_v22  ;;  %219 = vmatprep.mubr.f32.mxu0 %v6660_v3  ;;  %332 = vmatprep.mubr.f32.mxu1 %v6660_v3 }
  0x80   :  { %v75_v23 = vld [vmem:[#allocation2 + $0x10] sm:$0xff] }
  0x81   :  { %4950 = vmatmul.mubr.msk.f32.gmra.mrb[4].mxu0 %vm33_vm0, %v75_v23  ;;  %4958 = vmatmul.mubr.msk.f32.gmra.mrb[4].mxu1 %vm33_vm0, %v75_v23  ;;  %v78_v26 = vld [vmem:[#allocation2 + $0x28] sm:$0xff] }
  0x82   :  { %225 = vmatprep.mubr.f32.mxu0 %v6660_v3  ;;  %338 = vmatprep.mubr.f32.mxu1 %v6660_v3 }
  0x84   :  { %v79_v30 = vld [vmem:[#allocation2 + $0x30] sm:$0xff] }
  0x85   :  { %4951 = vmatmul.mubr.msk.f32.gmra.mrb[6].mxu0 %vm33_vm0, %v76_v24  ;;  %4959 = vmatmul.mubr.msk.f32.gmra.mrb[6].mxu1 %vm33_vm0, %v76_v24  ;;  %v80_v32 = vld [vmem:[#allocation2 + $0x38] sm:$0xff] }
  0x86   :  { %231 = vmatprep.mubr.f32.mxu0 %v6660_v3  ;;  %344 = vmatprep.mubr.f32.mxu1 %v6660_v3 }
  0x89   :  { %4952 = vmatmul.mubr.msk.f32.gmra.mrb[8].mxu0 %vm33_vm0, %v77_v25  ;;  %4960 = vmatmul.mubr.msk.f32.gmra.mrb[8].mxu1 %vm33_vm0, %v77_v25 }
  0x8a   :  { %237 = vmatprep.mubr.f32.mxu0 %v6660_v3  ;;  %350 = vmatprep.mubr.f32.mxu1 %v6660_v3 }
  0x8d   :  { %4953 = vmatmul.mubr.msk.f32.gmra.mrb[10].mxu0 %vm33_vm0, %v78_v26  ;;  %4961 = vmatmul.mubr.msk.f32.gmra.mrb[10].mxu1 %vm33_vm0, %v78_v26 }
  0x8e   :  { %243 = vmatprep.mubr.f32.mxu0 %v6660_v3  ;;  %356 = vmatprep.mubr.f32.mxu1 %v6660_v3 }
  0x91   :  { %4954 = vmatmul.mubr.msk.f32.gmra.mrb[12].mxu0 %vm33_vm0, %v79_v30  ;;  %4962 = vmatmul.mubr.msk.f32.gmra.mrb[12].mxu1 %vm33_vm0, %v79_v30 }
  0x92   :  { %249 = vmatprep.mubr.f32.mxu0 %v6660_v3  ;;  %362 = vmatprep.mubr.f32.mxu1 %v6660_v3 }
  0x95   :  { %4955 = vmatmul.mubr.msk.f32.gmra.mrb[14].mxu0 %vm33_vm0, %v80_v32  ;;  %4963 = vmatmul.mubr.msk.f32.gmra.mrb[14].mxu1 %vm33_vm0, %v80_v32 }
  0x96   :  { %540 = vmatprep.mubr.f32.mxu0 %v6660_v3  ;;  %611 = vmatprep.mubr.f32.mxu1 %v6660_v3 }
  0x99   :  { %541 = vmatmul.mubr.f32.vlgmr.msra.gmra.mrb[0].mxu0 %v6660_v3  ;;  %612 = vmatmul.mubr.f32.vlgmr.msra.gmra.mrb[0].mxu1 %v6660_v3 }
  0x9a   :  { %5201 = vmatpush1.bf16.msra.mxu0 %v6808_v38  ;;  %5233 = vmatpush1.bf16.msra.mxu1 %v6820_v42 }
  0x9b   :  { %5203 = vmatprep.subr.bf16.mxu0 %v6832_v46  ;;  %5235 = vmatprep.subr.bf16.mxu1 %v6844_v50 }
  0x9c   :  { %786 = vmatprep.mubr.f32.mxu0 %v6660_v3  ;;  %857 = vmatprep.mubr.f32.mxu1 %v6660_v3 }
  0x9e   :  { %5205 = vmatpush1.bf16.msra.mxu0 %v6851_v52  ;;  %5237 = vmatpush1.bf16.msra.mxu1 %v6861_v55 }
  0x9f   :  { %5207 = vmatprep.subr.bf16.mxu0 %v6863_v56  ;;  %5239 = vmatprep.subr.bf16.mxu1 %v6876_v60 }
  0xa2   :  { %5209 = vmatpush1.bf16.msra.mxu0 %v6895_v2  ;;  %5241 = vmatpush1.bf16.msra.mxu1 %v6899_v4 }
  0xa3   :  { %5211 = vmatprep.subr.bf16.mxu0 %v6901_v5  ;;  %5243 = vmatprep.subr.bf16.mxu1 %v6913_v9 }
  0xa6   :  { %5213 = vmatpush1.bf16.msra.mxu0 %v6931_v15  ;;  %5245 = vmatpush1.bf16.msra.mxu1 %v6935_v16 }
  0xa7   :  { %5215 = vmatprep.subr.bf16.mxu0 %v6937_v17  ;;  %5247 = vmatprep.subr.bf16.mxu1 %v6949_v21 }
  0xaa   :  { %5217 = vmatpush1.bf16.msra.mxu0 %v6967_v27  ;;  %5249 = vmatpush1.bf16.msra.mxu1 %v6971_v28 }
  0xab   :  { %5219 = vmatprep.subr.bf16.mxu0 %v6973_v29  ;;  %5251 = vmatprep.subr.bf16.mxu1 %v6985_v34 }
  0xae   :  { %5221 = vmatpush1.bf16.msra.mxu0 %v7003_v43  ;;  %5253 = vmatpush1.bf16.msra.mxu1 %v7007_v44 }
  0xaf   :  { %5223 = vmatprep.subr.bf16.mxu0 %v7009_v45  ;;  %5255 = vmatprep.subr.bf16.mxu1 %v7021_v51 }
  0xb2   :  { %5225 = vmatpush1.bf16.msra.mxu0 %v7039_v61  ;;  %5257 = vmatpush1.bf16.msra.mxu1 %v7043_v62 }
  0xb3   :  { %5227 = vmatprep.subr.bf16.mxu0 %v7045_v63  ;;  %5259 = vmatprep.subr.bf16.mxu1 %v7054_v6 }
  0xb6   :  { %5229 = vmatpush1.bf16.msra.mxu0 %v7063_v10  ;;  %5261 = vmatpush1.bf16.msra.mxu1 %v7067_v11 }
  0xb7   :  { %5263 = vmatprep.subr.bf16.mxu0 %v6790_v31  ;;  %5295 = vmatprep.subr.bf16.mxu1 %v6800_v35  ;;  %v7157_v31 = vrot.slane %v97_v39, %v105_v40 }
 0x16c   :  { %v542_v35 = vpop.f32.mrb[0].mxu0  ;;  %v613_v47 = vpop.f32.mrb[0].mxu1 }
 0x16d   :  { %v6270_v49 = vadd.f32 %v542_v35, %v7153_v41  ;;  %v544_v53 = vpop.f32.mrb[1].mxu0  ;;  %v615_v54 = vpop.f32.mrb[1].mxu1  ;;  %v6286_v13 = vadd.f32 %v613_v47, %v7170_v8 }
 0x16e   :  { %v6271_v57 = vadd.f32 %v544_v53, %v7157_v31  ;;  %v6287_v7 = vadd.f32 %v615_v54, %v7164_v0 }
 0x16f   :  { %v4964_v58 = vmul.f32 -1.442695, %v6270_v49 }
 0x170   :  { %v4965_v59 = vmul.f32 -1.442695, %v6271_v57  ;;  %v4966_v12 = vmul.f32 -1.442695, %v6287_v7 }
 0x171   :  { %6404 = vpow2.f32 %v4964_v58 }
 0x172   :  { %6406 = vpow2.f32 %v4965_v59 }
 0x173   :  { %6408 = vpow2.f32 %v4966_v12 }
 0x174   :  { %6410 = vtanh.f32 %v6286_v13 }
 0x17b   :  { %v6405_v14 = vpop.eup %6404 }
 0x17c   :  { %v6407_v18 = vpop.eup %6406  ;;  %v625_v19 = vadd.f32 1.0, %v6405_v14 }
 0x17d   :  { %v631_v20 = vadd.f32 1.0, %v6407_v18  ;;  %v6409_v22 = vpop.eup %6408 }
 0x17e   :  { %6412 = vrcp.f32 %v625_v19  ;;  %v6411_v23 = vpop.eup %6410  ;;  %v638_v30 = vadd.f32 1.0, %v6409_v22 }
 0x17f   :  { %6414 = vrcp.f32 %v631_v20 }
 0x180   :  { %6416 = vrcp.f32 %v638_v30  ;;  %v1157_v30 = vld [vmem:[%s8952_s2 + $0x28] sm:$0xff] }
 0x188   :  { %v6413_v24 = vpop.eup %6412 }
 0x189   :  { %v6415_v25 = vpop.eup %6414  ;;  %v642_v26 = vmul.f32 %v6413_v24, %v6411_v23 }
 0x18a   :  { %v641_v32 = vmul.f32 0.0, %v6415_v25  ;;  %v6417_v39 = vpop.eup %6416 }
 0x18c   :  { %v7173_v33 = vadd.f32 %v642_v26, %v641_v32  ;;  %v1153_v26 = vld [vmem:[%s8952_s2 + $0x8] sm:$0xff]  ;;  %v1155_v32 = vld [vmem:[%s8952_s2 + $0x18] sm:$0xff] }
 0x18e   :  { %6418 = vtanh.f32 %v7173_v33 }
 0x198   :  { %v6419_v35 = vpop.eup %6418 }
 0x199   :  { %v7176_v47 = vmul.f32 %v6419_v35, %v6417_v39  ;;  %v1159_v39 = vld [vmem:[%s8952_s2 + $0x38] sm:$0xff]  ;;  %v1152_v35 = vld [vmem:[%s8952_s2] sm:$0xff] }
 0x19b   :  { %787 = vmatmul.mubr.f32.vlgmr.msra.gmra.mrb[2].mxu0 %v7176_v47  ;;  %858 = vmatmul.mubr.f32.vlgmr.msra.gmra.mrb[2].mxu1 %v7176_v47 }
 0x19c   :  { %5265 = vmatpush1.bf16.msra.mxu0 %v6808_v38  ;;  %5297 = vmatpush1.bf16.msra.mxu1 %v6820_v42 }
 0x19d   :  { %5267 = vmatprep.subr.bf16.mxu0 %v6832_v46  ;;  %5299 = vmatprep.subr.bf16.mxu1 %v6844_v50 }
 0x19e   :  { %1033 = vmatprep.mubr.f32.mxu0 %v6660_v3  ;;  %1104 = vmatprep.mubr.f32.mxu1 %v6660_v3 }
 0x1a0   :  { %5269 = vmatpush1.bf16.msra.mxu0 %v6851_v52  ;;  %5301 = vmatpush1.bf16.msra.mxu1 %v6861_v55 }
 0x1a1   :  { %5271 = vmatprep.subr.bf16.mxu0 %v6863_v56  ;;  %5303 = vmatprep.subr.bf16.mxu1 %v6876_v60 }
 0x1a4   :  { %5273 = vmatpush1.bf16.msra.mxu0 %v6895_v2  ;;  %5305 = vmatpush1.bf16.msra.mxu1 %v6899_v4 }
 0x1a5   :  { %5275 = vmatprep.subr.bf16.mxu0 %v6901_v5  ;;  %5307 = vmatprep.subr.bf16.mxu1 %v6913_v9 }
 0x1a8   :  { %5277 = vmatpush1.bf16.msra.mxu0 %v6931_v15  ;;  %5309 = vmatpush1.bf16.msra.mxu1 %v6935_v16 }
 0x1a9   :  { %5279 = vmatprep.subr.bf16.mxu0 %v6937_v17  ;;  %5311 = vmatprep.subr.bf16.mxu1 %v6949_v21 }
 0x1ac   :  { %5281 = vmatpush1.bf16.msra.mxu0 %v6967_v27  ;;  %5313 = vmatpush1.bf16.msra.mxu1 %v6971_v28 }
 0x1ad   :  { %5283 = vmatprep.subr.bf16.mxu0 %v6973_v29  ;;  %5315 = vmatprep.subr.bf16.mxu1 %v6985_v34 }
 0x1b0   :  { %5285 = vmatpush1.bf16.msra.mxu0 %v7003_v43  ;;  %5317 = vmatpush1.bf16.msra.mxu1 %v7007_v44 }
 0x1b1   :  { %5287 = vmatprep.subr.bf16.mxu0 %v7009_v45  ;;  %5319 = vmatprep.subr.bf16.mxu1 %v7021_v51 }
 0x1b4   :  { %5289 = vmatpush1.bf16.msra.mxu0 %v7039_v61  ;;  %5321 = vmatpush1.bf16.msra.mxu1 %v7043_v62 }
 0x1b5   :  { %5291 = vmatprep.subr.bf16.mxu0 %v7045_v63  ;;  %5323 = vmatprep.subr.bf16.mxu1 %v7054_v6 }
 0x1b8   :  { %5293 = vmatpush1.bf16.msra.mxu0 %v7063_v10  ;;  %5325 = vmatpush1.bf16.msra.mxu1 %v7067_v11 }
 0x26e   :  { %v788_v38 = vpop.f32.mrb[2].mxu0  ;;  %v859_v42 = vpop.f32.mrb[2].mxu1 }
 0x26f   :  { %v6272_v46 = vadd.f32 %v788_v38, %v7153_v41  ;;  %v790_v50 = vpop.f32.mrb[3].mxu0  ;;  %v861_v52 = vpop.f32.mrb[3].mxu1  ;;  %v6288_v53 = vadd.f32 %v859_v42, %v7170_v8  ;;  %v1156_v38 = vld [vmem:[%s8952_s2 + $0x20] sm:$0xff]  ;;  %v7246_v42 = vpack.c.bf16 %v1159_v39, %v1155_v32 }
 0x270   :  { %v6273_v55 = vadd.f32 %v790_v50, %v7157_v31  ;;  %v6289_v4 = vadd.f32 %v861_v52, %v7164_v0  ;;  %v1154_v50 = vld [vmem:[%s8952_s2 + $0x10] sm:$0xff] }
 0x271   :  { %v4967_v56 = vmul.f32 -1.442695, %v6272_v46  ;;  %v7248_v46 = vpack.c.bf16 %v1156_v38, %v1152_v35  ;;  %v1158_v52 = vld [vmem:[%s8952_s2 + $0x30] sm:$0xff]  ;;  %5359 = vmatprep.subr.bf16.mxu1 %v7246_v42 }
 0x272   :  { %v4968_v2 = vmul.f32 -1.442695, %v6273_v55  ;;  %v4969_v49 = vmul.f32 -1.442695, %v6289_v4  ;;  %v7257_v55 = vpack.c.bf16 %v1158_v52, %v1154_v50  ;;  %v1163_v4 = vld [vmem:[%s8952_s2 + $0x58] sm:$0xff] }
 0x273   :  { %6420 = vpow2.f32 %v4967_v56  ;;  %v1161_v56 = vld [vmem:[%s8952_s2 + $0x48] sm:$0xff] }
 0x274   :  { %6422 = vpow2.f32 %v4968_v2  ;;  %v1165_v2 = vld [vmem:[%s8952_s2 + $0x68] sm:$0xff] }
 0x275   :  { %6424 = vpow2.f32 %v4969_v49  ;;  %v7271_v49 = vpack.c.bf16 %v1165_v2, %v1161_v56  ;;  %v1422_v56 = vld [vmem:[%s8952_s2 + $0xb8] sm:$0xff] }
 0x276   :  { %6426 = vtanh.f32 %v6288_v53  ;;  %v1167_v53 = vld [vmem:[%s8952_s2 + $0x78] sm:$0xff] }
 0x27d   :  { %v6421_v54 = vpop.eup %6420 }
 0x27e   :  { %v6423_v57 = vpop.eup %6422  ;;  %v871_v58 = vadd.f32 1.0, %v6421_v54  ;;  %v1160_v54 = vld [vmem:[%s8952_s2 + $0x40] sm:$0xff] }
 0x27f   :  { %v877_v59 = vadd.f32 1.0, %v6423_v57  ;;  %v6425_v7 = vpop.eup %6424  ;;  %v1164_v57 = vld [vmem:[%s8952_s2 + $0x60] sm:$0xff] }
 0x280   :  { %6428 = vrcp.f32 %v871_v58  ;;  %v6427_v12 = vpop.eup %6426  ;;  %v884_v19 = vadd.f32 1.0, %v6425_v7  ;;  %v7282_v58 = vpack.c.bf16 %v1167_v53, %v1163_v4  ;;  %v1162_v7 = vld [vmem:[%s8952_s2 + $0x50] sm:$0xff]  ;;  %v1424_v4 = vld [vmem:[%s8952_s2 + $0xc8] sm:$0xff] }
 0x281   :  { %6430 = vrcp.f32 %v877_v59  ;;  %v7284_v59 = vpack.c.bf16 %v1164_v57, %v1160_v54  ;;  %v1428_v53 = vld [vmem:[%s8952_s2 + $0xe8] sm:$0xff]  ;;  %v1426_v54 = vld [vmem:[%s8952_s2 + $0xd8] sm:$0xff] }
 0x282   :  { %6432 = vrcp.f32 %v884_v19  ;;  %v7389_v57 = vpack.c.bf16 %v1428_v53, %v1424_v4  ;;  %v1450_v4 = vld [vmem:[%s8952_s2 + $0x198] sm:$0xff] }
 0x283   :  { %v1454_v53 = vld [vmem:[%s8952_s2 + $0x1b8] sm:$0xff] }
 0x28a   :  { %v6429_v13 = vpop.eup %6428 }
 0x28b   :  { %v6431_v14 = vpop.eup %6430  ;;  %v888_v18 = vmul.f32 %v6429_v13, %v6427_v12  ;;  %v1166_v12 = vld [vmem:[%s8952_s2 + $0x70] sm:$0xff] }
 0x28c   :  { %v887_v20 = vmul.f32 %v6431_v14, %v7173_v33  ;;  %v6433_v23 = vpop.eup %6432  ;;  %v7235_v33 = vpack.c.bf16 %v1157_v30, %v1153_v26  ;;  %v7293_v13 = vpack.c.bf16 %v1166_v12, %v1162_v7  ;;  %v1169_v14 = vld [vmem:[%s8952_s2 + $0x88] sm:$0xff]  ;;  %v1174_v30 = vld [vmem:[%s8952_s2 + $0xb0] sm:$0xff]  ;;  %v1430_v7 = vld [vmem:[%s8952_s2 + $0xf8] sm:$0xff] }
 0x28d   :  { %v1423_v12 = vld [vmem:[%s8952_s2 + $0xc0] sm:$0xff] }
 0x28e   :  { %v7217_v22 = vadd.f32 %v888_v18, %v887_v20  ;;  %5327 = vmatprep.subr.bf16.mxu0 %v7235_v33  ;;  %v1173_v18 = vld [vmem:[%s8952_s2 + $0xa8] sm:$0xff]  ;;  %v1168_v20 = vld [vmem:[%s8952_s2 + $0x80] sm:$0xff] }
 0x28f   :  { %v7304_v19 = vpack.c.bf16 %v1173_v18, %v1169_v14  ;;  %v1427_v14 = vld [vmem:[%s8952_s2 + $0xe0] sm:$0xff]  ;;  %v7400_v18 = vpack.c.bf16 %v1430_v7, %v1426_v54  ;;  %v7500_v7 = vpack.c.bf16 %v1454_v53, %v1450_v4 }
 0x290   :  { %6434 = vtanh.f32 %v7217_v22 }
 0x29a   :  { %v6435_v24 = vpop.eup %6434 }
 0x29b   :  { %v7220_v25 = vmul.f32 %v6435_v24, %v6433_v23  ;;  %v1172_v23 = vld [vmem:[%s8952_s2 + $0xa0] sm:$0xff]  ;;  %v1170_v24 = vld [vmem:[%s8952_s2 + $0x90] sm:$0xff] }
 0x29c   :  { %v7316_v26 = vpack.c.bf16 %v1172_v23, %v1168_v20  ;;  %v7322_v32 = vpack.c.bf16 %v1174_v30, %v1170_v24  ;;  %v7402_v20 = vpack.c.bf16 %v1427_v14, %v1423_v12  ;;  %v1425_v23 = vld [vmem:[%s8952_s2 + $0xd0] sm:$0xff]  ;;  %v1447_v12 = vld [vmem:[%s8952_s2 + $0x180] sm:$0xff] }
 0x29d   :  { %1034 = vmatmul.mubr.f32.vlgmr.msra.gmra.mrb[4].mxu0 %v7220_v25  ;;  %1105 = vmatmul.mubr.f32.vlgmr.msra.gmra.mrb[4].mxu1 %v7220_v25  ;;  %v1429_v24 = vld [vmem:[%s8952_s2 + $0xf0] sm:$0xff]  ;;  %v1451_v14 = vld [vmem:[%s8952_s2 + $0x1a0] sm:$0xff] }
 0x29e   :  { %1280 = vmatprep.mubr.f32.mxu0 %v6660_v3  ;;  %1351 = vmatprep.mubr.f32.mxu1 %v6660_v3  ;;  %v7411_v30 = vpack.c.bf16 %v1429_v24, %v1425_v23  ;;  %v1449_v23 = vld [vmem:[%s8952_s2 + $0x190] sm:$0xff]  ;;  %v7512_v24 = vpack.c.bf16 %v1451_v14, %v1447_v12 }
 0x29f   :  { %5329 = vmatpush1.bf16.msra.mxu0 %v7248_v46  ;;  %5361 = vmatpush1.bf16.msra.mxu1 %v7257_v55 }
 0x2a0   :  { %5331 = vmatprep.subr.bf16.mxu0 %v7271_v49  ;;  %5363 = vmatprep.subr.bf16.mxu1 %v7282_v58 }
 0x2a3   :  { %5333 = vmatpush1.bf16.msra.mxu0 %v7284_v59  ;;  %5365 = vmatpush1.bf16.msra.mxu1 %v7293_v13 }
 0x2a4   :  { %5367 = vmatprep.subr.bf16.mxu1 %v6876_v60  ;;  %5335 = vmatprep.subr.bf16.mxu0 %v7304_v19 }
 0x2a7   :  { %5337 = vmatpush1.bf16.msra.mxu0 %v7316_v26  ;;  %5369 = vmatpush1.bf16.msra.mxu1 %v7322_v32 }
 0x2a8   :  { %5339 = vmatprep.subr.bf16.mxu0 %v6901_v5  ;;  %5371 = vmatprep.subr.bf16.mxu1 %v6913_v9 }
 0x2ab   :  { %5341 = vmatpush1.bf16.msra.mxu0 %v6931_v15  ;;  %5373 = vmatpush1.bf16.msra.mxu1 %v6935_v16 }
 0x2ac   :  { %5343 = vmatprep.subr.bf16.mxu0 %v6937_v17  ;;  %5375 = vmatprep.subr.bf16.mxu1 %v6949_v21 }
 0x2af   :  { %5345 = vmatpush1.bf16.msra.mxu0 %v6967_v27  ;;  %5377 = vmatpush1.bf16.msra.mxu1 %v6971_v28 }
 0x2b0   :  { %5347 = vmatprep.subr.bf16.mxu0 %v6973_v29  ;;  %5379 = vmatprep.subr.bf16.mxu1 %v6985_v34 }
 0x2b3   :  { %5349 = vmatpush1.bf16.msra.mxu0 %v7003_v43  ;;  %5381 = vmatpush1.bf16.msra.mxu1 %v7007_v44 }
 0x2b4   :  { %5351 = vmatprep.subr.bf16.mxu0 %v7009_v45  ;;  %5383 = vmatprep.subr.bf16.mxu1 %v7021_v51 }
 0x2b7   :  { %5353 = vmatpush1.bf16.msra.mxu0 %v7039_v61  ;;  %5385 = vmatpush1.bf16.msra.mxu1 %v7043_v62 }
 0x2b8   :  { %5355 = vmatprep.subr.bf16.mxu0 %v7045_v63  ;;  %5387 = vmatprep.subr.bf16.mxu1 %v7054_v6 }
 0x2bb   :  { %5357 = vmatpush1.bf16.msra.mxu0 %v7063_v10  ;;  %5389 = vmatpush1.bf16.msra.mxu1 %v7067_v11 }
 0x2bc   :  { %5391 = vmatprep.subr.bf16.mxu0 %v7235_v33  ;;  %5423 = vmatprep.subr.bf16.mxu1 %v7246_v42 }
 0x370   :  { %v1035_v60 = vpop.f32.mrb[4].mxu0  ;;  %v1106_v5 = vpop.f32.mrb[4].mxu1 }
 0x371   :  { %v6274_v9 = vadd.f32 %v1035_v60, %v7153_v41  ;;  %v1037_v15 = vpop.f32.mrb[5].mxu0  ;;  %v1108_v16 = vpop.f32.mrb[5].mxu1  ;;  %v6290_v34 = vadd.f32 %v1106_v5, %v7170_v8  ;;  %v1432_v60 = vld [vmem:[%s8952_s2 + $0x108] sm:$0xff] }
 0x372   :  { %v6275_v17 = vadd.f32 %v1037_v15, %v7157_v31  ;;  %v6291_v28 = vadd.f32 %v1108_v16, %v7164_v0  ;;  %v1436_v5 = vld [vmem:[%s8952_s2 + $0x128] sm:$0xff]  ;;  %v1438_v16 = vld [vmem:[%s8952_s2 + $0x138] sm:$0xff] }
 0x373   :  { %v4970_v21 = vmul.f32 -1.442695, %v6274_v9  ;;  %v1434_v9 = vld [vmem:[%s8952_s2 + $0x118] sm:$0xff]  ;;  %v7425_v15 = vpack.c.bf16 %v1436_v5, %v1432_v60  ;;  %v1453_v60 = vld [vmem:[%s8952_s2 + $0x1b0] sm:$0xff]  ;;  %v1456_v5 = vld [vmem:[%s8952_s2 + $0x1c8] sm:$0xff] }
 0x374   :  { %v4971_v27 = vmul.f32 -1.442695, %v6275_v17  ;;  %v4972_v29 = vmul.f32 -1.442695, %v6291_v28  ;;  %v1431_v17 = vld [vmem:[%s8952_s2 + $0x100] sm:$0xff] }
 0x375   :  { %6436 = vpow2.f32 %v4970_v21  ;;  %v1435_v21 = vld [vmem:[%s8952_s2 + $0x120] sm:$0xff] }
 0x376   :  { %6438 = vpow2.f32 %v4971_v27  ;;  %v7436_v27 = vpack.c.bf16 %v1438_v16, %v1434_v9  ;;  %v7438_v28 = vpack.c.bf16 %v1435_v21, %v1431_v17  ;;  %v1460_v9 = vld [vmem:[%s8952_s2 + $0x1e8] sm:$0xff]  ;;  %v7525_v16 = vpack.c.bf16 %v1453_v60, %v1449_v23  ;;  %v1458_v21 = vld [vmem:[%s8952_s2 + $0x1d8] sm:$0xff] }
 0x377   :  { %6440 = vpow2.f32 %v4972_v29  ;;  %v1433_v29 = vld [vmem:[%s8952_s2 + $0x110] sm:$0xff]  ;;  %v7527_v17 = vpack.c.bf16 %v1460_v9, %v1456_v5 }
 0x378   :  { %6442 = vtanh.f32 %v6290_v34  ;;  %v1437_v34 = vld [vmem:[%s8952_s2 + $0x130] sm:$0xff] }
 0x37f   :  { %v6437_v43 = vpop.eup %6436 }
 0x380   :  { %v6439_v44 = vpop.eup %6438  ;;  %v1118_v45 = vadd.f32 1.0, %v6437_v43  ;;  %v7447_v43 = vpack.c.bf16 %v1437_v34, %v1433_v29  ;;  %v1462_v29 = vld [vmem:[%s8952_s2 + $0x1f8] sm:$0xff]  ;;  %v1455_v34 = vld [vmem:[%s8952_s2 + $0x1c0] sm:$0xff] }
 0x381   :  { %v1124_v51 = vadd.f32 1.0, %v6439_v44  ;;  %v6441_v61 = vpop.eup %6440  ;;  %v1440_v44 = vld [vmem:[%s8952_s2 + $0x148] sm:$0xff] }
 0x382   :  { %6444 = vrcp.f32 %v1118_v45  ;;  %v6443_v62 = vpop.eup %6442  ;;  %v1131_v11 = vadd.f32 1.0, %v6441_v61  ;;  %v1444_v45 = vld [vmem:[%s8952_s2 + $0x168] sm:$0xff] }
 0x383   :  { %6446 = vrcp.f32 %v1124_v51  ;;  %v1442_v51 = vld [vmem:[%s8952_s2 + $0x158] sm:$0xff]  ;;  %v7460_v61 = vpack.c.bf16 %v1444_v45, %v1440_v44  ;;  %v7539_v44 = vpack.c.bf16 %v1462_v29, %v1458_v21  ;;  %v1459_v45 = vld [vmem:[%s8952_s2 + $0x1e0] sm:$0xff] }
 0x384   :  { %6448 = vrcp.f32 %v1131_v11 }
 0x38c   :  { %v6445_v63 = vpop.eup %6444 }
 0x38d   :  { %v6447_v6 = vpop.eup %6446  ;;  %v1135_v10 = vmul.f32 %v6445_v63, %v6443_v62  ;;  %v1446_v62 = vld [vmem:[%s8952_s2 + $0x178] sm:$0xff]  ;;  %v1439_v63 = vld [vmem:[%s8952_s2 + $0x140] sm:$0xff] }
 0x38e   :  { %v1134_v39 = vmul.f32 %v6447_v6, %v7217_v22  ;;  %v6449_v38 = vpop.eup %6448  ;;  %v1418_v22 = vld [vmem:[%s8952_s2 + $0x98] sm:$0xff]  ;;  %v1443_v6 = vld [vmem:[%s8952_s2 + $0x160] sm:$0xff] }
 0x38f   :  { %v7376_v2 = vpack.c.bf16 %v1422_v56, %v1418_v22  ;;  %v7474_v11 = vpack.c.bf16 %v1443_v6, %v1439_v63  ;;  %v1452_v56 = vld [vmem:[%s8952_s2 + $0x1a8] sm:$0xff]  ;;  %v7551_v63 = vpack.c.bf16 %v1459_v45, %v1455_v34 }
 0x390   :  { %v7353_v35 = vadd.f32 %v1135_v10, %v1134_v39  ;;  %v7472_v10 = vpack.c.bf16 %v1446_v62, %v1442_v51  ;;  %v1441_v39 = vld [vmem:[%s8952_s2 + $0x150] sm:$0xff] }
 0x391   :  { %v1457_v51 = vld [vmem:[%s8952_s2 + $0x1d0] sm:$0xff] }
 0x392   :  { %6450 = vtanh.f32 %v7353_v35  ;;  %v1461_v62 = vld [vmem:[%s8952_s2 + $0x1f0] sm:$0xff] }
 0x393   :  { %v7555_v6 = vpack.c.bf16 %v1461_v62, %v1457_v51 }
 0x39c   :  { %v6451_v50 = vpop.eup %6450 }
 0x39d   :  { %v7356_v52 = vmul.f32 %v6451_v50, %v6449_v38  ;;  %v1445_v38 = vld [vmem:[%s8952_s2 + $0x170] sm:$0xff]  ;;  %v1448_v50 = vld [vmem:[%s8952_s2 + $0x188] sm:$0xff] }
 0x39e   :  { %v7486_v22 = vpack.c.bf16 %v1445_v38, %v1441_v39  ;;  %v7498_v54 = vpack.c.bf16 %v1452_v56, %v1448_v50 }
 0x39f   :  { %1281 = vmatmul.mubr.f32.vlgmr.msra.gmra.mrb[6].mxu0 %v7356_v52  ;;  %1352 = vmatmul.mubr.f32.vlgmr.msra.gmra.mrb[6].mxu1 %v7356_v52 }
 0x3a0   :  { %5393 = vmatpush1.bf16.msra.mxu0 %v7248_v46  ;;  %5425 = vmatpush1.bf16.msra.mxu1 %v7257_v55 }
 0x3a1   :  { %5395 = vmatprep.subr.bf16.mxu0 %v7271_v49  ;;  %5427 = vmatprep.subr.bf16.mxu1 %v7282_v58 }
 0x3a2   :  { %1527 = vmatprep.mubr.f32.mxu0 %v6660_v3  ;;  %1598 = vmatprep.mubr.f32.mxu1 %v6660_v3 }
 0x3a4   :  { %5397 = vmatpush1.bf16.msra.mxu0 %v7284_v59  ;;  %5429 = vmatpush1.bf16.msra.mxu1 %v7293_v13 }
 0x3a5   :  { %5399 = vmatprep.subr.bf16.mxu0 %v7304_v19  ;;  %5431 = vmatprep.subr.bf16.mxu1 %v7376_v2 }
 0x3a8   :  { %5401 = vmatpush1.bf16.msra.mxu0 %v7316_v26  ;;  %5433 = vmatpush1.bf16.msra.mxu1 %v7322_v32 }
 0x3a9   :  { %5403 = vmatprep.subr.bf16.mxu0 %v7389_v57  ;;  %5435 = vmatprep.subr.bf16.mxu1 %v7400_v18 }
 0x3ac   :  { %5405 = vmatpush1.bf16.msra.mxu0 %v7402_v20  ;;  %5437 = vmatpush1.bf16.msra.mxu1 %v7411_v30 }
 0x3ad   :  { %5407 = vmatprep.subr.bf16.mxu0 %v7425_v15  ;;  %5439 = vmatprep.subr.bf16.mxu1 %v7436_v27 }
 0x3b0   :  { %5409 = vmatpush1.bf16.msra.mxu0 %v7438_v28  ;;  %5441 = vmatpush1.bf16.msra.mxu1 %v7447_v43 }
 0x3b1   :  { %5411 = vmatprep.subr.bf16.mxu0 %v7460_v61  ;;  %5443 = vmatprep.subr.bf16.mxu1 %v7472_v10 }
 0x3b4   :  { %5413 = vmatpush1.bf16.msra.mxu0 %v7474_v11  ;;  %5445 = vmatpush1.bf16.msra.mxu1 %v7486_v22 }
 0x3b5   :  { %5415 = vmatprep.subr.bf16.mxu0 %v7498_v54  ;;  %5447 = vmatprep.subr.bf16.mxu1 %v7500_v7 }
 0x3b8   :  { %5417 = vmatpush1.bf16.msra.mxu0 %v7512_v24  ;;  %5449 = vmatpush1.bf16.msra.mxu1 %v7525_v16 }
 0x3b9   :  { %5419 = vmatprep.subr.bf16.mxu0 %v7527_v17  ;;  %5451 = vmatprep.subr.bf16.mxu1 %v7539_v44 }
 0x3bc   :  { %5421 = vmatpush1.bf16.msra.mxu0 %v7551_v63  ;;  %5453 = vmatpush1.bf16.msra.mxu1 %v7555_v6 }
 0x3bd   :  { %5455 = vmatprep.subr.bf16.mxu0 %v7235_v33  ;;  %5487 = vmatprep.subr.bf16.mxu1 %v7246_v42 }
 0x472   :  { %v1282_v39 = vpop.f32.mrb[6].mxu0  ;;  %v1353_v38 = vpop.f32.mrb[6].mxu1 }
 0x473   :  { %v6276_v50 = vadd.f32 %v1282_v39, %v7153_v41  ;;  %v1284_v56 = vpop.f32.mrb[7].mxu0  ;;  %v1355_v4 = vpop.f32.mrb[7].mxu1  ;;  %v6292_v5 = vadd.f32 %v1353_v38, %v7170_v8 }
 0x474   :  { %v6277_v53 = vadd.f32 %v1284_v56, %v7157_v31  ;;  %v6293_v23 = vadd.f32 %v1355_v4, %v7164_v0 }
 0x475   :  { %v4973_v12 = vmul.f32 -1.442695, %v6276_v50 }
 0x476   :  { %v4974_v14 = vmul.f32 -1.442695, %v6277_v53  ;;  %v4975_v60 = vmul.f32 -1.442695, %v6293_v23 }
 0x477   :  { %6452 = vpow2.f32 %v4973_v12 }
 0x478   :  { %6454 = vpow2.f32 %v4974_v14 }
 0x479   :  { %6456 = vpow2.f32 %v4975_v60 }
 0x47a   :  { %6458 = vtanh.f32 %v6292_v5 }
 0x481   :  { %v6453_v9 = vpop.eup %6452 }
 0x482   :  { %v6455_v21 = vpop.eup %6454  ;;  %v1365_v29 = vadd.f32 1.0, %v6453_v9 }
 0x483   :  { %v1371_v34 = vadd.f32 1.0, %v6455_v21  ;;  %v6457_v45 = vpop.eup %6456 }
 0x484   :  { %6460 = vrcp.f32 %v1365_v29  ;;  %v6459_v51 = vpop.eup %6458  ;;  %v1378_v56 = vadd.f32 1.0, %v6457_v45 }
 0x485   :  { %6462 = vrcp.f32 %v1371_v34 }
 0x486   :  { %6464 = vrcp.f32 %v1378_v56 }
 0x48e   :  { %v6461_v62 = vpop.eup %6460 }
 0x48f   :  { %v6463_v39 = vpop.eup %6462  ;;  %v1382_v50 = vmul.f32 %v6461_v62, %v6459_v51 }
 0x490   :  { %v1381_v53 = vmul.f32 %v6463_v39, %v7353_v35  ;;  %v6465_v38 = vpop.eup %6464 }
 0x492   :  { %v7567_v4 = vadd.f32 %v1382_v50, %v1381_v53 }
 0x494   :  { %6466 = vtanh.f32 %v7567_v4 }
 0x49e   :  { %v6467_v12 = vpop.eup %6466 }
 0x49f   :  { %v7570_v14 = vmul.f32 %v6467_v12, %v6465_v38 }
 0x4a1   :  { %1528 = vmatmul.mubr.f32.vlgmr.msra.gmra.mrb[8].mxu0 %v7570_v14  ;;  %1599 = vmatmul.mubr.f32.vlgmr.msra.gmra.mrb[8].mxu1 %v7570_v14 }
 0x4a2   :  { %5457 = vmatpush1.bf16.msra.mxu0 %v7248_v46  ;;  %5489 = vmatpush1.bf16.msra.mxu1 %v7257_v55 }
 0x4a3   :  { %5459 = vmatprep.subr.bf16.mxu0 %v7271_v49  ;;  %5491 = vmatprep.subr.bf16.mxu1 %v7282_v58 }
 0x4a4   :  { %1774 = vmatprep.mubr.f32.mxu0 %v6660_v3  ;;  %1845 = vmatprep.mubr.f32.mxu1 %v6660_v3 }
 0x4a6   :  { %5461 = vmatpush1.bf16.msra.mxu0 %v7284_v59  ;;  %5493 = vmatpush1.bf16.msra.mxu1 %v7293_v13 }
 0x4a7   :  { %5463 = vmatprep.subr.bf16.mxu0 %v7304_v19  ;;  %5495 = vmatprep.subr.bf16.mxu1 %v7376_v2 }
 0x4aa   :  { %5465 = vmatpush1.bf16.msra.mxu0 %v7316_v26  ;;  %5497 = vmatpush1.bf16.msra.mxu1 %v7322_v32 }
 0x4ab   :  { %5467 = vmatprep.subr.bf16.mxu0 %v7389_v57  ;;  %5499 = vmatprep.subr.bf16.mxu1 %v7400_v18 }
 0x4ae   :  { %5469 = vmatpush1.bf16.msra.mxu0 %v7402_v20  ;;  %5501 = vmatpush1.bf16.msra.mxu1 %v7411_v30 }
 0x4af   :  { %5471 = vmatprep.subr.bf16.mxu0 %v7425_v15  ;;  %5503 = vmatprep.subr.bf16.mxu1 %v7436_v27 }
 0x4b2   :  { %5473 = vmatpush1.bf16.msra.mxu0 %v7438_v28  ;;  %5505 = vmatpush1.bf16.msra.mxu1 %v7447_v43 }
 0x4b3   :  { %5475 = vmatprep.subr.bf16.mxu0 %v7460_v61  ;;  %5507 = vmatprep.subr.bf16.mxu1 %v7472_v10 }
 0x4b6   :  { %5477 = vmatpush1.bf16.msra.mxu0 %v7474_v11  ;;  %5509 = vmatpush1.bf16.msra.mxu1 %v7486_v22 }
 0x4b7   :  { %5479 = vmatprep.subr.bf16.mxu0 %v7498_v54  ;;  %5511 = vmatprep.subr.bf16.mxu1 %v7500_v7 }
 0x4ba   :  { %5481 = vmatpush1.bf16.msra.mxu0 %v7512_v24  ;;  %5513 = vmatpush1.bf16.msra.mxu1 %v7525_v16 }
 0x4bb   :  { %5483 = vmatprep.subr.bf16.mxu0 %v7527_v17  ;;  %5515 = vmatprep.subr.bf16.mxu1 %v7539_v44 }
 0x4be   :  { %5485 = vmatpush1.bf16.msra.mxu0 %v7551_v63  ;;  %5517 = vmatpush1.bf16.msra.mxu1 %v7555_v6 }
 0x4bf   :  { %5519 = vmatprep.subr.bf16.mxu0 %v7235_v33  ;;  %5551 = vmatprep.subr.bf16.mxu1 %v7246_v42 }
 0x574   :  { %v1529_v35 = vpop.f32.mrb[8].mxu0  ;;  %v1600_v23 = vpop.f32.mrb[8].mxu1 }
 0x575   :  { %v6278_v60 = vadd.f32 %v1529_v35, %v7153_v41  ;;  %v1531_v5 = vpop.f32.mrb[9].mxu0  ;;  %v1602_v9 = vpop.f32.mrb[9].mxu1  ;;  %v6294_v62 = vadd.f32 %v1600_v23, %v7170_v8 }
 0x576   :  { %v6279_v21 = vadd.f32 %v1531_v5, %v7157_v31  ;;  %v6295_v45 = vadd.f32 %v1602_v9, %v7164_v0 }
 0x577   :  { %v4976_v29 = vmul.f32 -1.442695, %v6278_v60 }
 0x578   :  { %v4977_v34 = vmul.f32 -1.442695, %v6279_v21  ;;  %v4978_v51 = vmul.f32 -1.442695, %v6295_v45 }
 0x579   :  { %6468 = vpow2.f32 %v4976_v29 }
 0x57a   :  { %6470 = vpow2.f32 %v4977_v34 }
 0x57b   :  { %6472 = vpow2.f32 %v4978_v51 }
 0x57c   :  { %6474 = vtanh.f32 %v6294_v62 }
 0x583   :  { %v6469_v33 = vpop.eup %6468 }
 0x584   :  { %v6471_v39 = vpop.eup %6470  ;;  %v1612_v42 = vadd.f32 1.0, %v6469_v33 }
 0x585   :  { %v1618_v50 = vadd.f32 1.0, %v6471_v39  ;;  %v6473_v56 = vpop.eup %6472 }
 0x586   :  { %6476 = vrcp.f32 %v1612_v42  ;;  %v6475_v53 = vpop.eup %6474  ;;  %v1625_v60 = vadd.f32 1.0, %v6473_v56 }
 0x587   :  { %6478 = vrcp.f32 %v1618_v50 }
 0x588   :  { %6480 = vrcp.f32 %v1625_v60 }
 0x590   :  { %v6477_v38 = vpop.eup %6476 }
 0x591   :  { %v6479_v12 = vpop.eup %6478  ;;  %v1629_v35 = vmul.f32 %v6477_v38, %v6475_v53 }
 0x592   :  { %v1628_v5 = vmul.f32 %v6479_v12, %v7567_v4  ;;  %v6481_v23 = vpop.eup %6480 }
 0x594   :  { %v7613_v9 = vadd.f32 %v1629_v35, %v1628_v5 }
 0x596   :  { %6482 = vtanh.f32 %v7613_v9 }
 0x5a0   :  { %v6483_v21 = vpop.eup %6482 }
 0x5a1   :  { %v7616_v29 = vmul.f32 %v6483_v21, %v6481_v23  ;;  %v2145_v21 = vld [vmem:[%s8952_s2 + $0x28] sm:$0xff] }
 0x5a3   :  { %1775 = vmatmul.mubr.f32.vlgmr.msra.gmra.mrb[10].mxu0 %v7616_v29  ;;  %1846 = vmatmul.mubr.f32.vlgmr.msra.gmra.mrb[10].mxu1 %v7616_v29 }
 0x5a4   :  { %5521 = vmatpush1.bf16.msra.mxu0 %v7248_v46  ;;  %5553 = vmatpush1.bf16.msra.mxu1 %v7257_v55 }
 0x5a5   :  { %5523 = vmatprep.subr.bf16.mxu0 %v7271_v49  ;;  %5555 = vmatprep.subr.bf16.mxu1 %v7282_v58 }
 0x5a6   :  { %2021 = vmatprep.mubr.f32.mxu0 %v6660_v3  ;;  %2092 = vmatprep.mubr.f32.mxu1 %v6660_v3 }
 0x5a8   :  { %5525 = vmatpush1.bf16.msra.mxu0 %v7284_v59  ;;  %5557 = vmatpush1.bf16.msra.mxu1 %v7293_v13 }
 0x5a9   :  { %5527 = vmatprep.subr.bf16.mxu0 %v7304_v19  ;;  %5559 = vmatprep.subr.bf16.mxu1 %v7376_v2 }
 0x5ac   :  { %5529 = vmatpush1.bf16.msra.mxu0 %v7316_v26  ;;  %5561 = vmatpush1.bf16.msra.mxu1 %v7322_v32 }
 0x5ad   :  { %5531 = vmatprep.subr.bf16.mxu0 %v7389_v57  ;;  %5563 = vmatprep.subr.bf16.mxu1 %v7400_v18 }
 0x5b0   :  { %5533 = vmatpush1.bf16.msra.mxu0 %v7402_v20  ;;  %5565 = vmatpush1.bf16.msra.mxu1 %v7411_v30 }
 0x5b1   :  { %5535 = vmatprep.subr.bf16.mxu0 %v7425_v15  ;;  %5567 = vmatprep.subr.bf16.mxu1 %v7436_v27 }
 0x5b4   :  { %5537 = vmatpush1.bf16.msra.mxu0 %v7438_v28  ;;  %5569 = vmatpush1.bf16.msra.mxu1 %v7447_v43 }
 0x5b5   :  { %5539 = vmatprep.subr.bf16.mxu0 %v7460_v61  ;;  %5571 = vmatprep.subr.bf16.mxu1 %v7472_v10 }
 0x5b8   :  { %5541 = vmatpush1.bf16.msra.mxu0 %v7474_v11  ;;  %5573 = vmatpush1.bf16.msra.mxu1 %v7486_v22 }
 0x5b9   :  { %5543 = vmatprep.subr.bf16.mxu0 %v7498_v54  ;;  %5575 = vmatprep.subr.bf16.mxu1 %v7500_v7 }
 0x5bc   :  { %5545 = vmatpush1.bf16.msra.mxu0 %v7512_v24  ;;  %5577 = vmatpush1.bf16.msra.mxu1 %v7525_v16 }
 0x5bd   :  { %5547 = vmatprep.subr.bf16.mxu0 %v7527_v17  ;;  %5579 = vmatprep.subr.bf16.mxu1 %v7539_v44 }
 0x5c0   :  { %5549 = vmatpush1.bf16.msra.mxu0 %v7551_v63  ;;  %5581 = vmatpush1.bf16.msra.mxu1 %v7555_v6 }
 0x676   :  { %v1776_v46 = vpop.f32.mrb[10].mxu0  ;;  %v1847_v55 = vpop.f32.mrb[10].mxu1 }
 0x677   :  { %v6280_v49 = vadd.f32 %v1776_v46, %v7153_v41  ;;  %v1778_v58 = vpop.f32.mrb[11].mxu0  ;;  %v1849_v59 = vpop.f32.mrb[11].mxu1  ;;  %v6296_v34 = vadd.f32 %v1847_v55, %v7170_v8  ;;  %v2143_v46 = vld [vmem:[%s8952_s2 + $0x18] sm:$0xff] }
 0x678   :  { %v6281_v13 = vadd.f32 %v1778_v58, %v7157_v31  ;;  %v6297_v32 = vadd.f32 %v1849_v59, %v7164_v0  ;;  %v2140_v58 = vld [vmem:[%s8952_s2] sm:$0xff] }
 0x679   :  { %v4979_v19 = vmul.f32 -1.442695, %v6280_v49  ;;  %v2147_v49 = vld [vmem:[%s8952_s2 + $0x38] sm:$0xff]  ;;  %v2144_v59 = vld [vmem:[%s8952_s2 + $0x20] sm:$0xff] }
 0x67a   :  { %v4980_v26 = vmul.f32 -1.442695, %v6281_v13  ;;  %v4981_v4 = vmul.f32 -1.442695, %v6297_v32  ;;  %v5614_v13 = vpack.c.bf16 %v2147_v49, %v2143_v46  ;;  %v2146_v32 = vld [vmem:[%s8952_s2 + $0x30] sm:$0xff]  ;;  %v2160_v46 = vld [vmem:[%s8952_s2 + $0xa0] sm:$0xff] }
 0x67b   :  { %6484 = vpow2.f32 %v4979_v19  ;;  %v5584_v19 = vpack.c.bf16 %v2144_v59, %v2140_v58  ;;  %v2162_v58 = vld [vmem:[%s8952_s2 + $0xb0] sm:$0xff] }
 0x67c   :  { %6486 = vpow2.f32 %v4980_v26  ;;  %v2142_v26 = vld [vmem:[%s8952_s2 + $0x10] sm:$0xff]  ;;  %5615 = vmatprep.subr.bf16.mxu1 %v5614_v13 }
 0x67d   :  { %6488 = vpow2.f32 %v4981_v4  ;;  %v5616_v4 = vpack.c.bf16 %v2146_v32, %v2142_v26 }
 0x67e   :  { %6490 = vtanh.f32 %v6296_v34  ;;  %v2149_v34 = vld [vmem:[%s8952_s2 + $0x48] sm:$0xff] }
 0x685   :  { %v6485_v45 = vpop.eup %6484 }
 0x686   :  { %v6487_v51 = vpop.eup %6486  ;;  %v1859_v62 = vadd.f32 1.0, %v6485_v45  ;;  %v2153_v45 = vld [vmem:[%s8952_s2 + $0x68] sm:$0xff] }
 0x687   :  { %v1865_v33 = vadd.f32 1.0, %v6487_v51  ;;  %v6489_v39 = vpop.eup %6488  ;;  %v2151_v51 = vld [vmem:[%s8952_s2 + $0x58] sm:$0xff] }
 0x688   :  { %6492 = vrcp.f32 %v1859_v62  ;;  %v6491_v42 = vpop.eup %6490  ;;  %v1872_v38 = vadd.f32 1.0, %v6489_v39  ;;  %v5586_v62 = vpack.c.bf16 %v2153_v45, %v2149_v34  ;;  %v2148_v39 = vld [vmem:[%s8952_s2 + $0x40] sm:$0xff] }
 0x689   :  { %6494 = vrcp.f32 %v1865_v33  ;;  %v2155_v33 = vld [vmem:[%s8952_s2 + $0x78] sm:$0xff]  ;;  %v2474_v34 = vld [vmem:[%s8954_s4] sm:$0xff] }
 0x68a   :  { %6496 = vrcp.f32 %v1872_v38  ;;  %v2154_v38 = vld [vmem:[%s8952_s2 + $0x70] sm:$0xff] }
 0x692   :  { %v6493_v50 = vpop.eup %6492 }
 0x693   :  { %v6495_v56 = vpop.eup %6494  ;;  %v1876_v53 = vmul.f32 %v6493_v50, %v6491_v42  ;;  %v2152_v42 = vld [vmem:[%s8952_s2 + $0x60] sm:$0xff]  ;;  %v5618_v50 = vpack.c.bf16 %v2155_v33, %v2151_v51  ;;  %v6664_v51 = vmov 0.0|0.0   ;;  %v2477_v33 = vld [vmem:[%s8954_s4 + $0x18] sm:$0xff] }
 0x694   :  { %v1875_v12 = vmul.f32 %v6495_v56, %v7613_v9  ;;  %v6497_v60 = vpop.eup %6496  ;;  %v2141_v9 = vld [vmem:[%s8952_s2 + $0x8] sm:$0xff]  ;;  %v5588_v56 = vpack.c.bf16 %v2152_v42, %v2148_v39  ;;  %v2478_v42 = vld [vmem:[%s8954_s4 + $0x20] sm:$0xff] }
 0x695   :  { %v5582_v55 = vpack.c.bf16 %v2145_v21, %v2141_v9  ;;  %v2156_v21 = vld [vmem:[%s8952_s2 + $0x80] sm:$0xff] }
 0x696   :  { %v7657_v35 = vadd.f32 %v1876_v53, %v1875_v12  ;;  %v2150_v53 = vld [vmem:[%s8952_s2 + $0x50] sm:$0xff]  ;;  %v5592_v49 = vpack.c.bf16 %v2160_v46, %v2156_v21  ;;  %v2485_v46 = vld [vmem:[%s8954_s4 + $0x58] sm:$0xff] }
 0x697   :  { %5583 = vmatprep.subr.bf16.mxu0 %v5582_v55  ;;  %v5620_v12 = vpack.c.bf16 %v2154_v38, %v2150_v53  ;;  %v2158_v55 = vld [vmem:[%s8952_s2 + $0x90] sm:$0xff]  ;;  %v2481_v38 = vld [vmem:[%s8954_s4 + $0x38] sm:$0xff] }
 0x698   :  { %6498 = vtanh.f32 %v7657_v35  ;;  %v5624_v59 = vpack.c.bf16 %v2162_v58, %v2158_v55  ;;  %v2480_v53 = vld [vmem:[%s8954_s4 + $0x30] sm:$0xff]  ;;  %v2486_v55 = vld [vmem:[%s8954_s4 + $0x60] sm:$0xff]  ;;  %v2487_v58 = vld [vmem:[%s8954_s4 + $0x68] sm:$0xff] }
 0x699   :  { %v2484_v21 = vld [vmem:[%s8954_s4 + $0x50] sm:$0xff] }
 0x6a2   :  { %v6499_v5 = vpop.eup %6498 }
 0x6a3   :  { %v7660_v23 = vmul.f32 %v6499_v5, %v6497_v60  ;;  %v2157_v60 = vld [vmem:[%s8952_s2 + $0x88] sm:$0xff] }
 0x6a4   :  { %v2161_v5 = vld [vmem:[%s8952_s2 + $0xa8] sm:$0xff] }
 0x6a5   :  { %2022 = vmatmul.mubr.f32.vlgmr.msra.gmra.mrb[12].mxu0 %v7660_v23  ;;  %2093 = vmatmul.mubr.f32.vlgmr.msra.gmra.mrb[12].mxu1 %v7660_v23  ;;  %v5590_v9 = vpack.c.bf16 %v2161_v5, %v2157_v60  ;;  %v2482_v60 = vld [vmem:[%s8954_s4 + $0x40] sm:$0xff]  ;;  %v2483_v5 = vld [vmem:[%s8954_s4 + $0x48] sm:$0xff] }
 0x6a6   :  { %2268 = vmatprep.mubr.f32.mxu0 %v6660_v3  ;;  %2339 = vmatprep.mubr.f32.mxu1 %v6660_v3 }
 0x6a7   :  { %5585 = vmatpush1.bf16.msra.mxu0 %v5584_v19  ;;  %5617 = vmatpush1.bf16.msra.mxu1 %v5616_v4 }
 0x6a8   :  { %5587 = vmatprep.subr.bf16.mxu0 %v5586_v62  ;;  %5619 = vmatprep.subr.bf16.mxu1 %v5618_v50  ;;  %v2476_v62 = vld [vmem:[%s8954_s4 + $0x10] sm:$0xff]  ;;  %v2479_v50 = vld [vmem:[%s8954_s4 + $0x28] sm:$0xff] }
 0x6a9   :  { %v5674_v39 = vpack.c.bf16 %v2477_v33, %v2476_v62  ;;  %v2587_v62 = vld [vmem:[%s8955_s6 + $0x58] sm:$0xff] }
 0x6aa   :  { %v2591_v33 = vld [vmem:[%s8955_s6 + $0x78] sm:$0xff] }
 0x6ab   :  { %5589 = vmatpush1.bf16.msra.mxu0 %v5588_v56  ;;  %5621 = vmatpush1.bf16.msra.mxu1 %v5620_v12  ;;  %v5677_v56 = vpack.c.bf16 %v2479_v50, %v2478_v42  ;;  %v5680_v12 = vpack.c.bf16 %v2481_v38, %v2480_v53  ;;  %v2586_v53 = vld [vmem:[%s8955_s6 + $0x50] sm:$0xff] }
 0x6ac   :  { %5623 = vmatprep.subr.bf16.mxu1 %v7376_v2  ;;  %5591 = vmatprep.subr.bf16.mxu0 %v5590_v9  ;;  %v5683_v9 = vpack.c.bf16 %v2483_v5, %v2482_v60  ;;  %v2590_v38 = vld [vmem:[%s8955_s6 + $0x70] sm:$0xff] }
 0x6ad   :  { %v5732_v60 = vpack.c.bf16 %v2590_v38, %v2586_v53  ;;  %v2630_v53 = vld [vmem:[%s8955_s6 + $0x1b0] sm:$0xff]  ;;  %v2600_v38 = vld [vmem:[%s8955_s6 + $0xc0] sm:$0xff] }
 0x6af   :  { %5593 = vmatpush1.bf16.msra.mxu0 %v5592_v49  ;;  %5625 = vmatpush1.bf16.msra.mxu1 %v5624_v59  ;;  %v5686_v49 = vpack.c.bf16 %v2485_v46, %v2484_v21  ;;  %v5689_v59 = vpack.c.bf16 %v2487_v58, %v2486_v55  ;;  %v2598_v21 = vld [vmem:[%s8955_s6 + $0xb0] sm:$0xff]  ;;  %v2603_v46 = vld [vmem:[%s8955_s6 + $0xd8] sm:$0xff] }
 0x6b0   :  { %5595 = vmatprep.subr.bf16.mxu0 %v7389_v57  ;;  %5627 = vmatprep.subr.bf16.mxu1 %v7400_v18  ;;  %v2607_v55 = vld [vmem:[%s8955_s6 + $0xf8] sm:$0xff] }
 0x6b1   :  { %v5738_v58 = vpack.c.bf16 %v2607_v55, %v2603_v46 }
 0x6b3   :  { %5597 = vmatpush1.bf16.msra.mxu0 %v7402_v20  ;;  %5629 = vmatpush1.bf16.msra.mxu1 %v7411_v30 }
 0x6b4   :  { %5599 = vmatprep.subr.bf16.mxu0 %v7425_v15  ;;  %5631 = vmatprep.subr.bf16.mxu1 %v7436_v27 }
 0x6b7   :  { %5601 = vmatpush1.bf16.msra.mxu0 %v7438_v28  ;;  %5633 = vmatpush1.bf16.msra.mxu1 %v7447_v43 }
 0x6b8   :  { %5603 = vmatprep.subr.bf16.mxu0 %v7460_v61  ;;  %5635 = vmatprep.subr.bf16.mxu1 %v7472_v10 }
 0x6bb   :  { %5605 = vmatpush1.bf16.msra.mxu0 %v7474_v11  ;;  %5637 = vmatpush1.bf16.msra.mxu1 %v7486_v22 }
 0x6bc   :  { %5607 = vmatprep.subr.bf16.mxu0 %v7498_v54  ;;  %5639 = vmatprep.subr.bf16.mxu1 %v7500_v7 }
 0x6bf   :  { %5609 = vmatpush1.bf16.msra.mxu0 %v7512_v24  ;;  %5641 = vmatpush1.bf16.msra.mxu1 %v7525_v16 }
 0x6c0   :  { %5611 = vmatprep.subr.bf16.mxu0 %v7527_v17  ;;  %5643 = vmatprep.subr.bf16.mxu1 %v7539_v44 }
 0x6c3   :  { %5613 = vmatpush1.bf16.msra.mxu0 %v7551_v63  ;;  %5645 = vmatpush1.bf16.msra.mxu1 %v7555_v6 }
 0x6c4   :  { %5670 = vmatprep.subr.bf16.mxu1 %v6664_v51  ;;  %5646 = vmatprep.subr.bf16.mxu0 %v6664_v51 }
 0x778   :  { %v2023_v2 = vpop.f32.mrb[12].mxu0  ;;  %v2094_v57 = vpop.f32.mrb[12].mxu1 }
 0x779   :  { %v6282_v18 = vadd.f32 %v2023_v2, %v7153_v41  ;;  %v2025_v20 = vpop.f32.mrb[13].mxu0  ;;  %v2096_v30 = vpop.f32.mrb[13].mxu1  ;;  %v6298_v10 = vadd.f32 %v2094_v57, %v7170_v8  ;;  %v2488_v2 = vld [vmem:[%s8954_s4 + $0x70] sm:$0xff]  ;;  %v2489_v57 = vld [vmem:[%s8954_s4 + $0x78] sm:$0xff] }
 0x77a   :  { %v6283_v15 = vadd.f32 %v2025_v20, %v7157_v31  ;;  %v6299_v43 = vadd.f32 %v2096_v30, %v7164_v0  ;;  %v2583_v20 = vld [vmem:[%s8955_s6 + $0x38] sm:$0xff]  ;;  %v5692_v30 = vpack.c.bf16 %v2489_v57, %v2488_v2  ;;  %v2606_v2 = vld [vmem:[%s8955_s6 + $0xf0] sm:$0xff]  ;;  %v2576_v57 = vld [vmem:[%s8955_s6] sm:$0xff] }
 0x77b   :  { %v4982_v27 = vmul.f32 -1.442695, %v6282_v18  ;;  %v2579_v18 = vld [vmem:[%s8955_s6 + $0x18] sm:$0xff] }
 0x77c   :  { %v4983_v28 = vmul.f32 -1.442695, %v6283_v15  ;;  %v4984_v61 = vmul.f32 -1.442695, %v6299_v43  ;;  %v5726_v15 = vpack.c.bf16 %v2583_v20, %v2579_v18  ;;  %v2580_v18 = vld [vmem:[%s8955_s6 + $0x20] sm:$0xff]  ;;  %v2611_v20 = vld [vmem:[%s8955_s6 + $0x118] sm:$0xff] }
 0x77d   :  { %6500 = vpow2.f32 %v4982_v27  ;;  %v2577_v27 = vld [vmem:[%s8955_s6 + $0x8] sm:$0xff] }
 0x77e   :  { %6502 = vpow2.f32 %v4983_v28  ;;  %v2581_v28 = vld [vmem:[%s8955_s6 + $0x28] sm:$0xff] }
 0x77f   :  { %6504 = vpow2.f32 %v4984_v61  ;;  %v5694_v43 = vpack.c.bf16 %v2581_v28, %v2577_v27  ;;  %v2589_v27 = vld [vmem:[%s8955_s6 + $0x68] sm:$0xff] }
 0x780   :  { %6506 = vtanh.f32 %v6298_v10 }
 0x787   :  { %v6501_v11 = vpop.eup %6500 }
 0x788   :  { %v6503_v22 = vpop.eup %6502  ;;  %v2106_v54 = vadd.f32 1.0, %v6501_v11 }
 0x789   :  { %v2112_v7 = vadd.f32 1.0, %v6503_v22  ;;  %v6505_v24 = vpop.eup %6504 }
 0x78a   :  { %6508 = vrcp.f32 %v2106_v54  ;;  %v6507_v16 = vpop.eup %6506  ;;  %v2119_v6 = vadd.f32 1.0, %v6505_v24 }
 0x78b   :  { %6510 = vrcp.f32 %v2112_v7 }
 0x78c   :  { %6512 = vrcp.f32 %v2119_v6 }
 0x794   :  { %v6509_v17 = vpop.eup %6508 }
 0x795   :  { %v6511_v44 = vpop.eup %6510  ;;  %v2123_v63 = vmul.f32 %v6509_v17, %v6507_v16 }
 0x796   :  { %v2122_v13 = vmul.f32 %v6511_v44, %v7657_v35  ;;  %v6513_v26 = vpop.eup %6512  ;;  %v2475_v35 = vld [vmem:[%s8954_s4 + $0x8] sm:$0xff] }
 0x797   :  { %v5671_v45 = vpack.c.bf16 %v2475_v35, %v2474_v34  ;;  %v2578_v35 = vld [vmem:[%s8955_s6 + $0x10] sm:$0xff] }
 0x798   :  { %v7758_v19 = vadd.f32 %v2123_v63, %v2122_v13 }
 0x79a   :  { %6514 = vtanh.f32 %v7758_v19 }
 0x7a4   :  { %v6515_v32 = vpop.eup %6514 }
 0x7a5   :  { %v7761_v4 = vmul.f32 %v6515_v32, %v6513_v26 }
 0x7a7   :  { %2269 = vmatmul.mubr.f32.vlgmr.msra.gmra.mrb[14].mxu0 %v7761_v4  ;;  %2340 = vmatmul.mubr.f32.vlgmr.msra.gmra.mrb[14].mxu1 %v7761_v4 }
 0x7a8   :  { %5672 = vmatpush3.bf16.msra.mxu1 %v5671_v45  ;;  %5648 = vmatpush3.bf16.msra.mxu0 %v5671_v45 }
 0x7a9   :  { %5673 = vmatprep.subr.bf16.mxu1 %v6664_v51  ;;  %5649 = vmatprep.subr.bf16.mxu0 %v6664_v51 }
 0x7aa   :  { %5115 = vmatprep.mubr.msk.f32.mxu1 %vm6665_vm1, %v6660_v3  ;;  %5080 = vmatprep.mubr.msk.f32.mxu0 %vm6665_vm1, %v6660_v3 }
 0x7ac   :  { %5675 = vmatpush3.bf16.msra.mxu1 %v5674_v39  ;;  %5651 = vmatpush3.bf16.msra.mxu0 %v5674_v39 }
 0x7ad   :  { %5676 = vmatprep.subr.bf16.mxu1 %v6664_v51  ;;  %5652 = vmatprep.subr.bf16.mxu0 %v6664_v51 }
 0x7b0   :  { %5678 = vmatpush3.bf16.msra.mxu1 %v5677_v56  ;;  %5654 = vmatpush3.bf16.msra.mxu0 %v5677_v56  ;;  %v5730_v56 = vpack.c.bf16 %v2591_v33, %v2587_v62  ;;  %v2601_v62 = vld [vmem:[%s8955_s6 + $0xc8] sm:$0xff] }
 0x7b1   :  { %5679 = vmatprep.subr.bf16.mxu1 %v6664_v51  ;;  %5655 = vmatprep.subr.bf16.mxu0 %v6664_v51  ;;  %v2605_v33 = vld [vmem:[%s8955_s6 + $0xe8] sm:$0xff] }
 0x7b4   :  { %5681 = vmatpush3.bf16.msra.mxu1 %v5680_v12  ;;  %5657 = vmatpush3.bf16.msra.mxu0 %v5680_v12  ;;  %v2595_v12 = vld [vmem:[%s8955_s6 + $0x98] sm:$0xff] }
 0x7b5   :  { %5682 = vmatprep.subr.bf16.mxu1 %v6664_v51  ;;  %5658 = vmatprep.subr.bf16.mxu0 %v6664_v51 }
 0x7b8   :  { %5684 = vmatpush3.bf16.msra.mxu1 %v5683_v9  ;;  %5660 = vmatpush3.bf16.msra.mxu0 %v5683_v9  ;;  %v2594_v9 = vld [vmem:[%s8955_s6 + $0x90] sm:$0xff] }
 0x7b9   :  { %5685 = vmatprep.subr.bf16.mxu1 %v6664_v51  ;;  %5661 = vmatprep.subr.bf16.mxu0 %v6664_v51 }
 0x7bc   :  { %5687 = vmatpush3.bf16.msra.mxu1 %v5686_v49  ;;  %5663 = vmatpush3.bf16.msra.mxu0 %v5686_v49  ;;  %v5736_v49 = vpack.c.bf16 %v2598_v21, %v2594_v9  ;;  %v2609_v9 = vld [vmem:[%s8955_s6 + $0x108] sm:$0xff] }
 0x7bd   :  { %5688 = vmatprep.subr.bf16.mxu1 %v6664_v51  ;;  %5664 = vmatprep.subr.bf16.mxu0 %v6664_v51  ;;  %v2613_v21 = vld [vmem:[%s8955_s6 + $0x128] sm:$0xff] }
 0x7c0   :  { %5690 = vmatpush3.bf16.msra.mxu1 %v5689_v59  ;;  %5666 = vmatpush3.bf16.msra.mxu0 %v5689_v59  ;;  %v2602_v59 = vld [vmem:[%s8955_s6 + $0xd0] sm:$0xff] }
 0x7c1   :  { %5691 = vmatprep.subr.bf16.mxu1 %v6664_v51  ;;  %5667 = vmatprep.subr.bf16.mxu0 %v6664_v51 }
 0x7c4   :  { %5693 = vmatpush3.bf16.msra.mxu1 %v5692_v30  ;;  %5669 = vmatpush3.bf16.msra.mxu0 %v5692_v30  ;;  %v2615_v30 = vld [vmem:[%s8955_s6 + $0x138] sm:$0xff] }
 0x7c5   :  { %5727 = vmatprep.subr.bf16.mxu1 %v5726_v15  ;;  %5695 = vmatprep.subr.bf16.mxu0 %v5694_v43  ;;  %v2585_v15 = vld [vmem:[%s8955_s6 + $0x48] sm:$0xff]  ;;  %v5740_v43 = vpack.c.bf16 %v2606_v2, %v2602_v59  ;;  %v2638_v59 = vld [vmem:[%s8955_s6 + $0x1f0] sm:$0xff]  ;;  %v2608_v2 = vld [vmem:[%s8955_s6 + $0x100] sm:$0xff] }
 0x87a   :  { %v2270_v61 = vpop.f32.mrb[14].mxu0  ;;  %v2341_v10 = vpop.f32.mrb[14].mxu1 }
 0x87b   :  { %v6284_v11 = vadd.f32 %v2270_v61, %v7153_v41  ;;  %v2272_v22 = vpop.f32.mrb[15].mxu0  ;;  %v2343_v54 = vpop.f32.mrb[15].mxu1  ;;  %v6300_v63 = vadd.f32 %v2341_v10, %v7170_v8  ;;  %v5696_v10 = vpack.c.bf16 %v2580_v18, %v2576_v57  ;;  %v5710_v57 = vpack.c.bf16 %v2613_v21, %v2609_v9  ;;  %v2612_v18 = vld [vmem:[%s8955_s6 + $0x120] sm:$0xff] }
 0x87c   :  { %v6285_v7 = vadd.f32 %v2272_v22, %v7157_v31  ;;  %v6301_v17 = vadd.f32 %v2343_v54, %v7164_v0  ;;  %v2582_v0 = vld [vmem:[%s8955_s6 + $0x30] sm:$0xff] }
 0x87d   :  { %v4985_v24 = vmul.f32 -1.442695, %v6284_v11  ;;  %v5728_v42 = vpack.c.bf16 %v2582_v0, %v2578_v35  ;;  %v5742_v11 = vpack.c.bf16 %v2615_v30, %v2611_v20  ;;  %v2610_v22 = vld [vmem:[%s8955_s6 + $0x110] sm:$0xff]  ;;  %v2592_v35 = vld [vmem:[%s8955_s6 + $0x80] sm:$0xff]  ;;  %v2931_v20 = vld [vmem:[%s8956_s7 + $0x18] sm:$0xff] }
 0x87e   :  { %v4986_v16 = vmul.f32 -1.442695, %v6285_v7  ;;  %v4987_v44 = vmul.f32 -1.442695, %v6301_v17  ;;  %v2614_v54 = vld [vmem:[%s8955_s6 + $0x130] sm:$0xff]  ;;  %v2584_v7 = vld [vmem:[%s8955_s6 + $0x40] sm:$0xff] }
 0x87f   :  { %6516 = vpow2.f32 %v4985_v24  ;;  %v2588_v17 = vld [vmem:[%s8955_s6 + $0x60] sm:$0xff]  ;;  %v2935_v30 = vld [vmem:[%s8956_s7 + $0x38] sm:$0xff] }
 0x880   :  { %6518 = vpow2.f32 %v4986_v16  ;;  %v5698_v16 = vpack.c.bf16 %v2589_v27, %v2585_v15  ;;  %v2617_v15 = vld [vmem:[%s8955_s6 + $0x148] sm:$0xff] }
 0x881   :  { %6520 = vpow2.f32 %v4987_v44  ;;  %v2619_v44 = vld [vmem:[%s8955_s6 + $0x158] sm:$0xff]  ;;  %v2621_v27 = vld [vmem:[%s8955_s6 + $0x168] sm:$0xff] }
 0x882   :  { %6522 = vtanh.f32 %v6300_v63  ;;  %v2623_v63 = vld [vmem:[%s8955_s6 + $0x178] sm:$0xff] }
 0x889   :  { %v6517_v6 = vpop.eup %6516 }
 0x88a   :  { %v6519_v13 = vpop.eup %6518  ;;  %v2353_v26 = vadd.f32 1.0, %v6517_v6  ;;  %v2593_v6 = vld [vmem:[%s8955_s6 + $0x88] sm:$0xff] }
 0x88b   :  { %v2359_v32 = vadd.f32 1.0, %v6519_v13  ;;  %v6521_v41 = vpop.eup %6520  ;;  %v2597_v13 = vld [vmem:[%s8955_s6 + $0xa8] sm:$0xff] }
 0x88c   :  { %6524 = vrcp.f32 %v2353_v26  ;;  %v6523_v34 = vpop.eup %6522  ;;  %v2366_v45 = vadd.f32 1.0, %v6521_v41  ;;  %v5744_v26 = vpack.c.bf16 %v2614_v54, %v2610_v22  ;;  %v5746_v41 = vpack.c.bf16 %v2623_v63, %v2619_v44  ;;  %v2934_v22 = vld [vmem:[%s8956_s7 + $0x30] sm:$0xff]  ;;  %v2625_v44 = vld [vmem:[%s8955_s6 + $0x188] sm:$0xff] }
 0x88d   :  { %6526 = vrcp.f32 %v2359_v32  ;;  %v5700_v32 = vpack.c.bf16 %v2588_v17, %v2584_v7  ;;  %v5702_v0 = vpack.c.bf16 %v2597_v13, %v2593_v6  ;;  %v5714_v54 = vpack.c.bf16 %v2621_v27, %v2617_v15  ;;  %v2620_v7 = vld [vmem:[%s8955_s6 + $0x160] sm:$0xff]  ;;  %v2943_v17 = vld [vmem:[%s8956_s7 + $0x78] sm:$0xff]  ;;  %v2629_v63 = vld [vmem:[%s8955_s6 + $0x1a8] sm:$0xff] }
 0x88e   :  { %6528 = vrcp.f32 %v2366_v45  ;;  %v2627_v45 = vld [vmem:[%s8955_s6 + $0x198] sm:$0xff]  ;;  %v2936_v15 = vld [vmem:[%s8956_s7 + $0x40] sm:$0xff] }
 0x88f   :  { %v2940_v27 = vld [vmem:[%s8956_s7 + $0x60] sm:$0xff] }
 0x896   :  { %v6525_v31 = vpop.eup %6524 }
 0x897   :  { %v6527_v8 = vpop.eup %6526  ;;  %v2370_v51 = vmul.f32 %v6525_v31, %v6523_v34  ;;  %v2618_v34 = vld [vmem:[%s8955_s6 + $0x150] sm:$0xff] }
 0x898   :  { %v2369_v39 = vmul.f32 %v6527_v8, %v7758_v19  ;;  %v2599_v19 = vld [vmem:[%s8955_s6 + $0xb8] sm:$0xff]  ;;  %v6529_v28 = vpop.eup %6528  ;;  %v2622_v31 = vld [vmem:[%s8955_s6 + $0x170] sm:$0xff]  ;;  %v2596_v8 = vld [vmem:[%s8955_s6 + $0xa0] sm:$0xff] }
 0x899   :  { %v5734_v5 = vpack.c.bf16 %v2599_v19, %v2595_v12  ;;  %v5706_v12 = vpack.c.bf16 %v2605_v33, %v2601_v62  ;;  %v2604_v19 = vld [vmem:[%s8955_s6 + $0xe0] sm:$0xff] }
 0x89a   :  { %v2371_v50 = vadd.f32 %v2370_v51, %v2369_v39  ;;  %v2631_v51 = vld [vmem:[%s8955_s6 + $0x1b8] sm:$0xff]  ;;  %v5748_v39 = vpack.c.bf16 %v2622_v31, %v2618_v34  ;;  %v5708_v55 = vpack.c.bf16 %v2604_v19, %v2600_v38  ;;  %v2942_v34 = vld [vmem:[%s8956_s7 + $0x70] sm:$0xff]  ;;  %v5718_v31 = vpack.c.bf16 %v2629_v63, %v2625_v44  ;;  %v2636_v38 = vld [vmem:[%s8955_s6 + $0x1e0] sm:$0xff] }
 0x89b   :  { %v2959_v19 = vld [vmem:[%s8956_s7 + $0xf8] sm:$0xff]  ;;  %v2952_v63 = vld [vmem:[%s8956_s7 + $0xc0] sm:$0xff] }
 0x89c   :  { %6530 = vtanh.f32 %v2371_v50  ;;  %5116 = vmatmul.mubr.f32.vlgmr.msra.gmra.mrb[16].mxu1 %v2371_v50  ;;  %v5750_v50 = vpack.c.bf16 %v2631_v51, %v2627_v45  ;;  %v2633_v45 = vld [vmem:[%s8955_s6 + $0x1c8] sm:$0xff] }
 0x89d   :  { %5729 = vmatpush1.bf16.msra.mxu1 %v5728_v42  ;;  %2839 = vmatprep.mubr.f32.mxu1 %v6660_v3  ;;  %v5704_v42 = vpack.c.bf16 %v2596_v8, %v2592_v35  ;;  %v2628_v35 = vld [vmem:[%s8955_s6 + $0x1a0] sm:$0xff]  ;;  %v2951_v8 = vld [vmem:[%s8956_s7 + $0xb8] sm:$0xff]  ;;  %v2637_v51 = vld [vmem:[%s8955_s6 + $0x1e8] sm:$0xff] }
 0x89e   :  { %5731 = vmatprep.subr.bf16.mxu1 %v5730_v56  ;;  %v2626_v56 = vld [vmem:[%s8955_s6 + $0x190] sm:$0xff] }
 0x89f   :  { %v5752_v46 = vpack.c.bf16 %v2630_v53, %v2626_v56  ;;  %v2950_v56 = vld [vmem:[%s8956_s7 + $0xb0] sm:$0xff]  ;;  %v5722_v53 = vpack.c.bf16 %v2637_v51, %v2633_v45  ;;  %v2973_v45 = vld [vmem:[%s8956_s7 + $0x168] sm:$0xff]  ;;  %v2968_v51 = vld [vmem:[%s8956_s7 + $0x140] sm:$0xff] }
 0x8a1   :  { %5733 = vmatpush1.bf16.msra.mxu1 %v5732_v60  ;;  %v2635_v60 = vld [vmem:[%s8955_s6 + $0x1d8] sm:$0xff] }
 0x8a2   :  { %5735 = vmatprep.subr.bf16.mxu1 %v5734_v5  ;;  %v2639_v5 = vld [vmem:[%s8955_s6 + $0x1f8] sm:$0xff] }
 0x8a5   :  { %5737 = vmatpush1.bf16.msra.mxu1 %v5736_v49  ;;  %v5754_v49 = vpack.c.bf16 %v2639_v5, %v2635_v60  ;;  %v2929_v60 = vld [vmem:[%s8956_s7 + $0x8] sm:$0xff] }
 0x8a6   :  { %v6531_v61 = vpop.eup %6530  ;;  %5739 = vmatprep.subr.bf16.mxu1 %v5738_v58  ;;  %v2634_v58 = vld [vmem:[%s8955_s6 + $0x1d0] sm:$0xff]  ;;  %v2933_v5 = vld [vmem:[%s8956_s7 + $0x28] sm:$0xff] }
 0x8a7   :  { %v7902_v24 = vmul.f32 %v6531_v61, %v6529_v28  ;;  %v5756_v28 = vpack.c.bf16 %v2638_v59, %v2634_v58  ;;  %v2616_v61 = vld [vmem:[%s8955_s6 + $0x140] sm:$0xff]  ;;  %v2937_v59 = vld [vmem:[%s8956_s7 + $0x48] sm:$0xff] }
 0x8a8   :  { %v5716_v13 = vpack.c.bf16 %v2620_v7, %v2616_v61  ;;  %v2932_v58 = vld [vmem:[%s8956_s7 + $0x20] sm:$0xff]  ;;  %v2949_v61 = vld [vmem:[%s8956_s7 + $0xa8] sm:$0xff] }
 0x8a9   :  { %5741 = vmatpush1.bf16.msra.mxu1 %v5740_v43  ;;  %5081 = vmatmul.mubr.f32.vlgmr.msra.gmra.mrb[16].mxu0 %v7902_v24  ;;  %v5712_v43 = vpack.c.bf16 %v2612_v18, %v2608_v2  ;;  %v2941_v2 = vld [vmem:[%s8956_s7 + $0x68] sm:$0xff]  ;;  %v2958_v18 = vld [vmem:[%s8956_s7 + $0xf0] sm:$0xff] }
 0x8aa   :  { %5697 = vmatpush1.bf16.msra.mxu0 %v5696_v10  ;;  %5743 = vmatprep.subr.bf16.mxu1 %v5742_v11  ;;  %v7996_v10 = vpack.c.bf16 %v2935_v30, %v2931_v20  ;;  %v2930_v11 = vld [vmem:[%s8956_s7 + $0x10] sm:$0xff]  ;;  %v8115_v30 = vpack.c.bf16 %v2941_v2, %v2937_v59  ;;  %v2953_v7 = vld [vmem:[%s8956_s7 + $0xc8] sm:$0xff]  ;;  %v2979_v2 = vld [vmem:[%s8956_s7 + $0x198] sm:$0xff] }
 0x8ab   :  { %5699 = vmatprep.subr.bf16.mxu0 %v5698_v16  ;;  %2726 = vmatprep.mubr.f32.mxu0 %v6660_v3  ;;  %v2939_v16 = vld [vmem:[%s8956_s7 + $0x58] sm:$0xff]  ;;  %v8019_v6 = vpack.c.bf16 %v2934_v22, %v2930_v11  ;;  %v8136_v11 = vpack.c.bf16 %v2940_v27, %v2936_v15 }
 0x8ad   :  { %5745 = vmatpush1.bf16.msra.mxu1 %v5744_v26  ;;  %v2624_v26 = vld [vmem:[%s8955_s6 + $0x180] sm:$0xff] }
 0x8ae   :  { %5701 = vmatpush1.bf16.msra.mxu0 %v5700_v32  ;;  %5747 = vmatprep.subr.bf16.mxu1 %v5746_v41  ;;  %v8025_v32 = vpack.c.bf16 %v2943_v17, %v2939_v16  ;;  %v2938_v41 = vld [vmem:[%s8956_s7 + $0x50] sm:$0xff]  ;;  %v5720_v33 = vpack.c.bf16 %v2628_v35, %v2624_v26  ;;  %v2957_v16 = vld [vmem:[%s8956_s7 + $0xe8] sm:$0xff] }
 0x8af   :  { %5703 = vmatprep.subr.bf16.mxu0 %v5702_v0  ;;  %v2947_v0 = vld [vmem:[%s8956_s7 + $0x98] sm:$0xff]  ;;  %v8051_v62 = vpack.c.bf16 %v2942_v34, %v2938_v41  ;;  %v8162_v44 = vpack.c.bf16 %v2957_v16, %v2953_v7  ;;  %v2965_v26 = vld [vmem:[%s8956_s7 + $0x128] sm:$0xff]  ;;  %v2966_v35 = vld [vmem:[%s8956_s7 + $0x130] sm:$0xff] }
 0x8b0   :  { %v2984_v16 = vld [vmem:[%s8956_s7 + $0x1c0] sm:$0xff] }
 0x8b1   :  { %5749 = vmatpush1.bf16.msra.mxu1 %v5748_v39  ;;  %v2632_v39 = vld [vmem:[%s8955_s6 + $0x1c0] sm:$0xff] }
 0x8b2   :  { %5705 = vmatpush1.bf16.msra.mxu0 %v5704_v42  ;;  %5751 = vmatprep.subr.bf16.mxu1 %v5750_v50  ;;  %v8057_v42 = vpack.c.bf16 %v2951_v8, %v2947_v0  ;;  %v2946_v50 = vld [vmem:[%s8956_s7 + $0x90] sm:$0xff]  ;;  %v5724_v21 = vpack.c.bf16 %v2636_v38, %v2632_v39  ;;  %v2969_v8 = vld [vmem:[%s8956_s7 + $0x148] sm:$0xff]  ;;  %v2972_v39 = vld [vmem:[%s8956_s7 + $0x160] sm:$0xff] }
 0x8b3   :  { %5707 = vmatprep.subr.bf16.mxu0 %v5706_v12  ;;  %v2955_v12 = vld [vmem:[%s8956_s7 + $0xd8] sm:$0xff]  ;;  %v8083_v9 = vpack.c.bf16 %v2950_v56, %v2946_v50 }
 0x8b4   :  { %v2971_v50 = vld [vmem:[%s8956_s7 + $0x158] sm:$0xff] }
 0x8b5   :  { %5753 = vmatpush1.bf16.msra.mxu1 %v5752_v46  ;;  %v8086_v46 = vpack.c.bf16 %v2959_v19, %v2955_v12  ;;  %v2975_v56 = vld [vmem:[%s8956_s7 + $0x178] sm:$0xff]  ;;  %v2970_v12 = vld [vmem:[%s8956_s7 + $0x150] sm:$0xff] }
 0x8b6   :  { %5709 = vmatpush1.bf16.msra.mxu0 %v5708_v55  ;;  %5755 = vmatprep.subr.bf16.mxu1 %v5754_v49  ;;  %v8088_v55 = vpack.c.bf16 %v2933_v5, %v2929_v60  ;;  %v2928_v49 = vld [vmem:[%s8956_s7] sm:$0xff]  ;;  %v8251_v38 = vpack.c.bf16 %v2975_v56, %v2971_v50  ;;  %v2974_v19 = vld [vmem:[%s8956_s7 + $0x170] sm:$0xff]  ;;  %v2977_v60 = vld [vmem:[%s8956_s7 + $0x188] sm:$0xff] }
 0x8b7   :  { %5711 = vmatprep.subr.bf16.mxu0 %v5710_v57  ;;  %v2954_v57 = vld [vmem:[%s8956_s7 + $0xd0] sm:$0xff]  ;;  %v8111_v20 = vpack.c.bf16 %v2932_v58, %v2928_v49  ;;  %v8263_v5 = vpack.c.bf16 %v2974_v19, %v2970_v12  ;;  %v2976_v49 = vld [vmem:[%s8956_s7 + $0x180] sm:$0xff] }
 0x8b8   :  { %v2980_v58 = vld [vmem:[%s8956_s7 + $0x1a0] sm:$0xff] }
 0x8b9   :  { %5757 = vmatpush1.bf16.msra.mxu1 %v5756_v28  ;;  %v8123_v28 = vpack.c.bf16 %v2958_v18, %v2954_v57  ;;  %v2983_v57 = vld [vmem:[%s8956_s7 + $0x1b8] sm:$0xff]  ;;  %v2978_v18 = vld [vmem:[%s8956_s7 + $0x190] sm:$0xff]  ;;  %v8287_v15 = vpack.c.bf16 %v2980_v58, %v2976_v49  ;;  %v2640_v56 = vld [vmem:[%s8958_s8] sm:$0xf] }
 0x8ba   :  { %5713 = vmatpush1.bf16.msra.mxu0 %v5712_v43  ;;  %5791 = vmatprep.subr.bf16.mxu1 %v7996_v10  ;;  %v2945_v43 = vld [vmem:[%s8956_s7 + $0x88] sm:$0xff]  ;;  %v8289_v27 = vpack.c.bf16 %v2983_v57, %v2979_v2  ;;  %v8383_v12 = vrot.slane %v2640_v56, %v101_v37  ;;  %v8387_v19 = vrot.slane %v2640_v56, %v105_v40 }
 0x8bb   :  { %5715 = vmatprep.subr.bf16.mxu0 %v5714_v54  ;;  %v8139_v22 = vpack.c.bf16 %v2949_v61, %v2945_v43  ;;  %v2944_v54 = vld [vmem:[%s8956_s7 + $0x80] sm:$0xff]  ;;  %v2982_v43 = vld [vmem:[%s8956_s7 + $0x1b0] sm:$0xff]  ;;  %v2985_v61 = vld [vmem:[%s8956_s7 + $0x1c8] sm:$0xff]  ;;  %v8398_v40 = vrot.slane %v2640_v56, %v109_v1 }
 0x8bc   :  { %2840 = vmatmul.mubr.f32.vlgmr.msra.gmra.mrb[18].mxu1 %v7176_v47 }
 0x8bd   :  { %2845 = vmatprep.mubr.f32.mxu1 %v6660_v3  ;;  %5793 = vmatpush1.bf16.msra.mxu1 %v8019_v6 }
 0x8be   :  { %5717 = vmatpush1.bf16.msra.mxu0 %v5716_v13  ;;  %5795 = vmatprep.subr.bf16.mxu1 %v8025_v32  ;;  %v2961_v13 = vld [vmem:[%s8956_s7 + $0x108] sm:$0xff] }
 0x8bf   :  { %5719 = vmatprep.subr.bf16.mxu0 %v5718_v31  ;;  %v8184_v34 = vpack.c.bf16 %v2965_v26, %v2961_v13  ;;  %v2991_v13 = vld [vmem:[%s8956_s7 + $0x1f8] sm:$0xff] }
 0x8c0   :  { %2846 = vmatmul.mubr.f32.gmra.mrb[20].mxu1 %v7220_v25 }
 0x8c1   :  { %2851 = vmatprep.mubr.f32.mxu1 %v6660_v3  ;;  %5797 = vmatpush1.bf16.msra.mxu1 %v8051_v62 }
 0x8c2   :  { %5721 = vmatpush1.bf16.msra.mxu0 %v5720_v33  ;;  %5799 = vmatprep.subr.bf16.mxu1 %v8057_v42  ;;  %v8237_v33 = vpack.c.bf16 %v2973_v45, %v2969_v8 }
 0x8c3   :  { %5723 = vmatprep.subr.bf16.mxu0 %v5722_v53  ;;  %v8249_v53 = vpack.c.bf16 %v2972_v39, %v2968_v51 }
 0x8c4   :  { %2852 = vmatmul.mubr.f32.gmra.mrb[22].mxu1 %v7356_v52 }
 0x8c5   :  { %2857 = vmatprep.mubr.f32.mxu1 %v6660_v3  ;;  %5801 = vmatpush1.bf16.msra.mxu1 %v8083_v9 }
 0x8c6   :  { %5725 = vmatpush1.bf16.msra.mxu0 %v5724_v21  ;;  %5803 = vmatprep.subr.bf16.mxu1 %v8086_v46  ;;  %v2981_v21 = vld [vmem:[%s8956_s7 + $0x1a8] sm:$0xff] }
 0x8c7   :  { %5759 = vmatprep.subr.bf16.mxu0 %v8088_v55  ;;  %v8275_v59 = vpack.c.bf16 %v2981_v21, %v2977_v60 }
 0x8c8   :  { %2858 = vmatmul.mubr.f32.gmra.mrb[24].mxu1 %v7570_v14 }
 0x8c9   :  { %2727 = vmatmul.mubr.f32.vlgmr.msra.gmra.mrb[18].mxu0 %v7176_v47  ;;  %2863 = vmatprep.mubr.f32.mxu1 %v6660_v3  ;;  %v2948_v47 = vld [vmem:[%s8956_s7 + $0xa0] sm:$0xff] }
 0x8ca   :  { %2732 = vmatprep.mubr.f32.mxu0 %v6660_v3  ;;  %5761 = vmatpush1.bf16.msra.mxu0 %v8111_v20  ;;  %v8159_v17 = vpack.c.bf16 %v2948_v47, %v2944_v54  ;;  %v2989_v54 = vld [vmem:[%s8956_s7 + $0x1e8] sm:$0xff]  ;;  %v8302_v47 = vpack.c.bf16 %v2982_v43, %v2978_v18 }
 0x8cb   :  { %5763 = vmatprep.subr.bf16.mxu0 %v8115_v30  ;;  %5805 = vmatpush1.bf16.msra.mxu1 %v8123_v28  ;;  %v8304_v7 = vpack.c.bf16 %v2989_v54, %v2985_v61  ;;  %v8393_v61 = vrot.slane %v2640_v56, %v113_v48 }
 0x8cc   :  { %2864 = vmatmul.mubr.f32.gmra.mrb[26].mxu1 %v7616_v29 }
 0x8cd   :  { %2733 = vmatmul.mubr.f32.gmra.mrb[20].mxu0 %v7220_v25  ;;  %2869 = vmatprep.mubr.f32.mxu1 %v6660_v3  ;;  %v2956_v25 = vld [vmem:[%s8956_s7 + $0xe0] sm:$0xff] }
 0x8ce   :  { %2738 = vmatprep.mubr.f32.mxu0 %v6660_v3  ;;  %5765 = vmatpush1.bf16.msra.mxu0 %v8136_v11  ;;  %v8181_v41 = vpack.c.bf16 %v2956_v25, %v2952_v63  ;;  %v2988_v63 = vld [vmem:[%s8956_s7 + $0x1e0] sm:$0xff]  ;;  %v2987_v25 = vld [vmem:[%s8956_s7 + $0x1d8] sm:$0xff] }
 0x8cf   :  { %5767 = vmatprep.subr.bf16.mxu0 %v8139_v22  ;;  %v8319_v26 = vpack.c.bf16 %v2991_v13, %v2987_v25 }
 0x8d0   :  { %2870 = vmatmul.mubr.f32.gmra.mrb[28].mxu1 %v7660_v23 }
 0x8d1   :  { %2739 = vmatmul.mubr.f32.gmra.mrb[22].mxu0 %v7356_v52  ;;  %2875 = vmatprep.mubr.f32.mxu1 %v6660_v3  ;;  %v2963_v52 = vld [vmem:[%s8956_s7 + $0x118] sm:$0xff] }
 0x8d2   :  { %2744 = vmatprep.mubr.f32.mxu0 %v6660_v3  ;;  %5769 = vmatpush1.bf16.msra.mxu0 %v8159_v17 }
 0x8d3   :  { %5771 = vmatprep.subr.bf16.mxu0 %v8162_v44 }
 0x8d4   :  { %2876 = vmatmul.mubr.f32.gmra.mrb[30].mxu1 %v7761_v4 }
 0x8d5   :  { %2745 = vmatmul.mubr.f32.gmra.mrb[24].mxu0 %v7570_v14  ;;  %2881 = vmatprep.mubr.f32.mxu1 %v6660_v3  ;;  %v2967_v14 = vld [vmem:[%s8956_s7 + $0x138] sm:$0xff] }
 0x8d6   :  { %2750 = vmatprep.mubr.f32.mxu0 %v6660_v3  ;;  %5773 = vmatpush1.bf16.msra.mxu0 %v8181_v41 }
 0x8d7   :  { %5775 = vmatprep.subr.bf16.mxu0 %v8184_v34 }
 0x8d8   :  { %2882 = vmatmul.mubr.f32.gmra.mrb[32].mxu1 %v7902_v24 }
 0x8d9   :  { %2751 = vmatmul.mubr.f32.gmra.mrb[26].mxu0 %v7616_v29  ;;  %3127 = vmatprep.mubr.f32.mxu1 %v6660_v3  ;;  %v2960_v29 = vld [vmem:[%s8956_s7 + $0x100] sm:$0xff] }
 0x8da   :  { %2756 = vmatprep.mubr.f32.mxu0 %v6660_v3 }
 0x8dd   :  { %2757 = vmatmul.mubr.f32.gmra.mrb[28].mxu0 %v7660_v23  ;;  %v2964_v23 = vld [vmem:[%s8956_s7 + $0x120] sm:$0xff] }
 0x8de   :  { %2762 = vmatprep.mubr.f32.mxu0 %v6660_v3  ;;  %v8219_v31 = vpack.c.bf16 %v2964_v23, %v2960_v29  ;;  %v2990_v29 = vld [vmem:[%s8956_s7 + $0x1f0] sm:$0xff] }
 0x8e0   :  { %5777 = vmatpush1.bf16.msra.mxu0 %v8219_v31 }
 0x8e1   :  { %2763 = vmatmul.mubr.f32.gmra.mrb[30].mxu0 %v7761_v4  ;;  %v8214_v4 = vpack.c.bf16 %v2967_v14, %v2963_v52  ;;  %5779 = vmatprep.subr.bf16.mxu0 %v8237_v33  ;;  %v8322_v52 = vpack.c.bf16 %v2988_v63, %v2984_v16  ;;  %v2986_v14 = vld [vmem:[%s8956_s7 + $0x1d0] sm:$0xff] }
 0x8e2   :  { %2768 = vmatprep.mubr.f32.mxu0 %v6660_v3  ;;  %v8333_v23 = vpack.c.bf16 %v2990_v29, %v2986_v14 }
 0x8e3   :  { %5807 = vmatprep.subr.bf16.mxu1 %v8214_v4 }
 0x8e4   :  { %5781 = vmatpush1.bf16.msra.mxu0 %v8249_v53 }
 0x8e5   :  { %2769 = vmatmul.mubr.f32.gmra.mrb[32].mxu0 %v7902_v24  ;;  %v2962_v24 = vld [vmem:[%s8956_s7 + $0x110] sm:$0xff]  ;;  %5783 = vmatprep.subr.bf16.mxu0 %v8275_v59 }
 0x8e6   :  { %3056 = vmatprep.mubr.f32.mxu0 %v6660_v3  ;;  %v8225_v0 = vpack.c.bf16 %v2966_v35, %v2962_v24  ;;  %v4989_v24 = vld [vmem:[%s8957_s5] ss:$0 sm:$0xff] }
 0x8e8   :  { %5809 = vmatpush1.bf16.msra.mxu1 %v8225_v0  ;;  %5785 = vmatpush1.bf16.msra.mxu0 %v8287_v15 }
 0x8e9   :  { %5811 = vmatprep.subr.bf16.mxu1 %v8251_v38  ;;  %5787 = vmatprep.subr.bf16.mxu0 %v8304_v7 }
 0x8ec   :  { %5813 = vmatpush1.bf16.msra.mxu1 %v8263_v5  ;;  %5789 = vmatpush1.bf16.msra.mxu0 %v8322_v52 }
 0x8ed   :  { %5815 = vmatprep.subr.bf16.mxu1 %v8289_v27  ;;  %5823 = vmatprep.subr.bf16.mxu0 %v8088_v55 }
 0x8f0   :  { %5817 = vmatpush1.bf16.msra.mxu1 %v8302_v47 }
 0x8f1   :  { %5819 = vmatprep.subr.bf16.mxu1 %v8319_v26 }
 0x8f4   :  { %5821 = vmatpush1.bf16.msra.mxu1 %v8333_v23 }
 0x8f5   :  { %5855 = vmatprep.subr.bf16.mxu1 %v7996_v10 }
 0x96f   :  { %v2563_v35 = vpop.f32.mrb[16].mxu1 }
 0x970   :  { %v8342_v8 = vadd.f32 %v4989_v24, %v2563_v35  ;;  %v5117_v45 = vpop.f32.mrb[17].mxu1 }
 0x97c   :  { %v2468_v51 = vpop.f32.mrb[16].mxu0 }
 0x97d   :  { %v2469_v39 = vadd.f32 %v4989_v24, %v2468_v51  ;;  %v5082_v50 = vpop.f32.mrb[17].mxu0 }
 0x97f   :  { %3057 = vmatmul.mubr.f32.vlgmr.msra.gmra.mrb[18].mxu0 %v2469_v39  ;;  %3128 = vmatmul.mubr.f32.vlgmr.msra.gmra.mrb[18].mxu1 %v2469_v39 }
 0x980   :  { %5825 = vmatpush1.bf16.msra.mxu0 %v8111_v20  ;;  %5857 = vmatpush1.bf16.msra.mxu1 %v8019_v6 }
 0x981   :  { %5827 = vmatprep.subr.bf16.mxu0 %v8115_v30  ;;  %5859 = vmatprep.subr.bf16.mxu1 %v8025_v32 }
 0x982   :  { %3301 = vmatprep.mubr.f32.mxu0 %v6660_v3  ;;  %3372 = vmatprep.mubr.f32.mxu1 %v6660_v3 }
 0x984   :  { %5829 = vmatpush1.bf16.msra.mxu0 %v8136_v11  ;;  %5861 = vmatpush1.bf16.msra.mxu1 %v8051_v62 }
 0x985   :  { %5831 = vmatprep.subr.bf16.mxu0 %v8139_v22  ;;  %5863 = vmatprep.subr.bf16.mxu1 %v8057_v42 }
 0x988   :  { %5833 = vmatpush1.bf16.msra.mxu0 %v8159_v17  ;;  %5865 = vmatpush1.bf16.msra.mxu1 %v8083_v9 }
 0x989   :  { %5835 = vmatprep.subr.bf16.mxu0 %v8162_v44  ;;  %5867 = vmatprep.subr.bf16.mxu1 %v8086_v46 }
 0x98c   :  { %5837 = vmatpush1.bf16.msra.mxu0 %v8181_v41  ;;  %5869 = vmatpush1.bf16.msra.mxu1 %v8123_v28 }
 0x98d   :  { %5839 = vmatprep.subr.bf16.mxu0 %v8184_v34  ;;  %5871 = vmatprep.subr.bf16.mxu1 %v8214_v4 }
 0x990   :  { %5841 = vmatpush1.bf16.msra.mxu0 %v8219_v31  ;;  %5873 = vmatpush1.bf16.msra.mxu1 %v8225_v0 }
 0x991   :  { %5843 = vmatprep.subr.bf16.mxu0 %v8237_v33  ;;  %5875 = vmatprep.subr.bf16.mxu1 %v8251_v38 }
 0x994   :  { %5845 = vmatpush1.bf16.msra.mxu0 %v8249_v53  ;;  %5877 = vmatpush1.bf16.msra.mxu1 %v8263_v5 }
 0x995   :  { %5847 = vmatprep.subr.bf16.mxu0 %v8275_v59  ;;  %5879 = vmatprep.subr.bf16.mxu1 %v8289_v27 }
 0x998   :  { %5849 = vmatpush1.bf16.msra.mxu0 %v8287_v15  ;;  %5881 = vmatpush1.bf16.msra.mxu1 %v8302_v47 }
 0x999   :  { %5851 = vmatprep.subr.bf16.mxu0 %v8304_v7  ;;  %5883 = vmatprep.subr.bf16.mxu1 %v8319_v26 }
 0x99c   :  { %5853 = vmatpush1.bf16.msra.mxu0 %v8322_v52  ;;  %5885 = vmatpush1.bf16.msra.mxu1 %v8333_v23 }
 0x99d   :  { %5887 = vmatprep.subr.bf16.mxu0 %v8088_v55  ;;  %5919 = vmatprep.subr.bf16.mxu1 %v7996_v10 }
 0xa52   :  { %v3058_v60 = vpop.f32.mrb[18].mxu0  ;;  %v3129_v21 = vpop.f32.mrb[18].mxu1 }
 0xa53   :  { %v6302_v49 = vadd.f32 %v3058_v60, %v8383_v12  ;;  %v3060_v58 = vpop.f32.mrb[19].mxu0  ;;  %v3131_v2 = vpop.f32.mrb[19].mxu1  ;;  %v6318_v16 = vadd.f32 %v3129_v21, %v8398_v40 }
 0xa54   :  { %v6303_v57 = vadd.f32 %v3060_v58, %v8387_v19  ;;  %v6319_v37 = vadd.f32 %v3131_v2, %v8393_v61 }
 0xa55   :  { %v4990_v18 = vmul.f32 -1.442695, %v6302_v49 }
 0xa56   :  { %v4991_v43 = vmul.f32 -1.442695, %v6303_v57  ;;  %v4992_v54 = vmul.f32 -1.442695, %v6319_v37 }
 0xa57   :  { %6532 = vpow2.f32 %v4990_v18 }
 0xa58   :  { %6534 = vpow2.f32 %v4991_v43 }
 0xa59   :  { %6536 = vpow2.f32 %v4992_v54 }
 0xa5a   :  { %6538 = vtanh.f32 %v6318_v16 }
 0xa61   :  { %v6533_v63 = vpop.eup %6532 }
 0xa62   :  { %v6535_v25 = vpop.eup %6534  ;;  %v3141_v13 = vadd.f32 1.0, %v6533_v63 }
 0xa63   :  { %v3147_v14 = vadd.f32 1.0, %v6535_v25  ;;  %v6537_v48 = vpop.eup %6536 }
 0xa64   :  { %6540 = vrcp.f32 %v3141_v13  ;;  %v6539_v29 = vpop.eup %6538  ;;  %v3154_v51 = vadd.f32 1.0, %v6537_v48 }
 0xa65   :  { %6542 = vrcp.f32 %v3147_v14 }
 0xa66   :  { %6544 = vrcp.f32 %v3154_v51 }
 0xa6e   :  { %v6541_v24 = vpop.eup %6540 }
 0xa6f   :  { %v6543_v35 = vpop.eup %6542  ;;  %v3158_v45 = vmul.f32 %v6541_v24, %v6539_v29 }
 0xa70   :  { %v3157_v36 = vmul.f32 %v6543_v35, %v8342_v8  ;;  %v6545_v39 = vpop.eup %6544 }
 0xa72   :  { %v8402_v1 = vadd.f32 %v3158_v45, %v3157_v36 }
 0xa74   :  { %6546 = vtanh.f32 %v8402_v1 }
 0xa7e   :  { %v6547_v50 = vpop.eup %6546 }
 0xa7f   :  { %v3161_v56 = vmul.f32 %v6547_v50, %v6545_v39  ;;  %v3918_v50 = vld [vmem:[%s8956_s7 + $0x38] sm:$0xff] }
 0xa81   :  { %3302 = vmatmul.mubr.f32.vlgmr.msra.gmra.mrb[20].mxu0 %v3161_v56  ;;  %3373 = vmatmul.mubr.f32.vlgmr.msra.gmra.mrb[20].mxu1 %v3161_v56  ;;  %4888 = vst.msk [vmem:[%s8959_s9] sm:$0xff] %vm33_vm0, %v3161_v56  ;;  %v3911_v56 = vld [vmem:[%s8956_s7] sm:$0xff] }
 0xa82   :  { %5889 = vmatpush1.bf16.msra.mxu0 %v8111_v20  ;;  %5921 = vmatpush1.bf16.msra.mxu1 %v8019_v6 }
 0xa83   :  { %5891 = vmatprep.subr.bf16.mxu0 %v8115_v30  ;;  %5923 = vmatprep.subr.bf16.mxu1 %v8025_v32 }
 0xa84   :  { %3547 = vmatprep.mubr.f32.mxu0 %v6660_v3  ;;  %3618 = vmatprep.mubr.f32.mxu1 %v6660_v3 }
 0xa86   :  { %5893 = vmatpush1.bf16.msra.mxu0 %v8136_v11  ;;  %5925 = vmatpush1.bf16.msra.mxu1 %v8051_v62 }
 0xa87   :  { %5895 = vmatprep.subr.bf16.mxu0 %v8139_v22  ;;  %5927 = vmatprep.subr.bf16.mxu1 %v8057_v42 }
 0xa8a   :  { %5897 = vmatpush1.bf16.msra.mxu0 %v8159_v17  ;;  %5929 = vmatpush1.bf16.msra.mxu1 %v8083_v9 }
 0xa8b   :  { %5899 = vmatprep.subr.bf16.mxu0 %v8162_v44  ;;  %5931 = vmatprep.subr.bf16.mxu1 %v8086_v46 }
 0xa8e   :  { %5901 = vmatpush1.bf16.msra.mxu0 %v8181_v41  ;;  %5933 = vmatpush1.bf16.msra.mxu1 %v8123_v28 }
 0xa8f   :  { %5903 = vmatprep.subr.bf16.mxu0 %v8184_v34  ;;  %5935 = vmatprep.subr.bf16.mxu1 %v8214_v4 }
 0xa92   :  { %5905 = vmatpush1.bf16.msra.mxu0 %v8219_v31  ;;  %5937 = vmatpush1.bf16.msra.mxu1 %v8225_v0 }
 0xa93   :  { %5907 = vmatprep.subr.bf16.mxu0 %v8237_v33  ;;  %5939 = vmatprep.subr.bf16.mxu1 %v8251_v38 }
 0xa96   :  { %5909 = vmatpush1.bf16.msra.mxu0 %v8249_v53  ;;  %5941 = vmatpush1.bf16.msra.mxu1 %v8263_v5 }
 0xa97   :  { %5911 = vmatprep.subr.bf16.mxu0 %v8275_v59  ;;  %5943 = vmatprep.subr.bf16.mxu1 %v8289_v27 }
 0xa9a   :  { %5913 = vmatpush1.bf16.msra.mxu0 %v8287_v15  ;;  %5945 = vmatpush1.bf16.msra.mxu1 %v8302_v47 }
 0xa9b   :  { %5915 = vmatprep.subr.bf16.mxu0 %v8304_v7  ;;  %5947 = vmatprep.subr.bf16.mxu1 %v8319_v26 }
 0xa9e   :  { %5917 = vmatpush1.bf16.msra.mxu0 %v8322_v52  ;;  %5949 = vmatpush1.bf16.msra.mxu1 %v8333_v23 }
 0xa9f   :  { %5951 = vmatprep.subr.bf16.mxu0 %v8088_v55  ;;  %5983 = vmatprep.subr.bf16.mxu1 %v7996_v10 }
 0xb54   :  { %v3303_v8 = vpop.f32.mrb[20].mxu0  ;;  %v3374_v60 = vpop.f32.mrb[20].mxu1 }
 0xb55   :  { %v6304_v21 = vadd.f32 %v3303_v8, %v8383_v12  ;;  %v3305_v49 = vpop.f32.mrb[21].mxu0  ;;  %v3376_v58 = vpop.f32.mrb[21].mxu1  ;;  %v6320_v54 = vadd.f32 %v3374_v60, %v8398_v40  ;;  %v3915_v8 = vld [vmem:[%s8956_s7 + $0x20] sm:$0xff] }
 0xb56   :  { %v6305_v2 = vadd.f32 %v3305_v49, %v8387_v19  ;;  %v6321_v43 = vadd.f32 %v3376_v58, %v8393_v61  ;;  %v3913_v49 = vld [vmem:[%s8956_s7 + $0x10] sm:$0xff] }
 0xb57   :  { %v4993_v57 = vmul.f32 -1.442695, %v6304_v21  ;;  %v8521_v21 = vpack.c.bf16 %v3915_v8, %v3911_v56  ;;  %v3917_v58 = vld [vmem:[%s8956_s7 + $0x30] sm:$0xff]  ;;  %v3956_v56 = vld [vmem:[%s8956_s7 + $0x168] sm:$0xff]  ;;  %v3954_v8 = vld [vmem:[%s8956_s7 + $0x158] sm:$0xff] }
 0xb58   :  { %v4994_v18 = vmul.f32 -1.442695, %v6305_v2  ;;  %v4995_v37 = vmul.f32 -1.442695, %v6321_v43  ;;  %v8530_v2 = vpack.c.bf16 %v3917_v58, %v3913_v49  ;;  %v3922_v43 = vld [vmem:[%s8956_s7 + $0x58] sm:$0xff] }
 0xb59   :  { %6548 = vpow2.f32 %v4993_v57  ;;  %v3920_v57 = vld [vmem:[%s8956_s7 + $0x48] sm:$0xff]  ;;  %v3958_v49 = vld [vmem:[%s8956_s7 + $0x178] sm:$0xff] }
 0xb5a   :  { %6550 = vpow2.f32 %v4994_v18  ;;  %v3924_v18 = vld [vmem:[%s8956_s7 + $0x68] sm:$0xff] }
 0xb5b   :  { %6552 = vpow2.f32 %v4995_v37  ;;  %v8544_v37 = vpack.c.bf16 %v3924_v18, %v3920_v57  ;;  %v8696_v57 = vpack.c.bf16 %v3958_v49, %v3954_v8  ;;  %v3951_v18 = vld [vmem:[%s8956_s7 + $0x140] sm:$0xff] }
 0xb5c   :  { %6554 = vtanh.f32 %v6320_v54  ;;  %v3926_v54 = vld [vmem:[%s8956_s7 + $0x78] sm:$0xff] }
 0xb63   :  { %v6549_v55 = vpop.eup %6548 }
 0xb64   :  { %v6551_v16 = vpop.eup %6550  ;;  %v3386_v10 = vadd.f32 1.0, %v6549_v55  ;;  %v3919_v55 = vld [vmem:[%s8956_s7 + $0x40] sm:$0xff] }
 0xb65   :  { %v3392_v63 = vadd.f32 1.0, %v6551_v16  ;;  %v6553_v25 = vpop.eup %6552  ;;  %v3923_v16 = vld [vmem:[%s8956_s7 + $0x60] sm:$0xff] }
 0xb66   :  { %6556 = vrcp.f32 %v3386_v10  ;;  %v6555_v13 = vpop.eup %6554  ;;  %v3399_v24 = vadd.f32 1.0, %v6553_v25  ;;  %v8555_v10 = vpack.c.bf16 %v3926_v54, %v3922_v43  ;;  %v3921_v25 = vld [vmem:[%s8956_s7 + $0x50] sm:$0xff]  ;;  %v3955_v43 = vld [vmem:[%s8956_s7 + $0x160] sm:$0xff] }
 0xb67   :  { %6558 = vrcp.f32 %v3392_v63  ;;  %v8557_v63 = vpack.c.bf16 %v3923_v16, %v3919_v55  ;;  %v3953_v54 = vld [vmem:[%s8956_s7 + $0x150] sm:$0xff]  ;;  %v8708_v55 = vpack.c.bf16 %v3955_v43, %v3951_v18 }
 0xb68   :  { %6560 = vrcp.f32 %v3399_v24  ;;  %v3930_v24 = vld [vmem:[%s8956_s7 + $0x98] sm:$0xff]  ;;  %v3957_v16 = vld [vmem:[%s8956_s7 + $0x170] sm:$0xff] }
 0xb70   :  { %v6557_v14 = vpop.eup %6556 }
 0xb71   :  { %v6559_v48 = vpop.eup %6558  ;;  %v3403_v29 = vmul.f32 %v6557_v14, %v6555_v13  ;;  %v3925_v13 = vld [vmem:[%s8956_s7 + $0x70] sm:$0xff] }
 0xb72   :  { %v3402_v35 = vmul.f32 %v6559_v48, %v8402_v1  ;;  %v6561_v51 = vpop.eup %6560  ;;  %v8566_v14 = vpack.c.bf16 %v3925_v13, %v3921_v25  ;;  %v3928_v48 = vld [vmem:[%s8956_s7 + $0x88] sm:$0xff] }
 0xb73   :  { %v3960_v25 = vld [vmem:[%s8956_s7 + $0x188] sm:$0xff] }
 0xb74   :  { %v8448_v45 = vadd.f32 %v3403_v29, %v3402_v35  ;;  %v3932_v29 = vld [vmem:[%s8956_s7 + $0xa8] sm:$0xff] }
 0xb75   :  { %v8580_v35 = vpack.c.bf16 %v3932_v29, %v3928_v48  ;;  %v3964_v13 = vld [vmem:[%s8956_s7 + $0x1a8] sm:$0xff]  ;;  %v8721_v48 = vpack.c.bf16 %v3957_v16, %v3953_v54 }
 0xb76   :  { %6562 = vtanh.f32 %v8448_v45  ;;  %v8723_v29 = vpack.c.bf16 %v3964_v13, %v3960_v25 }
 0xb80   :  { %v6563_v36 = vpop.eup %6562 }
 0xb81   :  { %v3406_v39 = vmul.f32 %v6563_v36, %v6561_v51  ;;  %v3927_v51 = vld [vmem:[%s8956_s7 + $0x80] sm:$0xff] }
 0xb82   :  { %v3931_v36 = vld [vmem:[%s8956_s7 + $0xa0] sm:$0xff] }
 0xb83   :  { %4891 = vrot.lane.b32.xlu0 %v3406_v39, %s6662_s16  ;;  %3548 = vmatmul.mubr.f32.vlgmr.msra.gmra.mrb[22].mxu0 %v3406_v39 }
 0xb84   :  { %3619 = vmatmul.mubr.f32.vlgmr.msra.gmra.mrb[22].mxu1 %v3406_v39  ;;  %5953 = vmatpush1.bf16.msra.mxu0 %v8111_v20 }
 0xb85   :  { %5985 = vmatpush1.bf16.msra.mxu1 %v8019_v6  ;;  %5955 = vmatprep.subr.bf16.mxu0 %v8115_v30 }
 0xb86   :  { %5987 = vmatprep.subr.bf16.mxu1 %v8025_v32  ;;  %3793 = vmatprep.mubr.f32.mxu0 %v6660_v3 }
 0xb87   :  { %3864 = vmatprep.mubr.f32.mxu1 %v6660_v3 }
 0xb88   :  { %5957 = vmatpush1.bf16.msra.mxu0 %v8136_v11 }
 0xb89   :  { %5989 = vmatpush1.bf16.msra.mxu1 %v8051_v62  ;;  %5959 = vmatprep.subr.bf16.mxu0 %v8139_v22 }
 0xb8a   :  { %5991 = vmatprep.subr.bf16.mxu1 %v8057_v42 }
 0xb8c   :  { %5961 = vmatpush1.bf16.msra.mxu0 %v8159_v17 }
 0xb8d   :  { %5993 = vmatpush1.bf16.msra.mxu1 %v8083_v9  ;;  %5963 = vmatprep.subr.bf16.mxu0 %v8162_v44 }
 0xb8e   :  { %5995 = vmatprep.subr.bf16.mxu1 %v8086_v46 }
 0xb90   :  { %5965 = vmatpush1.bf16.msra.mxu0 %v8181_v41 }
 0xb91   :  { %5997 = vmatpush1.bf16.msra.mxu1 %v8123_v28  ;;  %5967 = vmatprep.subr.bf16.mxu0 %v8184_v34 }
 0xb92   :  { %5999 = vmatprep.subr.bf16.mxu1 %v8214_v4 }
 0xb94   :  { %5969 = vmatpush1.bf16.msra.mxu0 %v8219_v31 }
 0xb95   :  { %6001 = vmatpush1.bf16.msra.mxu1 %v8225_v0  ;;  %5971 = vmatprep.subr.bf16.mxu0 %v8237_v33 }
 0xb96   :  { %6003 = vmatprep.subr.bf16.mxu1 %v8251_v38 }
 0xb98   :  { %5973 = vmatpush1.bf16.msra.mxu0 %v8249_v53 }
 0xb99   :  { %6005 = vmatpush1.bf16.msra.mxu1 %v8263_v5  ;;  %5975 = vmatprep.subr.bf16.mxu0 %v8275_v59 }
 0xb9a   :  { %6007 = vmatprep.subr.bf16.mxu1 %v8289_v27 }
 0xb9c   :  { %5977 = vmatpush1.bf16.msra.mxu0 %v8287_v15 }
 0xb9d   :  { %6009 = vmatpush1.bf16.msra.mxu1 %v8302_v47  ;;  %5979 = vmatprep.subr.bf16.mxu0 %v8304_v7 }
 0xb9e   :  { %6011 = vmatprep.subr.bf16.mxu1 %v8319_v26  ;;  %v3912_v26 = vld [vmem:[%s8956_s7 + $0x8] sm:$0xff] }
 0xba0   :  { %5981 = vmatpush1.bf16.msra.mxu0 %v8322_v52  ;;  %v3916_v52 = vld [vmem:[%s8956_s7 + $0x28] sm:$0xff] }
 0xba1   :  { %6013 = vmatpush1.bf16.msra.mxu1 %v8333_v23  ;;  %v3914_v23 = vld [vmem:[%s8956_s7 + $0x18] sm:$0xff]  ;;  %v8508_v1 = vpack.c.bf16 %v3916_v52, %v3912_v26  ;;  %v3945_v26 = vld [vmem:[%s8956_s7 + $0x110] sm:$0xff] }
 0xba2   :  { %v8519_v60 = vpack.c.bf16 %v3918_v50, %v3914_v23  ;;  %v3949_v52 = vld [vmem:[%s8956_s7 + $0x130] sm:$0xff]  ;;  %v3952_v23 = vld [vmem:[%s8956_s7 + $0x148] sm:$0xff] }
 0xba3   :  { %6015 = vmatprep.subr.bf16.mxu0 %v8508_v1  ;;  %v8681_v50 = vpack.c.bf16 %v3949_v52, %v3945_v26  ;;  %v8694_v58 = vpack.c.bf16 %v3956_v56, %v3952_v23 }
 0xba4   :  { %6047 = vmatprep.subr.bf16.mxu1 %v8519_v60 }
 0xbf5   :  { %v4892_v6 = vpop.permute.xlu0 %4891 }
 0xbf6   :  { %4895 = vst.msk [vmem:[%s8959_s9] sm:$0xff] %vm4894_vm2, %v4892_v6  ;;  %v8593_v6 = vpack.c.bf16 %v3931_v36, %v3927_v51  ;;  %v3959_v51 = vld [vmem:[%s8956_s7 + $0x180] sm:$0xff] }
 0xc56   :  { %v3549_v32 = vpop.f32.mrb[22].mxu0 }
 0xc57   :  { %v6306_v62 = vadd.f32 %v3549_v32, %v8383_v12  ;;  %v3620_v42 = vpop.f32.mrb[22].mxu1  ;;  %v3551_v9 = vpop.f32.mrb[23].mxu0  ;;  %v3929_v32 = vld [vmem:[%s8956_s7 + $0x90] sm:$0xff] }
 0xc58   :  { %v6307_v46 = vadd.f32 %v3551_v9, %v8387_v19  ;;  %v3622_v20 = vpop.f32.mrb[23].mxu1  ;;  %v6322_v17 = vadd.f32 %v3620_v42, %v8398_v40  ;;  %v3936_v9 = vld [vmem:[%s8956_s7 + $0xc8] sm:$0xff] }
 0xc59   :  { %v4996_v30 = vmul.f32 -1.442695, %v6306_v62  ;;  %v6323_v11 = vadd.f32 %v3622_v20, %v8393_v61  ;;  %v3933_v62 = vld [vmem:[%s8956_s7 + $0xb0] sm:$0xff]  ;;  %v3938_v20 = vld [vmem:[%s8956_s7 + $0xd8] sm:$0xff] }
 0xc5a   :  { %v4997_v28 = vmul.f32 -1.442695, %v6307_v46  ;;  %v8602_v42 = vpack.c.bf16 %v3933_v62, %v3929_v32  ;;  %v3940_v46 = vld [vmem:[%s8956_s7 + $0xe8] sm:$0xff]  ;;  %v3963_v32 = vld [vmem:[%s8956_s7 + $0x1a0] sm:$0xff]  ;;  %v3961_v62 = vld [vmem:[%s8956_s7 + $0x190] sm:$0xff] }
 0xc5b   :  { %6564 = vpow2.f32 %v4996_v30  ;;  %v4998_v22 = vmul.f32 -1.442695, %v6323_v11  ;;  %v8616_v30 = vpack.c.bf16 %v3940_v46, %v3936_v9  ;;  %v3935_v11 = vld [vmem:[%s8956_s7 + $0xc0] sm:$0xff]  ;;  %v3965_v9 = vld [vmem:[%s8956_s7 + $0x1b0] sm:$0xff]  ;;  %v8746_v46 = vpack.c.bf16 %v3963_v32, %v3959_v51 }
 0xc5c   :  { %6566 = vpow2.f32 %v4997_v28  ;;  %v3942_v28 = vld [vmem:[%s8956_s7 + $0xf8] sm:$0xff] }
 0xc5d   :  { %6568 = vpow2.f32 %v4998_v22  ;;  %v3939_v22 = vld [vmem:[%s8956_s7 + $0xe0] sm:$0xff] }
 0xc5e   :  { %6570 = vtanh.f32 %v6322_v17  ;;  %v8627_v17 = vpack.c.bf16 %v3942_v28, %v3938_v20  ;;  %v3968_v20 = vld [vmem:[%s8956_s7 + $0x1c8] sm:$0xff] }
 0xc5f   :  { %v3972_v28 = vld [vmem:[%s8956_s7 + $0x1e8] sm:$0xff] }
 0xc65   :  { %v6565_v44 = vpop.eup %6564 }
 0xc66   :  { %v6567_v41 = vpop.eup %6566  ;;  %v3632_v34 = vadd.f32 1.0, %v6565_v44  ;;  %v8629_v44 = vpack.c.bf16 %v3939_v22, %v3935_v11  ;;  %v3970_v11 = vld [vmem:[%s8956_s7 + $0x1d8] sm:$0xff]  ;;  %v8759_v22 = vpack.c.bf16 %v3965_v9, %v3961_v62 }
 0xc67   :  { %v3638_v4 = vadd.f32 1.0, %v6567_v41  ;;  %v6569_v31 = vpop.eup %6568  ;;  %v3937_v41 = vld [vmem:[%s8956_s7 + $0xd0] sm:$0xff] }
 0xc68   :  { %6572 = vrcp.f32 %v3632_v34  ;;  %v6571_v0 = vpop.eup %6570  ;;  %v3645_v5 = vadd.f32 1.0, %v6569_v31  ;;  %v3941_v34 = vld [vmem:[%s8956_s7 + $0xf0] sm:$0xff]  ;;  %v3944_v31 = vld [vmem:[%s8956_s7 + $0x108] sm:$0xff] }
 0xc69   :  { %6574 = vrcp.f32 %v3638_v4  ;;  %v8638_v4 = vpack.c.bf16 %v3941_v34, %v3937_v41  ;;  %v8761_v41 = vpack.c.bf16 %v3972_v28, %v3968_v20  ;;  %v3974_v34 = vld [vmem:[%s8956_s7 + $0x1f8] sm:$0xff] }
 0xc6a   :  { %6576 = vrcp.f32 %v3645_v5  ;;  %v3943_v5 = vld [vmem:[%s8956_s7 + $0x100] sm:$0xff] }
 0xc72   :  { %v6573_v33 = vpop.eup %6572 }
 0xc73   :  { %v6575_v53 = vpop.eup %6574  ;;  %v3649_v38 = vmul.f32 %v6573_v33, %v6571_v0  ;;  %v3948_v0 = vld [vmem:[%s8956_s7 + $0x128] sm:$0xff]  ;;  %v3946_v33 = vld [vmem:[%s8956_s7 + $0x118] sm:$0xff] }
 0xc74   :  { %v3648_v59 = vmul.f32 %v6575_v53, %v8448_v45  ;;  %v6577_v27 = vpop.eup %6576  ;;  %v3934_v45 = vld [vmem:[%s8956_s7 + $0xb8] sm:$0xff]  ;;  %v8652_v53 = vpack.c.bf16 %v3948_v0, %v3944_v31  ;;  %v3967_v31 = vld [vmem:[%s8956_s7 + $0x1c0] sm:$0xff] }
 0xc75   :  { %v8591_v39 = vpack.c.bf16 %v3934_v45, %v3930_v24  ;;  %v3962_v24 = vld [vmem:[%s8956_s7 + $0x198] sm:$0xff]  ;;  %v3971_v0 = vld [vmem:[%s8956_s7 + $0x1e0] sm:$0xff] }
 0xc76   :  { %v8493_v15 = vadd.f32 %v3649_v38, %v3648_v59  ;;  %v3950_v38 = vld [vmem:[%s8956_s7 + $0x138] sm:$0xff]  ;;  %v3947_v59 = vld [vmem:[%s8956_s7 + $0x120] sm:$0xff] }
 0xc77   :  { %v3966_v45 = vld [vmem:[%s8956_s7 + $0x1b8] sm:$0xff] }
 0xc78   :  { %6578 = vtanh.f32 %v8493_v15  ;;  %v8734_v36 = vpack.c.bf16 %v3966_v45, %v3962_v24 }
 0xc82   :  { %v6579_v47 = vpop.eup %6578 }
 0xc83   :  { %v3652_v7 = vmul.f32 %v6579_v47, %v6577_v27  ;;  %v8663_v47 = vpack.c.bf16 %v3950_v38, %v3946_v33  ;;  %v8773_v33 = vpack.c.bf16 %v3974_v34, %v3970_v11  ;;  %v3969_v38 = vld [vmem:[%s8956_s7 + $0x1d0] sm:$0xff] }
 0xc85   :  { %4898 = vrot.lane.b32.xlu0 %v3652_v7, %s6663_s18  ;;  %3794 = vmatmul.mubr.f32.vlgmr.msra.gmra.mrb[24].mxu0 %v3652_v7 }
 0xc86   :  { %3865 = vmatmul.mubr.f32.vlgmr.msra.gmra.mrb[24].mxu1 %v3652_v7  ;;  %4039 = vmatprep.mubr.f32.mxu0 %v6660_v3  ;;  %v8665_v7 = vpack.c.bf16 %v3947_v59, %v3943_v5  ;;  %v3973_v5 = vld [vmem:[%s8956_s7 + $0x1f0] sm:$0xff]  ;;  %v8782_v59 = vpack.c.bf16 %v3971_v0, %v3967_v31 }
 0xc87   :  { %4110 = vmatprep.mubr.f32.mxu1 %v6660_v3  ;;  %6017 = vmatpush1.bf16.msra.mxu0 %v8521_v21 }
 0xc88   :  { %6049 = vmatpush1.bf16.msra.mxu1 %v8530_v2  ;;  %6019 = vmatprep.subr.bf16.mxu0 %v8544_v37 }
 0xc89   :  { %6051 = vmatprep.subr.bf16.mxu1 %v8555_v10 }
 0xc8b   :  { %6021 = vmatpush1.bf16.msra.mxu0 %v8557_v63 }
 0xc8c   :  { %6053 = vmatpush1.bf16.msra.mxu1 %v8566_v14  ;;  %6023 = vmatprep.subr.bf16.mxu0 %v8580_v35 }
 0xc8d   :  { %6055 = vmatprep.subr.bf16.mxu1 %v8591_v39 }
 0xc8f   :  { %6025 = vmatpush1.bf16.msra.mxu0 %v8593_v6 }
 0xc90   :  { %6057 = vmatpush1.bf16.msra.mxu1 %v8602_v42  ;;  %6027 = vmatprep.subr.bf16.mxu0 %v8616_v30 }
 0xc91   :  { %6059 = vmatprep.subr.bf16.mxu1 %v8627_v17 }
 0xc93   :  { %6029 = vmatpush1.bf16.msra.mxu0 %v8629_v44 }
 0xc94   :  { %6061 = vmatpush1.bf16.msra.mxu1 %v8638_v4  ;;  %6031 = vmatprep.subr.bf16.mxu0 %v8652_v53 }
 0xc95   :  { %6063 = vmatprep.subr.bf16.mxu1 %v8663_v47 }
 0xc97   :  { %6033 = vmatpush1.bf16.msra.mxu0 %v8665_v7 }
 0xc98   :  { %6065 = vmatpush1.bf16.msra.mxu1 %v8681_v50  ;;  %6035 = vmatprep.subr.bf16.mxu0 %v8694_v58 }
 0xc99   :  { %6067 = vmatprep.subr.bf16.mxu1 %v8696_v57 }
 0xc9b   :  { %6037 = vmatpush1.bf16.msra.mxu0 %v8708_v55 }
 0xc9c   :  { %6069 = vmatpush1.bf16.msra.mxu1 %v8721_v48  ;;  %6039 = vmatprep.subr.bf16.mxu0 %v8723_v29 }
 0xc9d   :  { %6071 = vmatprep.subr.bf16.mxu1 %v8734_v36 }
 0xc9f   :  { %6041 = vmatpush1.bf16.msra.mxu0 %v8746_v46 }
 0xca0   :  { %6073 = vmatpush1.bf16.msra.mxu1 %v8759_v22  ;;  %6043 = vmatprep.subr.bf16.mxu0 %v8761_v41 }
 0xca1   :  { %6075 = vmatprep.subr.bf16.mxu1 %v8773_v33 }
 0xca3   :  { %6045 = vmatpush1.bf16.msra.mxu0 %v8782_v59 }
 0xca4   :  { %6079 = vmatprep.subr.bf16.mxu0 %v8508_v1 }
 0xcf7   :  { %v4899_v27 = vpop.permute.xlu0 %4898 }
 0xcf8   :  { %4902 = vst.msk [vmem:[%s8959_s9] sm:$0xff] %vm4901_vm3, %v4899_v27  ;;  %v8786_v27 = vpack.c.bf16 %v3973_v5, %v3969_v38 }
 0xcfa   :  { %6077 = vmatpush1.bf16.msra.mxu1 %v8786_v27 }
 0xcfb   :  { %6111 = vmatprep.subr.bf16.mxu1 %v8519_v60 }
 0xd58   :  { %v3795_v26 = vpop.f32.mrb[24].mxu0 }
 0xd59   :  { %v6308_v52 = vadd.f32 %v3795_v26, %v8383_v12  ;;  %v3866_v23 = vpop.f32.mrb[24].mxu1  ;;  %v3797_v56 = vpop.f32.mrb[25].mxu0 }
 0xd5a   :  { %v6309_v8 = vadd.f32 %v3797_v56, %v8387_v19  ;;  %v3868_v49 = vpop.f32.mrb[25].mxu1  ;;  %v6324_v25 = vadd.f32 %v3866_v23, %v8398_v40 }
 0xd5b   :  { %v4999_v18 = vmul.f32 -1.442695, %v6308_v52  ;;  %v6325_v54 = vadd.f32 %v3868_v49, %v8393_v61 }
 0xd5c   :  { %v5000_v43 = vmul.f32 -1.442695, %v6309_v8 }
 0xd5d   :  { %6580 = vpow2.f32 %v4999_v18  ;;  %v5001_v16 = vmul.f32 -1.442695, %v6325_v54 }
 0xd5e   :  { %6582 = vpow2.f32 %v5000_v43 }
 0xd5f   :  { %6584 = vpow2.f32 %v5001_v16 }
 0xd60   :  { %6586 = vtanh.f32 %v6324_v25 }
 0xd67   :  { %v6581_v13 = vpop.eup %6580 }
 0xd68   :  { %v6583_v24 = vpop.eup %6582  ;;  %v3878_v45 = vadd.f32 1.0, %v6581_v13 }
 0xd69   :  { %v3884_v51 = vadd.f32 1.0, %v6583_v24  ;;  %v6585_v32 = vpop.eup %6584 }
 0xd6a   :  { %6588 = vrcp.f32 %v3878_v45  ;;  %v6587_v62 = vpop.eup %6586  ;;  %v3891_v11 = vadd.f32 1.0, %v6585_v32 }
 0xd6b   :  { %6590 = vrcp.f32 %v3884_v51 }
 0xd6c   :  { %6592 = vrcp.f32 %v3891_v11 }
 0xd74   :  { %v6589_v9 = vpop.eup %6588 }
 0xd75   :  { %v6591_v20 = vpop.eup %6590  ;;  %v3895_v28 = vmul.f32 %v6589_v9, %v6587_v62 }
 0xd76   :  { %v3894_v34 = vmul.f32 %v6591_v20, %v8493_v15  ;;  %v6593_v0 = vpop.eup %6592 }
 0xd78   :  { %v8798_v31 = vadd.f32 %v3895_v28, %v3894_v34 }
 0xd7a   :  { %6594 = vtanh.f32 %v8798_v31 }
 0xd84   :  { %v6595_v38 = vpop.eup %6594 }
 0xd85   :  { %v3898_v5 = vmul.f32 %v6595_v38, %v6593_v0 }
 0xd87   :  { %4905 = vrot.lane.b32.xlu0 %v3898_v5, %s6661_s15  ;;  %4040 = vmatmul.mubr.f32.vlgmr.msra.gmra.mrb[26].mxu0 %v3898_v5 }
 0xd88   :  { %4111 = vmatmul.mubr.f32.vlgmr.msra.gmra.mrb[26].mxu1 %v3898_v5  ;;  %6081 = vmatpush1.bf16.msra.mxu0 %v8521_v21 }
 0xd89   :  { %6113 = vmatpush1.bf16.msra.mxu1 %v8530_v2  ;;  %6083 = vmatprep.subr.bf16.mxu0 %v8544_v37 }
 0xd8a   :  { %6115 = vmatprep.subr.bf16.mxu1 %v8555_v10  ;;  %4285 = vmatprep.mubr.f32.mxu0 %v6660_v3 }
 0xd8b   :  { %4356 = vmatprep.mubr.f32.mxu1 %v6660_v3 }
 0xd8c   :  { %6085 = vmatpush1.bf16.msra.mxu0 %v8557_v63 }
 0xd8d   :  { %6117 = vmatpush1.bf16.msra.mxu1 %v8566_v14  ;;  %6087 = vmatprep.subr.bf16.mxu0 %v8580_v35 }
 0xd8e   :  { %6119 = vmatprep.subr.bf16.mxu1 %v8591_v39 }
 0xd90   :  { %6089 = vmatpush1.bf16.msra.mxu0 %v8593_v6 }
 0xd91   :  { %6121 = vmatpush1.bf16.msra.mxu1 %v8602_v42  ;;  %6091 = vmatprep.subr.bf16.mxu0 %v8616_v30 }
 0xd92   :  { %6123 = vmatprep.subr.bf16.mxu1 %v8627_v17 }
 0xd94   :  { %6093 = vmatpush1.bf16.msra.mxu0 %v8629_v44 }
 0xd95   :  { %6125 = vmatpush1.bf16.msra.mxu1 %v8638_v4  ;;  %6095 = vmatprep.subr.bf16.mxu0 %v8652_v53 }
 0xd96   :  { %6127 = vmatprep.subr.bf16.mxu1 %v8663_v47 }
 0xd98   :  { %6097 = vmatpush1.bf16.msra.mxu0 %v8665_v7 }
 0xd99   :  { %6129 = vmatpush1.bf16.msra.mxu1 %v8681_v50  ;;  %6099 = vmatprep.subr.bf16.mxu0 %v8694_v58 }
 0xd9a   :  { %6131 = vmatprep.subr.bf16.mxu1 %v8696_v57 }
 0xd9c   :  { %6101 = vmatpush1.bf16.msra.mxu0 %v8708_v55 }
 0xd9d   :  { %6133 = vmatpush1.bf16.msra.mxu1 %v8721_v48  ;;  %6103 = vmatprep.subr.bf16.mxu0 %v8723_v29 }
 0xd9e   :  { %6135 = vmatprep.subr.bf16.mxu1 %v8734_v36 }
 0xda0   :  { %6105 = vmatpush1.bf16.msra.mxu0 %v8746_v46 }
 0xda1   :  { %6137 = vmatpush1.bf16.msra.mxu1 %v8759_v22  ;;  %6107 = vmatprep.subr.bf16.mxu0 %v8761_v41 }
 0xda2   :  { %6139 = vmatprep.subr.bf16.mxu1 %v8773_v33 }
 0xda4   :  { %6109 = vmatpush1.bf16.msra.mxu0 %v8782_v59 }
 0xda5   :  { %6141 = vmatpush1.bf16.msra.mxu1 %v8786_v27  ;;  %6143 = vmatprep.subr.bf16.mxu0 %v8508_v1 }
 0xda6   :  { %6175 = vmatprep.subr.bf16.mxu1 %v8519_v60 }
 0xdf9   :  { %v4906_v15 = vpop.permute.xlu0 %4905 }
 0xdfa   :  { %4909 = vst.msk [vmem:[%s8959_s9] sm:$0xff] %vm4908_vm4, %v4906_v15 }
 0xe5a   :  { %v4041_v26 = vpop.f32.mrb[26].mxu0 }
 0xe5b   :  { %v6310_v52 = vadd.f32 %v4041_v26, %v8383_v12  ;;  %v4112_v23 = vpop.f32.mrb[26].mxu1  ;;  %v4043_v56 = vpop.f32.mrb[27].mxu0 }
 0xe5c   :  { %v6311_v8 = vadd.f32 %v4043_v56, %v8387_v19  ;;  %v4114_v49 = vpop.f32.mrb[27].mxu1  ;;  %v6326_v25 = vadd.f32 %v4112_v23, %v8398_v40 }
 0xe5d   :  { %v5002_v18 = vmul.f32 -1.442695, %v6310_v52  ;;  %v6327_v54 = vadd.f32 %v4114_v49, %v8393_v61 }
 0xe5e   :  { %v5003_v43 = vmul.f32 -1.442695, %v6311_v8 }
 0xe5f   :  { %6596 = vpow2.f32 %v5002_v18  ;;  %v5004_v16 = vmul.f32 -1.442695, %v6327_v54 }
 0xe60   :  { %6598 = vpow2.f32 %v5003_v43 }
 0xe61   :  { %6600 = vpow2.f32 %v5004_v16 }
 0xe62   :  { %6602 = vtanh.f32 %v6326_v25 }
 0xe69   :  { %v6597_v13 = vpop.eup %6596 }
 0xe6a   :  { %v6599_v24 = vpop.eup %6598  ;;  %v4124_v45 = vadd.f32 1.0, %v6597_v13 }
 0xe6b   :  { %v4130_v51 = vadd.f32 1.0, %v6599_v24  ;;  %v6601_v32 = vpop.eup %6600 }
 0xe6c   :  { %6604 = vrcp.f32 %v4124_v45  ;;  %v6603_v62 = vpop.eup %6602  ;;  %v4137_v11 = vadd.f32 1.0, %v6601_v32 }
 0xe6d   :  { %6606 = vrcp.f32 %v4130_v51 }
 0xe6e   :  { %6608 = vrcp.f32 %v4137_v11 }
 0xe76   :  { %v6605_v9 = vpop.eup %6604 }
 0xe77   :  { %v6607_v20 = vpop.eup %6606  ;;  %v4141_v28 = vmul.f32 %v6605_v9, %v6603_v62 }
 0xe78   :  { %v4140_v34 = vmul.f32 %v6607_v20, %v8798_v31  ;;  %v6609_v38 = vpop.eup %6608 }
 0xe7a   :  { %v8845_v0 = vadd.f32 %v4141_v28, %v4140_v34 }
 0xe7c   :  { %6610 = vtanh.f32 %v8845_v0 }
 0xe86   :  { %v6611_v5 = vpop.eup %6610 }
 0xe87   :  { %v4144_v15 = vmul.f32 %v6611_v5, %v6609_v38 }
 0xe89   :  { %4286 = vmatmul.mubr.f32.vlgmr.msra.gmra.mrb[28].mxu0 %v4144_v15  ;;  %4911 = vst.msk [vmem:[%s8959_s9 + $0x8] sm:$0xff] %vm33_vm0, %v4144_v15  ;;  %4357 = vmatmul.mubr.f32.vlgmr.msra.gmra.mrb[28].mxu1 %v4144_v15 }
 0xe8a   :  { %6145 = vmatpush1.bf16.msra.mxu0 %v8521_v21  ;;  %6177 = vmatpush1.bf16.msra.mxu1 %v8530_v2 }
 0xe8b   :  { %6147 = vmatprep.subr.bf16.mxu0 %v8544_v37  ;;  %6179 = vmatprep.subr.bf16.mxu1 %v8555_v10 }
 0xe8c   :  { %4531 = vmatprep.mubr.f32.mxu0 %v6660_v3  ;;  %4602 = vmatprep.mubr.f32.mxu1 %v6660_v3 }
 0xe8e   :  { %6149 = vmatpush1.bf16.msra.mxu0 %v8557_v63  ;;  %6181 = vmatpush1.bf16.msra.mxu1 %v8566_v14 }
 0xe8f   :  { %6151 = vmatprep.subr.bf16.mxu0 %v8580_v35  ;;  %6183 = vmatprep.subr.bf16.mxu1 %v8591_v39 }
 0xe92   :  { %6153 = vmatpush1.bf16.msra.mxu0 %v8593_v6  ;;  %6185 = vmatpush1.bf16.msra.mxu1 %v8602_v42 }
 0xe93   :  { %6155 = vmatprep.subr.bf16.mxu0 %v8616_v30  ;;  %6187 = vmatprep.subr.bf16.mxu1 %v8627_v17 }
 0xe96   :  { %6157 = vmatpush1.bf16.msra.mxu0 %v8629_v44  ;;  %6189 = vmatpush1.bf16.msra.mxu1 %v8638_v4 }
 0xe97   :  { %6159 = vmatprep.subr.bf16.mxu0 %v8652_v53  ;;  %6191 = vmatprep.subr.bf16.mxu1 %v8663_v47 }
 0xe9a   :  { %6161 = vmatpush1.bf16.msra.mxu0 %v8665_v7  ;;  %6193 = vmatpush1.bf16.msra.mxu1 %v8681_v50 }
 0xe9b   :  { %6163 = vmatprep.subr.bf16.mxu0 %v8694_v58  ;;  %6195 = vmatprep.subr.bf16.mxu1 %v8696_v57 }
 0xe9e   :  { %6165 = vmatpush1.bf16.msra.mxu0 %v8708_v55  ;;  %6197 = vmatpush1.bf16.msra.mxu1 %v8721_v48 }
 0xe9f   :  { %6167 = vmatprep.subr.bf16.mxu0 %v8723_v29  ;;  %6199 = vmatprep.subr.bf16.mxu1 %v8734_v36 }
 0xea2   :  { %6169 = vmatpush1.bf16.msra.mxu0 %v8746_v46  ;;  %6201 = vmatpush1.bf16.msra.mxu1 %v8759_v22 }
 0xea3   :  { %6171 = vmatprep.subr.bf16.mxu0 %v8761_v41  ;;  %6203 = vmatprep.subr.bf16.mxu1 %v8773_v33 }
 0xea6   :  { %6173 = vmatpush1.bf16.msra.mxu0 %v8782_v59  ;;  %6205 = vmatpush1.bf16.msra.mxu1 %v8786_v27 }
 0xea7   :  { %6207 = vmatprep.subr.bf16.mxu0 %v8508_v1  ;;  %6239 = vmatprep.subr.bf16.mxu1 %v8519_v60 }
 0xf5c   :  { %v4287_v31 = vpop.f32.mrb[28].mxu0  ;;  %v4358_v26 = vpop.f32.mrb[28].mxu1 }
 0xf5d   :  { %v6312_v52 = vadd.f32 %v4287_v31, %v8383_v12  ;;  %v4289_v23 = vpop.f32.mrb[29].mxu0  ;;  %v4360_v56 = vpop.f32.mrb[29].mxu1  ;;  %v6328_v16 = vadd.f32 %v4358_v26, %v8398_v40 }
 0xf5e   :  { %v6313_v8 = vadd.f32 %v4289_v23, %v8387_v19  ;;  %v6329_v43 = vadd.f32 %v4360_v56, %v8393_v61 }
 0xf5f   :  { %v5005_v49 = vmul.f32 -1.442695, %v6312_v52 }
 0xf60   :  { %v5006_v18 = vmul.f32 -1.442695, %v6313_v8  ;;  %v5007_v54 = vmul.f32 -1.442695, %v6329_v43 }
 0xf61   :  { %6612 = vpow2.f32 %v5005_v49 }
 0xf62   :  { %6614 = vpow2.f32 %v5006_v18 }
 0xf63   :  { %6616 = vpow2.f32 %v5007_v54 }
 0xf64   :  { %6618 = vtanh.f32 %v6328_v16 }
 0xf6b   :  { %v6613_v1 = vpop.eup %6612 }
 0xf6c   :  { %v6615_v25 = vpop.eup %6614  ;;  %v4370_v60 = vadd.f32 1.0, %v6613_v1 }
 0xf6d   :  { %v4376_v13 = vadd.f32 1.0, %v6615_v25  ;;  %v6617_v24 = vpop.eup %6616 }
 0xf6e   :  { %6620 = vrcp.f32 %v4370_v60  ;;  %v6619_v45 = vpop.eup %6618  ;;  %v4383_v9 = vadd.f32 1.0, %v6617_v24 }
 0xf6f   :  { %6622 = vrcp.f32 %v4376_v13 }
 0xf70   :  { %6624 = vrcp.f32 %v4383_v9 }
 0xf78   :  { %v6621_v51 = vpop.eup %6620 }
 0xf79   :  { %v6623_v32 = vpop.eup %6622  ;;  %v4387_v62 = vmul.f32 %v6621_v51, %v6619_v45 }
 0xf7a   :  { %v4386_v20 = vmul.f32 %v6623_v32, %v8845_v0  ;;  %v6625_v11 = vpop.eup %6624 }
 0xf7c   :  { %v8891_v28 = vadd.f32 %v4387_v62, %v4386_v20 }
 0xf7e   :  { %6626 = vtanh.f32 %v8891_v28 }
 0xf88   :  { %v6627_v34 = vpop.eup %6626 }
 0xf89   :  { %v4390_v38 = vmul.f32 %v6627_v34, %v6625_v11 }
 0xf8b   :  { %4914 = vrot.lane.b32.xlu1 %v4390_v38, %s6662_s16  ;;  %4532 = vmatmul.mubr.f32.vlgmr.msra.gmra.mrb[30].mxu0 %v4390_v38 }
 0xf8c   :  { %4603 = vmatmul.mubr.f32.vlgmr.msra.gmra.mrb[30].mxu1 %v4390_v38  ;;  %6209 = vmatpush1.bf16.msra.mxu0 %v8521_v21 }
 0xf8d   :  { %6241 = vmatpush1.bf16.msra.mxu1 %v8530_v2  ;;  %6211 = vmatprep.subr.bf16.mxu0 %v8544_v37 }
 0xf8e   :  { %6243 = vmatprep.subr.bf16.mxu1 %v8555_v10  ;;  %4777 = vmatprep.mubr.f32.mxu0 %v6660_v3 }
 0xf8f   :  { %4848 = vmatprep.mubr.f32.mxu1 %v6660_v3 }
 0xf90   :  { %6213 = vmatpush1.bf16.msra.mxu0 %v8557_v63 }
 0xf91   :  { %6245 = vmatpush1.bf16.msra.mxu1 %v8566_v14  ;;  %6215 = vmatprep.subr.bf16.mxu0 %v8580_v35 }
 0xf92   :  { %6247 = vmatprep.subr.bf16.mxu1 %v8591_v39 }
 0xf94   :  { %6217 = vmatpush1.bf16.msra.mxu0 %v8593_v6 }
 0xf95   :  { %6249 = vmatpush1.bf16.msra.mxu1 %v8602_v42  ;;  %6219 = vmatprep.subr.bf16.mxu0 %v8616_v30 }
 0xf96   :  { %6251 = vmatprep.subr.bf16.mxu1 %v8627_v17 }
 0xf98   :  { %6221 = vmatpush1.bf16.msra.mxu0 %v8629_v44 }
 0xf99   :  { %6253 = vmatpush1.bf16.msra.mxu1 %v8638_v4  ;;  %6223 = vmatprep.subr.bf16.mxu0 %v8652_v53 }
 0xf9a   :  { %6255 = vmatprep.subr.bf16.mxu1 %v8663_v47 }
 0xf9c   :  { %6225 = vmatpush1.bf16.msra.mxu0 %v8665_v7 }
 0xf9d   :  { %6257 = vmatpush1.bf16.msra.mxu1 %v8681_v50  ;;  %6227 = vmatprep.subr.bf16.mxu0 %v8694_v58 }
 0xf9e   :  { %6259 = vmatprep.subr.bf16.mxu1 %v8696_v57 }
 0xfa0   :  { %6229 = vmatpush1.bf16.msra.mxu0 %v8708_v55 }
 0xfa1   :  { %6261 = vmatpush1.bf16.msra.mxu1 %v8721_v48  ;;  %6231 = vmatprep.subr.bf16.mxu0 %v8723_v29 }
 0xfa2   :  { %6263 = vmatprep.subr.bf16.mxu1 %v8734_v36 }
 0xfa4   :  { %6233 = vmatpush1.bf16.msra.mxu0 %v8746_v46 }
 0xfa5   :  { %6265 = vmatpush1.bf16.msra.mxu1 %v8759_v22  ;;  %6235 = vmatprep.subr.bf16.mxu0 %v8761_v41 }
 0xfa6   :  { %6267 = vmatprep.subr.bf16.mxu1 %v8773_v33 }
 0xfa8   :  { %6237 = vmatpush1.bf16.msra.mxu0 %v8782_v59 }
 0xfa9   :  { %6269 = vmatpush1.bf16.msra.mxu1 %v8786_v27 }
 0xffd   :  { %v4915_v3 = vpop.permute.xlu1 %4914 }
 0xffe   :  { %4917 = vst.msk [vmem:[%s8959_s9 + $0x8] sm:$0xff] %vm4894_vm2, %v4915_v3 }
0x105e   :  { %v4533_v21 = vpop.f32.mrb[30].mxu0 }
0x105f   :  { %v6314_v2 = vadd.f32 %v4533_v21, %v8383_v12  ;;  %v4604_v37 = vpop.f32.mrb[30].mxu1  ;;  %v4535_v10 = vpop.f32.mrb[31].mxu0 }
0x1060   :  { %v6315_v63 = vadd.f32 %v4535_v10, %v8387_v19  ;;  %v4606_v14 = vpop.f32.mrb[31].mxu1  ;;  %v6330_v30 = vadd.f32 %v4604_v37, %v8398_v40 }
0x1061   :  { %v5008_v35 = vmul.f32 -1.442695, %v6314_v2  ;;  %v6331_v6 = vadd.f32 %v4606_v14, %v8393_v61 }
0x1062   :  { %v5009_v39 = vmul.f32 -1.442695, %v6315_v63 }
0x1063   :  { %6628 = vpow2.f32 %v5008_v35  ;;  %v5010_v42 = vmul.f32 -1.442695, %v6331_v6 }
0x1064   :  { %6630 = vpow2.f32 %v5009_v39 }
0x1065   :  { %6632 = vpow2.f32 %v5010_v42 }
0x1066   :  { %6634 = vtanh.f32 %v6330_v30 }
0x106d   :  { %v6629_v17 = vpop.eup %6628 }
0x106e   :  { %v6631_v44 = vpop.eup %6630  ;;  %v4616_v4 = vadd.f32 1.0, %v6629_v17 }
0x106f   :  { %v4622_v53 = vadd.f32 1.0, %v6631_v44  ;;  %v6633_v47 = vpop.eup %6632 }
0x1070   :  { %6636 = vrcp.f32 %v4616_v4  ;;  %v6635_v7 = vpop.eup %6634  ;;  %v4629_v55 = vadd.f32 1.0, %v6633_v47 }
0x1071   :  { %6638 = vrcp.f32 %v4622_v53 }
0x1072   :  { %6640 = vrcp.f32 %v4629_v55 }
0x107a   :  { %v6637_v50 = vpop.eup %6636 }
0x107b   :  { %v6639_v58 = vpop.eup %6638  ;;  %v4633_v57 = vmul.f32 %v6637_v50, %v6635_v7 }
0x107c   :  { %v4632_v48 = vmul.f32 %v6639_v58, %v8891_v28  ;;  %v6641_v36 = vpop.eup %6640 }
0x107e   :  { %v4634_v29 = vadd.f32 %v4633_v57, %v4632_v48 }
0x1080   :  { %6642 = vtanh.f32 %v4634_v29 }
0x108a   :  { %v6643_v46 = vpop.eup %6642 }
0x108b   :  { %v4636_v22 = vmul.f32 %v6643_v46, %v6641_v36 }
0x108d   :  { %4920 = vrot.lane.b32.xlu1 %v4636_v22, %s6663_s18  ;;  %4778 = vmatmul.mubr.f32.vlgmr.msra.gmra.mrb[32].mxu0 %v4636_v22 }
0x108e   :  { %4849 = vmatmul.mubr.f32.vlgmr.msra.gmra.mrb[32].mxu1 %v4636_v22 }
0x10ff   :  { %v4921_v41 = vpop.permute.xlu1 %4920 }
0x1100   :  { %4923 = vst.msk [vmem:[%s8959_s9 + $0x8] sm:$0xff] %vm4901_vm3, %v4921_v41 }
0x1160   :  { %v4779_v33 = vpop.f32.mrb[32].mxu0 }
0x1161   :  { %v6316_v59 = vadd.f32 %v4779_v33, %v8383_v12  ;;  %v4850_v27 = vpop.f32.mrb[32].mxu1  ;;  %v4781_v0 = vpop.f32.mrb[33].mxu0 }
0x1162   :  { %v6317_v5 = vadd.f32 %v4781_v0, %v8387_v19  ;;  %v4852_v15 = vpop.f32.mrb[33].mxu1  ;;  %v6332_v56 = vadd.f32 %v4850_v27, %v8398_v40 }
0x1163   :  { %v5011_v31 = vmul.f32 -1.442695, %v6316_v59  ;;  %v6333_v52 = vadd.f32 %v4852_v15, %v8393_v61 }
0x1164   :  { %v5012_v26 = vmul.f32 -1.442695, %v6317_v5 }
0x1165   :  { %6644 = vpow2.f32 %v5011_v31  ;;  %v5013_v23 = vmul.f32 -1.442695, %v6333_v52 }
0x1166   :  { %6646 = vpow2.f32 %v5012_v26 }
0x1167   :  { %6648 = vpow2.f32 %v5013_v23 }
0x1168   :  { %6650 = vtanh.f32 %v6332_v56 }
0x116f   :  { %v6645_v8 = vpop.eup %6644 }
0x1170   :  { %v6647_v49 = vpop.eup %6646  ;;  %v4862_v18 = vadd.f32 1.0, %v6645_v8 }
0x1171   :  { %v4868_v12 = vadd.f32 1.0, %v6647_v49  ;;  %v6649_v43 = vpop.eup %6648 }
0x1172   :  { %6652 = vrcp.f32 %v4862_v18  ;;  %v6651_v19 = vpop.eup %6650  ;;  %v4875_v25 = vadd.f32 1.0, %v6649_v43 }
0x1173   :  { %6654 = vrcp.f32 %v4868_v12 }
0x1174   :  { %6656 = vrcp.f32 %v4875_v25 }
0x117c   :  { %v6653_v54 = vpop.eup %6652 }
0x117d   :  { %v6655_v16 = vpop.eup %6654  ;;  %v4879_v1 = vmul.f32 %v6653_v54, %v6651_v19 }
0x117e   :  { %v4878_v60 = vmul.f32 %v6655_v16, %v4634_v29  ;;  %v6657_v61 = vpop.eup %6656 }
0x1180   :  { %v4880_v13 = vadd.f32 %v4879_v1, %v4878_v60 }
0x1182   :  { %6658 = vtanh.f32 %v4880_v13 }
0x118c   :  { %v6659_v40 = vpop.eup %6658 }
0x118d   :  { %v4882_v24 = vmul.f32 %v6659_v40, %v6657_v61 }
0x118f   :  { %4926 = vrot.lane.b32.xlu1 %v4882_v24, %s6661_s15 }
0x1201   :  { %v4927_v45 = vpop.permute.xlu1 %4926 }
0x1202   :  { %4929 = vst.msk [vmem:[%s8959_s9 + $0x8] sm:$0xff] %vm4908_vm4, %v4927_v45 }

</bundles_post_ra>
